<compile_context>
chip_gen: v7x
topology: tpu7x:2x2x1
jax: 0.10.0
libtpu: 0.0.40
codegen_flags: <defaults>
</compile_context>

<pallas_src>
import math
import functools

import numpy as np
import jax
import jax.numpy as jnp
from jax.experimental import pallas as pl
from jax.experimental.pallas import tpu as pltpu

NEG_INF = -1024.0  # fill value for masked logits (per neural_sp docstring)


# ----------------------------- kernel helpers ------------------------------ #

def _layer_norm(z, gamma, beta, eps):
    # Two-pass variance (same math as the reference module).
    m = jnp.mean(z, axis=-1, keepdims=True)
    c = z - m
    var = jnp.mean(c * c, axis=-1, keepdims=True)
    return c * jax.lax.rsqrt(var + eps) * gamma + beta


def _attend(q_in, kv_ref, mask, wq, bq, wo, bo, aw_ref, ctx_ref, n_heads, scale):
    """One multi-head attention sublayer for a query tile.

    q_in:[tq,D] (already LayerNorm'd), kv_ref: head-major VMEM cache [2H,Lk,dk]
    (heads 0..H-1 = K, H..2H-1 = V), mask:[tq,Lk] int (0 == pad).
    Per-head attention probs are written straight into aw_ref (block layout
    [1, H, tq, Lk], i.e. the reference [B,H,L,Lk] layout).  Per-head contexts
    land in lane slices of ctx_ref ([tq, D] VMEM scratch) so the output
    projection is a single full-depth matmul.  Residual NOT added here.
    """
    tq, d_model = q_in.shape
    dk = d_model // n_heads

    # Full-width (K = d_model) query projection; 1/sqrt(dk) folded into q.
    q = (jnp.dot(q_in, wq, preferred_element_type=jnp.float32) + bq) * scale

    is_pad = (mask == 0)                  # hoisted out of the head loop
    qk_dims = (((1,), (1,)), ((), ()))    # contract d_k against d_k (no k.T)

    for h in range(n_heads):              # static unroll; per-head QK^T/PV is inherent to MHA
        q_h = q[:, h * dk:(h + 1) * dk]   # [tq, dk]
        k_h = kv_ref[h]                   # [Lk, dk]  leading-axis cache read (free)
        v_h = kv_ref[n_heads + h]         # [Lk, dk]

        e = jax.lax.dot_general(q_h, k_h, qk_dims,
                                preferred_element_type=jnp.float32)   # [tq, Lk]
        e = jnp.where(is_pad, NEG_INF, e)
        e = e - jnp.max(e, axis=-1, keepdims=True)
        p = jnp.exp(e)
        # approx=True would move the reciprocal to the otherwise-idle EUP slot
        # in production; kept exact so the reference check stays tight.
        p = p * pl.reciprocal(jnp.sum(p, axis=-1, keepdims=True), approx=False)

        aw_ref[0, h] = p                  # reference-layout [B,H,L,Lk] write

        ctx_ref[:, h * dk:(h + 1) * dk] = jnp.dot(
            p, v_h, preferred_element_type=jnp.float32)               # [tq, dk]

    # ONE full-depth (K = d_model) output projection instead of H K=dk matmuls.
    return jnp.dot(ctx_ref[...], wo, preferred_element_type=jnp.float32) + bo


# --------------------------------- kernel ---------------------------------- #

def decoder_block_kernel(
    # batched inputs
    x_ref, y_ref, yx_mask_ref, yy_mask_ref,
    # params (full, replicated across grid)
    ln1_g_ref, ln1_b_ref,
    sa_wq_ref, sa_bq_ref, sa_wkv_ref, sa_bkv_ref, sa_wo_ref, sa_bo_ref,
    ln2_g_ref, ln2_b_ref,
    ca_wq_ref, ca_bq_ref, ca_wkv_ref, ca_bkv_ref, ca_wo_ref, ca_bo_ref,
    ln3_g_ref, ln3_b_ref,
    ff_w1_ref, ff_b1_ref, ff_w2_ref, ff_b2_ref,
    # outputs
    y_out_ref, yy_aw_ref, xy_aw_ref,
    # scratch
    sa_kv_ref, ca_kv_ref, ctx_ref,
    *, n_heads, tq, eps):
    H = n_heads
    L, D = y_ref.shape[1], y_ref.shape[2]
    dk = D // H
    scale = 1.0 / math.sqrt(dk)

    # ---- K/V caches: computed ONCE per batch element (first query tile),
    #      reused by every subsequent tile of this b (q axis is "arbitrary").
    @pl.when(pl.program_id(1) == 0)
    def _():
        # Self-attn keys/values: LN1 over the FULL target sequence + one fused
        # [L,D] @ [D,2D] matmul, scattered into the head-major cache.
        n1_kv = _layer_norm(y_ref[0], ln1_g_ref[...], ln1_b_ref[...], eps)
        kv = jnp.dot(n1_kv, sa_wkv_ref[...],
                     preferred_element_type=jnp.float32) + sa_bkv_ref[...]   # [L, 2D]
        for j in range(2 * H):          # once per b; amortized over all q tiles
            sa_kv_ref[j] = kv[:, j * dk:(j + 1) * dk]
        # Cross-attn keys/values from the raw encoder outputs x.
        kv = jnp.dot(x_ref[0], ca_wkv_ref[...],
                     preferred_element_type=jnp.float32) + ca_bkv_ref[...]   # [T, 2D]
        for j in range(2 * H):
            ca_kv_ref[j] = kv[:, j * dk:(j + 1) * dk]

    # Query rows handled by this grid step (sliced from the resident y slab).
    q0 = pl.multiple_of(pl.program_id(1) * tq, tq)
    y_t = y_ref[0, pl.ds(q0, tq), :]                                   # [tq, D]

    # 1) self-attention sublayer (pre-LN, residual add; dropout = identity).
    n1_q = _layer_norm(y_t, ln1_g_ref[...], ln1_b_ref[...], eps)
    y_t = y_t + _attend(n1_q, sa_kv_ref, yy_mask_ref[0],
                        sa_wq_ref[...], sa_bq_ref[...],
                        sa_wo_ref[...], sa_bo_ref[...],
                        yy_aw_ref, ctx_ref, H, scale)

    # 2) encoder-decoder attention: key = value = x, query = LN2(y).
    n2 = _layer_norm(y_t, ln2_g_ref[...], ln2_b_ref[...], eps)
    y_t = y_t + _attend(n2, ca_kv_ref, yx_mask_ref[0],
                        ca_wq_ref[...], ca_bq_ref[...],
                        ca_wo_ref[...], ca_bo_ref[...],
                        xy_aw_ref, ctx_ref, H, scale)

    # 3) position-wise feed-forward.
    n3 = _layer_norm(y_t, ln3_g_ref[...], ln3_b_ref[...], eps)
    hdn = jnp.dot(n3, ff_w1_ref[...], preferred_element_type=jnp.float32) + ff_b1_ref[...]
    hdn = jnp.maximum(hdn, 0.0)
    y_t = y_t + jnp.dot(hdn, ff_w2_ref[...], preferred_element_type=jnp.float32) + ff_b2_ref[...]

    y_out_ref[0] = y_t


# -------------------------------- wrapper ----------------------------------- #

def _default_vmem_limit_bytes():
    # ~110 MiB on 128-MiB parts (v5e/v6e), ~57 MiB on v7x (64 MiB physical).
    try:
        cap = int(pltpu.get_tpu_info().vmem_capacity_bytes)
    except Exception:
        cap = 64 * 1024 * 1024
    return int(min(int(cap * 0.9), 110 * 1024 * 1024))


def transformer_decoder_block(x, y, yx_mask, yy_mask, params, *, n_heads,
                              eps=1e-12, q_tile=None, vmem_limit_bytes=None):
    B, T, D = x.shape
    _, L, _ = y.shape
    H = n_heads
    assert D % H == 0
    dk = D // H

    # Default q tile: 128 fills the MXU M dim on v5e; raise to 256 on v6e/v7x
    # at production shapes.
    tq = q_tile if q_tile is not None else min(L, 128)
    assert L % tq == 0, "target length must be a multiple of the query tile"
    nq = L // tq

    if vmem_limit_bytes is None:
        vmem_limit_bytes = _default_vmem_limit_bytes()

    # Fused K|V projection weights: one [D, 2D] matmul per sublayer.
    sa_wkv = jnp.concatenate([params['sa_wk'], params['sa_wv']], axis=1)
    sa_bkv = jnp.concatenate([params['sa_bk'], params['sa_bv']], axis=1)
    ca_wkv = jnp.concatenate([params['ca_wk'], params['ca_wv']], axis=1)
    ca_bkv = jnp.concatenate([params['ca_bk'], params['ca_bv']], axis=1)

    param_vals = [
        params['ln1_g'], params['ln1_b'],
        params['sa_wq'], params['sa_bq'], sa_wkv, sa_bkv, params['sa_wo'], params['sa_bo'],
        params['ln2_g'], params['ln2_b'],
        params['ca_wq'], params['ca_bq'], ca_wkv, ca_bkv, params['ca_wo'], params['ca_bo'],
        params['ln3_g'], params['ln3_b'],
        params['ff_w1'], params['ff_b1'], params['ff_w2'], params['ff_b2'],
    ]

    def batch_full(shape):
        # Whole per-batch-element slab; block index constant along the q axis,
        # so it is only re-DMA'd when b changes.
        nd = len(shape)
        return pl.BlockSpec((1,) + tuple(shape[1:]),
                            lambda b, q, _nd=nd: (b,) + (0,) * (_nd - 1))

    def q_tiled(last):
        return pl.BlockSpec((1, tq, last), lambda b, q: (b, q, 0))

    def replicated(shape):
        nd = len(shape)
        return pl.BlockSpec(tuple(shape), lambda b, q, _nd=nd: (0,) * _nd)
        # TODO(synk): on v7x add pipeline_mode=pl.Buffered(1) here (and on the
        # batch_full specs) to single-buffer constant-index blocks.

    in_specs = ([batch_full(x.shape), batch_full(y.shape),
                 q_tiled(T), q_tiled(L)]
                + [replicated(p.shape) for p in param_vals])

    # Attention weights emitted directly in the reference [B, H, L, Lk] layout.
    out_shape = (jax.ShapeDtypeStruct((B, L, D), jnp.float32),
                 jax.ShapeDtypeStruct((B, H, L, L), jnp.float32),
                 jax.ShapeDtypeStruct((B, H, L, T), jnp.float32))
    out_specs = (q_tiled(D),
                 pl.BlockSpec((1, H, tq, L), lambda b, q: (b, 0, q, 0)),
                 pl.BlockSpec((1, H, tq, T), lambda b, q: (b, 0, q, 0)))

    scratch_shapes = [
        pltpu.VMEM((2 * H, L, dk), jnp.float32),   # self-attn K/V cache (head-major)
        pltpu.VMEM((2 * H, T, dk), jnp.float32),   # cross-attn K/V cache
        pltpu.VMEM((tq, D), jnp.float32),          # per-head context assembly
    ]

    kernel = functools.partial(decoder_block_kernel, n_heads=n_heads, tq=tq, eps=eps)
    y_out, yy_aw, xy_aw = pl.pallas_call(
        kernel,
        grid=(B, nq),
        in_specs=in_specs,
        out_specs=out_specs,
        out_shape=out_shape,
        scratch_shapes=scratch_shapes,
        compiler_params=pltpu.CompilerParams(
            # q axis carries the K/V cache across tiles => "arbitrary";
            # B stays "parallel" for megacore sharding.
            dimension_semantics=("parallel", "arbitrary"),
            vmem_limit_bytes=vmem_limit_bytes),
    )(x, y, yx_mask, yy_mask, *param_vals)

    return y_out, yy_aw, xy_aw


# ------------------------- pure-JAX reference check ------------------------- #

def ref_forward(x, y, yx_mask, yy_mask, p, *, n_heads, eps=1e-12):
    def ln(z, g, b):
        mu = z.mean(-1, keepdims=True)
        var = ((z - mu) ** 2).mean(-1, keepdims=True)
        return (z - mu) / jnp.sqrt(var + eps) * g + b

    def mha(q_in, kv_in, mask, pre):
        B, Lq, D = q_in.shape
        Lk = kv_in.shape[1]
        dk = D // n_heads
        q = q_in @ p[pre + '_wq'] + p[pre + '_bq']
        k = kv_in @ p[pre + '_wk'] + p[pre + '_bk']
        v = kv_in @ p[pre + '_wv'] + p[pre + '_bv']
        q = q.reshape(B, Lq, n_heads, dk).transpose(0, 2, 1, 3)
        k = k.reshape(B, Lk, n_heads, dk).transpose(0, 2, 1, 3)
        v = v.reshape(B, Lk, n_heads, dk).transpose(0, 2, 1, 3)
        e = jnp.einsum('bhqd,bhkd->bhqk', q, k) / math.sqrt(dk)
        e = jnp.where(mask[:, None] == 0, NEG_INF, e)
        a = jax.nn.softmax(e, axis=-1)
        ctx = jnp.einsum('bhqk,bhkd->bhqd', a, v)
        ctx = ctx.transpose(0, 2, 1, 3).reshape(B, Lq, D)
        return ctx @ p[pre + '_wo'] + p[pre + '_bo'], a

    n1 = ln(y, p['ln1_g'], p['ln1_b'])
    sa, yy_aw = mha(n1, n1, yy_mask, 'sa')
    y = y + sa
    n2 = ln(y, p['ln2_g'], p['ln2_b'])
    ca, xy_aw = mha(n2, x, yx_mask, 'ca')
    y = y + ca
    n3 = ln(y, p['ln3_g'], p['ln3_b'])
    ff = jnp.maximum(n3 @ p['ff_w1'] + p['ff_b1'], 0.0) @ p['ff_w2'] + p['ff_b2']
    return y + ff, yy_aw, xy_aw


# ---------------------------------- main ------------------------------------ #

if __name__ == "__main__":
    B, T, L = 2, 16, 16
    d_model, d_ff, n_heads = 32, 64, 4
    eps = 1e-12

    key = jax.random.PRNGKey(0)
    keys = iter(jax.random.split(key, 64))

    def w(shape, scale=0.1):
        return (scale * jax.random.normal(next(keys), shape)).astype(jnp.float32)

    params = {}
    for i in (1, 2, 3):
        params[f'ln{i}_g'] = (1.0 + w((1, d_model), 0.05))
        params[f'ln{i}_b'] = w((1, d_model), 0.05)
    for pre in ('sa', 'ca'):
        for nm in ('wq', 'wk', 'wv', 'wo'):
            params[f'{pre}_{nm}'] = w((d_model, d_model))
        for nm in ('bq', 'bk', 'bv', 'bo'):
            params[f'{pre}_{nm}'] = w((1, d_model), 0.02)
    params['ff_w1'] = w((d_model, d_ff))
    params['ff_b1'] = w((1, d_ff), 0.02)
    params['ff_w2'] = w((d_ff, d_model))
    params['ff_b2'] = w((1, d_model), 0.02)

    x = jax.random.normal(next(keys), (B, T, d_model), dtype=jnp.float32)
    y = jax.random.normal(next(keys), (B, L, d_model), dtype=jnp.float32)

    # Causal target-target mask [B, L, L] with the last 4 target keys of batch 1
    # padded out; source-target mask [B, L, T] with the last 4 encoder frames of
    # batch 1 padded out.
    yy_mask = jnp.tril(jnp.ones((L, L), dtype=jnp.int32))[None].repeat(B, axis=0)
    yy_mask = yy_mask.at[1, :, L - 4:].set(0)
    yx_mask = jnp.ones((B, L, T), dtype=jnp.int32)
    yx_mask = yx_mask.at[1, :, T - 4:].set(0)

    # q_tile=8 => 2 query tiles per batch element, exercising the K/V cache reuse.
    y_out, yy_aw, xy_aw = transformer_decoder_block(
        x, y, yx_mask, yy_mask, params, n_heads=n_heads, eps=eps, q_tile=8)
    jax.block_until_ready((y_out, yy_aw, xy_aw))

    y_ref, yy_aw_ref, xy_aw_ref = ref_forward(
        x, y, yx_mask, yy_mask, params, n_heads=n_heads, eps=eps)

    np.testing.assert_allclose(np.asarray(y_out), np.asarray(y_ref), rtol=3e-5, atol=3e-5)
    np.testing.assert_allclose(np.asarray(yy_aw), np.asarray(yy_aw_ref), rtol=3e-5, atol=3e-5)
    np.testing.assert_allclose(np.asarray(xy_aw), np.asarray(xy_aw_ref), rtol=3e-5, atol=3e-5)

    print("KERNEL_OK")
</pallas_src>

<mosaic_0001>
module attributes {stable_mosaic.version = 11 : i64} {
  func.func @decoder_block_kernel(%arg0: i32, %arg1: i32, %arg2: memref<1x16x32xf32, #tpu.memory_space<vmem>>, %arg3: memref<1x16x32xf32, #tpu.memory_space<vmem>>, %arg4: memref<1x8x16xi32, #tpu.memory_space<vmem>>, %arg5: memref<1x8x16xi32, #tpu.memory_space<vmem>>, %arg6: memref<1x32xf32, #tpu.memory_space<vmem>>, %arg7: memref<1x32xf32, #tpu.memory_space<vmem>>, %arg8: memref<32x32xf32, #tpu.memory_space<vmem>>, %arg9: memref<1x32xf32, #tpu.memory_space<vmem>>, %arg10: memref<32x64xf32, #tpu.memory_space<vmem>>, %arg11: memref<1x64xf32, #tpu.memory_space<vmem>>, %arg12: memref<32x32xf32, #tpu.memory_space<vmem>>, %arg13: memref<1x32xf32, #tpu.memory_space<vmem>>, %arg14: memref<1x32xf32, #tpu.memory_space<vmem>>, %arg15: memref<1x32xf32, #tpu.memory_space<vmem>>, %arg16: memref<32x32xf32, #tpu.memory_space<vmem>>, %arg17: memref<1x32xf32, #tpu.memory_space<vmem>>, %arg18: memref<32x64xf32, #tpu.memory_space<vmem>>, %arg19: memref<1x64xf32, #tpu.memory_space<vmem>>, %arg20: memref<32x32xf32, #tpu.memory_space<vmem>>, %arg21: memref<1x32xf32, #tpu.memory_space<vmem>>, %arg22: memref<1x32xf32, #tpu.memory_space<vmem>>, %arg23: memref<1x32xf32, #tpu.memory_space<vmem>>, %arg24: memref<32x64xf32, #tpu.memory_space<vmem>>, %arg25: memref<1x64xf32, #tpu.memory_space<vmem>>, %arg26: memref<64x32xf32, #tpu.memory_space<vmem>>, %arg27: memref<1x32xf32, #tpu.memory_space<vmem>>, %arg28: memref<1x8x32xf32, #tpu.memory_space<vmem>>, %arg29: memref<1x4x8x16xf32, #tpu.memory_space<vmem>>, %arg30: memref<1x4x8x16xf32, #tpu.memory_space<vmem>>, %arg31: memref<8x16x8xf32, #tpu.memory_space<vmem>>, %arg32: memref<8x16x8xf32, #tpu.memory_space<vmem>>, %arg33: memref<8x32xf32, #tpu.memory_space<vmem>>) attributes {dimension_semantics = [#tpu.dimension_semantics<parallel>, #tpu.dimension_semantics<arbitrary>], iteration_bounds = array<i64: 2, 2>, scalar_prefetch = 0 : i64, scratch_operands = 3 : i64, tpu.core_type = #tpu.core_type<tc>, window_params = [{transform_indices = @transform_0, window_bounds = array<i64: 1, 16, 32>}, {transform_indices = @transform_1, window_bounds = array<i64: 1, 16, 32>}, {transform_indices = @transform_2, window_bounds = array<i64: 1, 8, 16>}, {transform_indices = @transform_3, window_bounds = array<i64: 1, 8, 16>}, {pipeline_mode = #tpu.pipeline_mode<synchronous>, transform_indices = @transform_4, window_bounds = array<i64: 1, 32>}, {pipeline_mode = #tpu.pipeline_mode<synchronous>, transform_indices = @transform_5, window_bounds = array<i64: 1, 32>}, {pipeline_mode = #tpu.pipeline_mode<synchronous>, transform_indices = @transform_6, window_bounds = array<i64: 32, 32>}, {pipeline_mode = #tpu.pipeline_mode<synchronous>, transform_indices = @transform_7, window_bounds = array<i64: 1, 32>}, {pipeline_mode = #tpu.pipeline_mode<synchronous>, transform_indices = @transform_8, window_bounds = array<i64: 32, 64>}, {pipeline_mode = #tpu.pipeline_mode<synchronous>, transform_indices = @transform_9, window_bounds = array<i64: 1, 64>}, {pipeline_mode = #tpu.pipeline_mode<synchronous>, transform_indices = @transform_10, window_bounds = array<i64: 32, 32>}, {pipeline_mode = #tpu.pipeline_mode<synchronous>, transform_indices = @transform_11, window_bounds = array<i64: 1, 32>}, {pipeline_mode = #tpu.pipeline_mode<synchronous>, transform_indices = @transform_12, window_bounds = array<i64: 1, 32>}, {pipeline_mode = #tpu.pipeline_mode<synchronous>, transform_indices = @transform_13, window_bounds = array<i64: 1, 32>}, {pipeline_mode = #tpu.pipeline_mode<synchronous>, transform_indices = @transform_14, window_bounds = array<i64: 32, 32>}, {pipeline_mode = #tpu.pipeline_mode<synchronous>, transform_indices = @transform_15, window_bounds = array<i64: 1, 32>}, {pipeline_mode = #tpu.pipeline_mode<synchronous>, transform_indices = @transform_16, window_bounds = array<i64: 32, 64>}, {pipeline_mode = #tpu.pipeline_mode<synchronous>, transform_indices = @transform_17, window_bounds = array<i64: 1, 64>}, {pipeline_mode = #tpu.pipeline_mode<synchronous>, transform_indices = @transform_18, window_bounds = array<i64: 32, 32>}, {pipeline_mode = #tpu.pipeline_mode<synchronous>, transform_indices = @transform_19, window_bounds = array<i64: 1, 32>}, {pipeline_mode = #tpu.pipeline_mode<synchronous>, transform_indices = @transform_20, window_bounds = array<i64: 1, 32>}, {pipeline_mode = #tpu.pipeline_mode<synchronous>, transform_indices = @transform_21, window_bounds = array<i64: 1, 32>}, {pipeline_mode = #tpu.pipeline_mode<synchronous>, transform_indices = @transform_22, window_bounds = array<i64: 32, 64>}, {pipeline_mode = #tpu.pipeline_mode<synchronous>, transform_indices = @transform_23, window_bounds = array<i64: 1, 64>}, {pipeline_mode = #tpu.pipeline_mode<synchronous>, transform_indices = @transform_24, window_bounds = array<i64: 64, 32>}, {pipeline_mode = #tpu.pipeline_mode<synchronous>, transform_indices = @transform_25, window_bounds = array<i64: 1, 32>}, {transform_indices = @transform_26, window_bounds = array<i64: 1, 8, 32>}, {transform_indices = @transform_27, window_bounds = array<i64: 1, 4, 8, 16>}, {transform_indices = @transform_28, window_bounds = array<i64: 1, 4, 8, 16>}]} {
    %c0_i32 = arith.constant 0 : i32
    %0 = arith.cmpi eq, %arg1, %c0_i32 : i32
    %1 = arith.extui %0 : i1 to i32
    %c0_i32_0 = arith.constant 0 : i32
    %2 = arith.cmpi ne, %1, %c0_i32_0 : i32
    scf.if %2 {
      %c0_202 = arith.constant 0 : index
      %c0_203 = arith.constant 0 : index
      %c0_204 = arith.constant 0 : index
      %310 = vector.load %arg3[%c0_202, %c0_203, %c0_204] : memref<1x16x32xf32, #tpu.memory_space<vmem>>, vector<1x16x32xf32>
      %311 = vector.shape_cast %310 : vector<1x16x32xf32> to vector<16x32xf32>
      %c0_205 = arith.constant 0 : index
      %c0_206 = arith.constant 0 : index
      %312 = vector.load %arg6[%c0_205, %c0_206] : memref<1x32xf32, #tpu.memory_space<vmem>>, vector<1x32xf32>
      %c0_207 = arith.constant 0 : index
      %c0_208 = arith.constant 0 : index
      %313 = vector.load %arg7[%c0_207, %c0_208] : memref<1x32xf32, #tpu.memory_space<vmem>>, vector<1x32xf32>
      %cst_209 = arith.constant dense<0.000000e+00> : vector<16xf32>
      %314 = vector.multi_reduction <add>, %311, %cst_209 [1] : vector<16x32xf32> to vector<16xf32>
      %315 = vector.shape_cast %314 : vector<16xf32> to vector<16x1xf32>
      %cst_210 = arith.constant 3.200000e+01 : f32
      %316 = vector.broadcast %cst_210 : f32 to vector<16x1xf32>
      %317 = arith.divf %315, %316 : vector<16x1xf32>
      %318 = vector.broadcast %317 : vector<16x1xf32> to vector<16x32xf32>
      %319 = arith.subf %311, %318 : vector<16x32xf32>
      %320 = arith.mulf %319, %319 : vector<16x32xf32>
      %cst_211 = arith.constant dense<0.000000e+00> : vector<16xf32>
      %321 = vector.multi_reduction <add>, %320, %cst_211 [1] : vector<16x32xf32> to vector<16xf32>
      %322 = vector.shape_cast %321 : vector<16xf32> to vector<16x1xf32>
      %cst_212 = arith.constant 3.200000e+01 : f32
      %323 = vector.broadcast %cst_212 : f32 to vector<16x1xf32>
      %324 = arith.divf %322, %323 : vector<16x1xf32>
      %cst_213 = arith.constant 9.99999996E-13 : f32
      %325 = vector.broadcast %cst_213 : f32 to vector<16x1xf32>
      %326 = arith.addf %324, %325 : vector<16x1xf32>
      %327 = math.rsqrt %326 : vector<16x1xf32>
      %328 = vector.broadcast %327 : vector<16x1xf32> to vector<16x32xf32>
      %329 = arith.mulf %319, %328 : vector<16x32xf32>
      %330 = vector.broadcast %312 : vector<1x32xf32> to vector<16x32xf32>
      %331 = arith.mulf %329, %330 : vector<16x32xf32>
      %332 = vector.broadcast %313 : vector<1x32xf32> to vector<16x32xf32>
      %333 = arith.addf %331, %332 : vector<16x32xf32>
      %c0_214 = arith.constant 0 : index
      %c0_215 = arith.constant 0 : index
      %334 = vector.load %arg10[%c0_214, %c0_215] : memref<32x64xf32, #tpu.memory_space<vmem>>, vector<32x64xf32>
      %cst_216 = arith.constant dense<0.000000e+00> : vector<16x64xf32>
      %335 = tpu.matmul %333, %334, %cst_216 {dimension_numbers = #tpu.dot_dimension_numbers<[1], [0], [0], [1], [0, 0, 1, 1], [], []>} : vector<16x32xf32>, vector<32x64xf32>, vector<16x64xf32> -> vector<16x64xf32>
      %c0_217 = arith.constant 0 : index
      %c0_218 = arith.constant 0 : index
      %336 = vector.load %arg11[%c0_217, %c0_218] : memref<1x64xf32, #tpu.memory_space<vmem>>, vector<1x64xf32>
      %337 = vector.broadcast %336 : vector<1x64xf32> to vector<16x64xf32>
      %338 = arith.addf %335, %337 : vector<16x64xf32>
      %339 = vector.extract_strided_slice %338 {offsets = [0, 0], sizes = [16, 8], strides = [1, 1]} : vector<16x64xf32> to vector<16x8xf32>
      %c0_219 = arith.constant 0 : index
      %c0_220 = arith.constant 0 : index
      %c0_221 = arith.constant 0 : index
      %340 = vector.load %arg31[%c0_219, %c0_220, %c0_221] : memref<8x16x8xf32, #tpu.memory_space<vmem>>, vector<1x16x8xf32>
      %341 = vector.shape_cast %340 : vector<1x16x8xf32> to vector<16x8xf32>
      %342 = vector.shape_cast %339 : vector<16x8xf32> to vector<1x16x8xf32>
      tpu.vector_store %arg31[%c0_219, %c0_220, %c0_221], %342 {strides = array<i32>} : memref<8x16x8xf32, #tpu.memory_space<vmem>>, vector<1x16x8xf32>,
      %343 = vector.extract_strided_slice %338 {offsets = [0, 8], sizes = [16, 8], strides = [1, 1]} : vector<16x64xf32> to vector<16x8xf32>
      %c1_222 = arith.constant 1 : index
      %c0_223 = arith.constant 0 : index
      %c0_224 = arith.constant 0 : index
      %344 = vector.load %arg31[%c1_222, %c0_223, %c0_224] : memref<8x16x8xf32, #tpu.memory_space<vmem>>, vector<1x16x8xf32>
      %345 = vector.shape_cast %344 : vector<1x16x8xf32> to vector<16x8xf32>
      %346 = vector.shape_cast %343 : vector<16x8xf32> to vector<1x16x8xf32>
      tpu.vector_store %arg31[%c1_222, %c0_223, %c0_224], %346 {strides = array<i32>} : memref<8x16x8xf32, #tpu.memory_space<vmem>>, vector<1x16x8xf32>,
      %347 = vector.extract_strided_slice %338 {offsets = [0, 16], sizes = [16, 8], strides = [1, 1]} : vector<16x64xf32> to vector<16x8xf32>
      %c2_225 = arith.constant 2 : index
      %c0_226 = arith.constant 0 : index
      %c0_227 = arith.constant 0 : index
      %348 = vector.load %arg31[%c2_225, %c0_226, %c0_227] : memref<8x16x8xf32, #tpu.memory_space<vmem>>, vector<1x16x8xf32>
      %349 = vector.shape_cast %348 : vector<1x16x8xf32> to vector<16x8xf32>
      %350 = vector.shape_cast %347 : vector<16x8xf32> to vector<1x16x8xf32>
      tpu.vector_store %arg31[%c2_225, %c0_226, %c0_227], %350 {strides = array<i32>} : memref<8x16x8xf32, #tpu.memory_space<vmem>>, vector<1x16x8xf32>,
      %351 = vector.extract_strided_slice %338 {offsets = [0, 24], sizes = [16, 8], strides = [1, 1]} : vector<16x64xf32> to vector<16x8xf32>
      %c3_228 = arith.constant 3 : index
      %c0_229 = arith.constant 0 : index
      %c0_230 = arith.constant 0 : index
      %352 = vector.load %arg31[%c3_228, %c0_229, %c0_230] : memref<8x16x8xf32, #tpu.memory_space<vmem>>, vector<1x16x8xf32>
      %353 = vector.shape_cast %352 : vector<1x16x8xf32> to vector<16x8xf32>
      %354 = vector.shape_cast %351 : vector<16x8xf32> to vector<1x16x8xf32>
      tpu.vector_store %arg31[%c3_228, %c0_229, %c0_230], %354 {strides = array<i32>} : memref<8x16x8xf32, #tpu.memory_space<vmem>>, vector<1x16x8xf32>,
      %355 = vector.extract_strided_slice %338 {offsets = [0, 32], sizes = [16, 8], strides = [1, 1]} : vector<16x64xf32> to vector<16x8xf32>
      %c4_231 = arith.constant 4 : index
      %c0_232 = arith.constant 0 : index
      %c0_233 = arith.constant 0 : index
      %356 = vector.load %arg31[%c4_231, %c0_232, %c0_233] : memref<8x16x8xf32, #tpu.memory_space<vmem>>, vector<1x16x8xf32>
      %357 = vector.shape_cast %356 : vector<1x16x8xf32> to vector<16x8xf32>
      %358 = vector.shape_cast %355 : vector<16x8xf32> to vector<1x16x8xf32>
      tpu.vector_store %arg31[%c4_231, %c0_232, %c0_233], %358 {strides = array<i32>} : memref<8x16x8xf32, #tpu.memory_space<vmem>>, vector<1x16x8xf32>,
      %359 = vector.extract_strided_slice %338 {offsets = [0, 40], sizes = [16, 8], strides = [1, 1]} : vector<16x64xf32> to vector<16x8xf32>
      %c5_234 = arith.constant 5 : index
      %c0_235 = arith.constant 0 : index
      %c0_236 = arith.constant 0 : index
      %360 = vector.load %arg31[%c5_234, %c0_235, %c0_236] : memref<8x16x8xf32, #tpu.memory_space<vmem>>, vector<1x16x8xf32>
      %361 = vector.shape_cast %360 : vector<1x16x8xf32> to vector<16x8xf32>
      %362 = vector.shape_cast %359 : vector<16x8xf32> to vector<1x16x8xf32>
      tpu.vector_store %arg31[%c5_234, %c0_235, %c0_236], %362 {strides = array<i32>} : memref<8x16x8xf32, #tpu.memory_space<vmem>>, vector<1x16x8xf32>,
      %363 = vector.extract_strided_slice %338 {offsets = [0, 48], sizes = [16, 8], strides = [1, 1]} : vector<16x64xf32> to vector<16x8xf32>
      %c6_237 = arith.constant 6 : index
      %c0_238 = arith.constant 0 : index
      %c0_239 = arith.constant 0 : index
      %364 = vector.load %arg31[%c6_237, %c0_238, %c0_239] : memref<8x16x8xf32, #tpu.memory_space<vmem>>, vector<1x16x8xf32>
      %365 = vector.shape_cast %364 : vector<1x16x8xf32> to vector<16x8xf32>
      %366 = vector.shape_cast %363 : vector<16x8xf32> to vector<1x16x8xf32>
      tpu.vector_store %arg31[%c6_237, %c0_238, %c0_239], %366 {strides = array<i32>} : memref<8x16x8xf32, #tpu.memory_space<vmem>>, vector<1x16x8xf32>,
      %367 = vector.extract_strided_slice %338 {offsets = [0, 56], sizes = [16, 8], strides = [1, 1]} : vector<16x64xf32> to vector<16x8xf32>
      %c7_240 = arith.constant 7 : index
      %c0_241 = arith.constant 0 : index
      %c0_242 = arith.constant 0 : index
      %368 = vector.load %arg31[%c7_240, %c0_241, %c0_242] : memref<8x16x8xf32, #tpu.memory_space<vmem>>, vector<1x16x8xf32>
      %369 = vector.shape_cast %368 : vector<1x16x8xf32> to vector<16x8xf32>
      %370 = vector.shape_cast %367 : vector<16x8xf32> to vector<1x16x8xf32>
      tpu.vector_store %arg31[%c7_240, %c0_241, %c0_242], %370 {strides = array<i32>} : memref<8x16x8xf32, #tpu.memory_space<vmem>>, vector<1x16x8xf32>,
      %c0_243 = arith.constant 0 : index
      %c0_244 = arith.constant 0 : index
      %c0_245 = arith.constant 0 : index
      %371 = vector.load %arg2[%c0_243, %c0_244, %c0_245] : memref<1x16x32xf32, #tpu.memory_space<vmem>>, vector<1x16x32xf32>
      %372 = vector.shape_cast %371 : vector<1x16x32xf32> to vector<16x32xf32>
      %c0_246 = arith.constant 0 : index
      %c0_247 = arith.constant 0 : index
      %373 = vector.load %arg18[%c0_246, %c0_247] : memref<32x64xf32, #tpu.memory_space<vmem>>, vector<32x64xf32>
      %cst_248 = arith.constant dense<0.000000e+00> : vector<16x64xf32>
      %374 = tpu.matmul %372, %373, %cst_248 {dimension_numbers = #tpu.dot_dimension_numbers<[1], [0], [0], [1], [0, 0, 1, 1], [], []>} : vector<16x32xf32>, vector<32x64xf32>, vector<16x64xf32> -> vector<16x64xf32>
      %c0_249 = arith.constant 0 : index
      %c0_250 = arith.constant 0 : index
      %375 = vector.load %arg19[%c0_249, %c0_250] : memref<1x64xf32, #tpu.memory_space<vmem>>, vector<1x64xf32>
      %376 = vector.broadcast %375 : vector<1x64xf32> to vector<16x64xf32>
      %377 = arith.addf %374, %376 : vector<16x64xf32>
      %378 = vector.extract_strided_slice %377 {offsets = [0, 0], sizes = [16, 8], strides = [1, 1]} : vector<16x64xf32> to vector<16x8xf32>
      %c0_251 = arith.constant 0 : index
      %c0_252 = arith.constant 0 : index
      %c0_253 = arith.constant 0 : index
      %379 = vector.load %arg32[%c0_251, %c0_252, %c0_253] : memref<8x16x8xf32, #tpu.memory_space<vmem>>, vector<1x16x8xf32>
      %380 = vector.shape_cast %379 : vector<1x16x8xf32> to vector<16x8xf32>
      %381 = vector.shape_cast %378 : vector<16x8xf32> to vector<1x16x8xf32>
      tpu.vector_store %arg32[%c0_251, %c0_252, %c0_253], %381 {strides = array<i32>} : memref<8x16x8xf32, #tpu.memory_space<vmem>>, vector<1x16x8xf32>,
      %382 = vector.extract_strided_slice %377 {offsets = [0, 8], sizes = [16, 8], strides = [1, 1]} : vector<16x64xf32> to vector<16x8xf32>
      %c1_254 = arith.constant 1 : index
      %c0_255 = arith.constant 0 : index
      %c0_256 = arith.constant 0 : index
      %383 = vector.load %arg32[%c1_254, %c0_255, %c0_256] : memref<8x16x8xf32, #tpu.memory_space<vmem>>, vector<1x16x8xf32>
      %384 = vector.shape_cast %383 : vector<1x16x8xf32> to vector<16x8xf32>
      %385 = vector.shape_cast %382 : vector<16x8xf32> to vector<1x16x8xf32>
      tpu.vector_store %arg32[%c1_254, %c0_255, %c0_256], %385 {strides = array<i32>} : memref<8x16x8xf32, #tpu.memory_space<vmem>>, vector<1x16x8xf32>,
      %386 = vector.extract_strided_slice %377 {offsets = [0, 16], sizes = [16, 8], strides = [1, 1]} : vector<16x64xf32> to vector<16x8xf32>
      %c2_257 = arith.constant 2 : index
      %c0_258 = arith.constant 0 : index
      %c0_259 = arith.constant 0 : index
      %387 = vector.load %arg32[%c2_257, %c0_258, %c0_259] : memref<8x16x8xf32, #tpu.memory_space<vmem>>, vector<1x16x8xf32>
      %388 = vector.shape_cast %387 : vector<1x16x8xf32> to vector<16x8xf32>
      %389 = vector.shape_cast %386 : vector<16x8xf32> to vector<1x16x8xf32>
      tpu.vector_store %arg32[%c2_257, %c0_258, %c0_259], %389 {strides = array<i32>} : memref<8x16x8xf32, #tpu.memory_space<vmem>>, vector<1x16x8xf32>,
      %390 = vector.extract_strided_slice %377 {offsets = [0, 24], sizes = [16, 8], strides = [1, 1]} : vector<16x64xf32> to vector<16x8xf32>
      %c3_260 = arith.constant 3 : index
      %c0_261 = arith.constant 0 : index
      %c0_262 = arith.constant 0 : index
      %391 = vector.load %arg32[%c3_260, %c0_261, %c0_262] : memref<8x16x8xf32, #tpu.memory_space<vmem>>, vector<1x16x8xf32>
      %392 = vector.shape_cast %391 : vector<1x16x8xf32> to vector<16x8xf32>
      %393 = vector.shape_cast %390 : vector<16x8xf32> to vector<1x16x8xf32>
      tpu.vector_store %arg32[%c3_260, %c0_261, %c0_262], %393 {strides = array<i32>} : memref<8x16x8xf32, #tpu.memory_space<vmem>>, vector<1x16x8xf32>,
      %394 = vector.extract_strided_slice %377 {offsets = [0, 32], sizes = [16, 8], strides = [1, 1]} : vector<16x64xf32> to vector<16x8xf32>
      %c4_263 = arith.constant 4 : index
      %c0_264 = arith.constant 0 : index
      %c0_265 = arith.constant 0 : index
      %395 = vector.load %arg32[%c4_263, %c0_264, %c0_265] : memref<8x16x8xf32, #tpu.memory_space<vmem>>, vector<1x16x8xf32>
      %396 = vector.shape_cast %395 : vector<1x16x8xf32> to vector<16x8xf32>
      %397 = vector.shape_cast %394 : vector<16x8xf32> to vector<1x16x8xf32>
      tpu.vector_store %arg32[%c4_263, %c0_264, %c0_265], %397 {strides = array<i32>} : memref<8x16x8xf32, #tpu.memory_space<vmem>>, vector<1x16x8xf32>,
      %398 = vector.extract_strided_slice %377 {offsets = [0, 40], sizes = [16, 8], strides = [1, 1]} : vector<16x64xf32> to vector<16x8xf32>
      %c5_266 = arith.constant 5 : index
      %c0_267 = arith.constant 0 : index
      %c0_268 = arith.constant 0 : index
      %399 = vector.load %arg32[%c5_266, %c0_267, %c0_268] : memref<8x16x8xf32, #tpu.memory_space<vmem>>, vector<1x16x8xf32>
      %400 = vector.shape_cast %399 : vector<1x16x8xf32> to vector<16x8xf32>
      %401 = vector.shape_cast %398 : vector<16x8xf32> to vector<1x16x8xf32>
      tpu.vector_store %arg32[%c5_266, %c0_267, %c0_268], %401 {strides = array<i32>} : memref<8x16x8xf32, #tpu.memory_space<vmem>>, vector<1x16x8xf32>,
      %402 = vector.extract_strided_slice %377 {offsets = [0, 48], sizes = [16, 8], strides = [1, 1]} : vector<16x64xf32> to vector<16x8xf32>
      %c6_269 = arith.constant 6 : index
      %c0_270 = arith.constant 0 : index
      %c0_271 = arith.constant 0 : index
      %403 = vector.load %arg32[%c6_269, %c0_270, %c0_271] : memref<8x16x8xf32, #tpu.memory_space<vmem>>, vector<1x16x8xf32>
      %404 = vector.shape_cast %403 : vector<1x16x8xf32> to vector<16x8xf32>
      %405 = vector.shape_cast %402 : vector<16x8xf32> to vector<1x16x8xf32>
      tpu.vector_store %arg32[%c6_269, %c0_270, %c0_271], %405 {strides = array<i32>} : memref<8x16x8xf32, #tpu.memory_space<vmem>>, vector<1x16x8xf32>,
      %406 = vector.extract_strided_slice %377 {offsets = [0, 56], sizes = [16, 8], strides = [1, 1]} : vector<16x64xf32> to vector<16x8xf32>
      %c7_272 = arith.constant 7 : index
      %c0_273 = arith.constant 0 : index
      %c0_274 = arith.constant 0 : index
      %407 = vector.load %arg32[%c7_272, %c0_273, %c0_274] : memref<8x16x8xf32, #tpu.memory_space<vmem>>, vector<1x16x8xf32>
      %408 = vector.shape_cast %407 : vector<1x16x8xf32> to vector<16x8xf32>
      %409 = vector.shape_cast %406 : vector<16x8xf32> to vector<1x16x8xf32>
      tpu.vector_store %arg32[%c7_272, %c0_273, %c0_274], %409 {strides = array<i32>} : memref<8x16x8xf32, #tpu.memory_space<vmem>>, vector<1x16x8xf32>,
    } else {
    }
    %c8_i32 = arith.constant 8 : i32
    %3 = arith.muli %arg1, %c8_i32 : i32
    %4 = tpu.assume_multiple %3, 8 : i32
    %c0 = arith.constant 0 : index
    %5 = arith.index_cast %4 : i32 to index
    %c0_1 = arith.constant 0 : index
    %6 = vector.load %arg3[%c0, %5, %c0_1] : memref<1x16x32xf32, #tpu.memory_space<vmem>>, vector<1x8x32xf32>
    %7 = vector.shape_cast %6 : vector<1x8x32xf32> to vector<8x32xf32>
    %c0_2 = arith.constant 0 : index
    %c0_3 = arith.constant 0 : index
    %8 = vector.load %arg6[%c0_2, %c0_3] : memref<1x32xf32, #tpu.memory_space<vmem>>, vector<1x32xf32>
    %c0_4 = arith.constant 0 : index
    %c0_5 = arith.constant 0 : index
    %9 = vector.load %arg7[%c0_4, %c0_5] : memref<1x32xf32, #tpu.memory_space<vmem>>, vector<1x32xf32>
    %cst = arith.constant dense<0.000000e+00> : vector<8xf32>
    %10 = vector.multi_reduction <add>, %7, %cst [1] : vector<8x32xf32> to vector<8xf32>
    %11 = vector.shape_cast %10 : vector<8xf32> to vector<8x1xf32>
    %cst_6 = arith.constant 3.200000e+01 : f32
    %12 = vector.broadcast %cst_6 : f32 to vector<8x1xf32>
    %13 = arith.divf %11, %12 : vector<8x1xf32>
    %14 = vector.broadcast %13 : vector<8x1xf32> to vector<8x32xf32>
    %15 = arith.subf %7, %14 : vector<8x32xf32>
    %16 = arith.mulf %15, %15 : vector<8x32xf32>
    %cst_7 = arith.constant dense<0.000000e+00> : vector<8xf32>
    %17 = vector.multi_reduction <add>, %16, %cst_7 [1] : vector<8x32xf32> to vector<8xf32>
    %18 = vector.shape_cast %17 : vector<8xf32> to vector<8x1xf32>
    %cst_8 = arith.constant 3.200000e+01 : f32
    %19 = vector.broadcast %cst_8 : f32 to vector<8x1xf32>
    %20 = arith.divf %18, %19 : vector<8x1xf32>
    %cst_9 = arith.constant 9.99999996E-13 : f32
    %21 = vector.broadcast %cst_9 : f32 to vector<8x1xf32>
    %22 = arith.addf %20, %21 : vector<8x1xf32>
    %23 = math.rsqrt %22 : vector<8x1xf32>
    %24 = vector.broadcast %23 : vector<8x1xf32> to vector<8x32xf32>
    %25 = arith.mulf %15, %24 : vector<8x32xf32>
    %26 = vector.broadcast %8 : vector<1x32xf32> to vector<8x32xf32>
    %27 = arith.mulf %25, %26 : vector<8x32xf32>
    %28 = vector.broadcast %9 : vector<1x32xf32> to vector<8x32xf32>
    %29 = arith.addf %27, %28 : vector<8x32xf32>
    %c0_10 = arith.constant 0 : index
    %c0_11 = arith.constant 0 : index
    %c0_12 = arith.constant 0 : index
    %30 = vector.load %arg5[%c0_10, %c0_11, %c0_12] : memref<1x8x16xi32, #tpu.memory_space<vmem>>, vector<1x8x16xi32>
    %31 = vector.shape_cast %30 : vector<1x8x16xi32> to vector<8x16xi32>
    %c0_13 = arith.constant 0 : index
    %c0_14 = arith.constant 0 : index
    %32 = vector.load %arg8[%c0_13, %c0_14] : memref<32x32xf32, #tpu.memory_space<vmem>>, vector<32x32xf32>
    %c0_15 = arith.constant 0 : index
    %c0_16 = arith.constant 0 : index
    %33 = vector.load %arg9[%c0_15, %c0_16] : memref<1x32xf32, #tpu.memory_space<vmem>>, vector<1x32xf32>
    %c0_17 = arith.constant 0 : index
    %c0_18 = arith.constant 0 : index
    %34 = vector.load %arg12[%c0_17, %c0_18] : memref<32x32xf32, #tpu.memory_space<vmem>>, vector<32x32xf32>
    %c0_19 = arith.constant 0 : index
    %c0_20 = arith.constant 0 : index
    %35 = vector.load %arg13[%c0_19, %c0_20] : memref<1x32xf32, #tpu.memory_space<vmem>>, vector<1x32xf32>
    %cst_21 = arith.constant dense<0.000000e+00> : vector<8x32xf32>
    %36 = tpu.matmul %29, %32, %cst_21 {dimension_numbers = #tpu.dot_dimension_numbers<[1], [0], [0], [1], [0, 0, 1, 1], [], []>} : vector<8x32xf32>, vector<32x32xf32>, vector<8x32xf32> -> vector<8x32xf32>
    %37 = vector.broadcast %33 : vector<1x32xf32> to vector<8x32xf32>
    %38 = arith.addf %36, %37 : vector<8x32xf32>
    %cst_22 = arith.constant 0.353553385 : f32
    %39 = vector.broadcast %cst_22 : f32 to vector<8x32xf32>
    %40 = arith.mulf %38, %39 : vector<8x32xf32>
    %c0_i32_23 = arith.constant 0 : i32
    %41 = vector.broadcast %c0_i32_23 : i32 to vector<8x16xi32>
    %42 = arith.cmpi eq, %31, %41 : vector<8x16xi32>
    %43 = vector.extract_strided_slice %40 {offsets = [0, 0], sizes = [8, 8], strides = [1, 1]} : vector<8x32xf32> to vector<8x8xf32>
    %c0_24 = arith.constant 0 : index
    %c0_25 = arith.constant 0 : index
    %c0_26 = arith.constant 0 : index
    %44 = vector.load %arg31[%c0_24, %c0_25, %c0_26] : memref<8x16x8xf32, #tpu.memory_space<vmem>>, vector<1x16x8xf32>
    %45 = vector.shape_cast %44 : vector<1x16x8xf32> to vector<16x8xf32>
    %c4 = arith.constant 4 : index
    %c0_27 = arith.constant 0 : index
    %c0_28 = arith.constant 0 : index
    %46 = vector.load %arg31[%c4, %c0_27, %c0_28] : memref<8x16x8xf32, #tpu.memory_space<vmem>>, vector<1x16x8xf32>
    %47 = vector.shape_cast %46 : vector<1x16x8xf32> to vector<16x8xf32>
    %cst_29 = arith.constant dense<0.000000e+00> : vector<8x16xf32>
    %48 = tpu.matmul %43, %45, %cst_29 {dimension_numbers = #tpu.dot_dimension_numbers<[1], [1], [0], [0], [0, 0, 1, 0], [], []>} : vector<8x8xf32>, vector<16x8xf32>, vector<8x16xf32> -> vector<8x16xf32>
    %cst_30 = arith.constant -1.024000e+03 : f32
    %49 = vector.broadcast %cst_30 : f32 to vector<8x16xf32>
    %50 = arith.select %42, %49, %48 : vector<8x16xi1>, vector<8x16xf32>
    %cst_31 = arith.constant dense<0xFF800000> : vector<8xf32>
    %51 = vector.multi_reduction <maximumf>, %50, %cst_31 [1] : vector<8x16xf32> to vector<8xf32>
    %52 = vector.shape_cast %51 : vector<8xf32> to vector<8x1xf32>
    %53 = vector.broadcast %52 : vector<8x1xf32> to vector<8x16xf32>
    %54 = arith.subf %50, %53 : vector<8x16xf32>
    %55 = math.exp %54 : vector<8x16xf32>
    %cst_32 = arith.constant dense<0.000000e+00> : vector<8xf32>
    %56 = vector.multi_reduction <add>, %55, %cst_32 [1] : vector<8x16xf32> to vector<8xf32>
    %57 = vector.shape_cast %56 : vector<8xf32> to vector<8x1xf32>
    %58 = tpu.reciprocal %57 : vector<8x1xf32> -> vector<8x1xf32>
    %59 = vector.broadcast %58 : vector<8x1xf32> to vector<8x16xf32>
    %60 = arith.mulf %55, %59 : vector<8x16xf32>
    %c0_33 = arith.constant 0 : index
    %c0_34 = arith.constant 0 : index
    %c0_35 = arith.constant 0 : index
    %c0_36 = arith.constant 0 : index
    %61 = vector.load %arg29[%c0_33, %c0_34, %c0_35, %c0_36] : memref<1x4x8x16xf32, #tpu.memory_space<vmem>>, vector<1x1x8x16xf32>
    %62 = vector.shape_cast %61 : vector<1x1x8x16xf32> to vector<8x16xf32>
    %63 = vector.shape_cast %60 : vector<8x16xf32> to vector<1x1x8x16xf32>
    tpu.vector_store %arg29[%c0_33, %c0_34, %c0_35, %c0_36], %63 {strides = array<i32>} : memref<1x4x8x16xf32, #tpu.memory_space<vmem>>, vector<1x1x8x16xf32>,
    %cst_37 = arith.constant dense<0.000000e+00> : vector<8x8xf32>
    %64 = tpu.matmul %60, %47, %cst_37 {dimension_numbers = #tpu.dot_dimension_numbers<[1], [0], [0], [1], [0, 0, 1, 1], [], []>} : vector<8x16xf32>, vector<16x8xf32>, vector<8x8xf32> -> vector<8x8xf32>
    %c0_38 = arith.constant 0 : index
    %c0_39 = arith.constant 0 : index
    %65 = vector.load %arg33[%c0_38, %c0_39] : memref<8x32xf32, #tpu.memory_space<vmem>>, vector<8x8xf32>
    tpu.vector_store %arg33[%c0_38, %c0_39], %64 {strides = array<i32>} : memref<8x32xf32, #tpu.memory_space<vmem>>, vector<8x8xf32>,
    %66 = vector.extract_strided_slice %40 {offsets = [0, 8], sizes = [8, 8], strides = [1, 1]} : vector<8x32xf32> to vector<8x8xf32>
    %c1 = arith.constant 1 : index
    %c0_40 = arith.constant 0 : index
    %c0_41 = arith.constant 0 : index
    %67 = vector.load %arg31[%c1, %c0_40, %c0_41] : memref<8x16x8xf32, #tpu.memory_space<vmem>>, vector<1x16x8xf32>
    %68 = vector.shape_cast %67 : vector<1x16x8xf32> to vector<16x8xf32>
    %c5 = arith.constant 5 : index
    %c0_42 = arith.constant 0 : index
    %c0_43 = arith.constant 0 : index
    %69 = vector.load %arg31[%c5, %c0_42, %c0_43] : memref<8x16x8xf32, #tpu.memory_space<vmem>>, vector<1x16x8xf32>
    %70 = vector.shape_cast %69 : vector<1x16x8xf32> to vector<16x8xf32>
    %cst_44 = arith.constant dense<0.000000e+00> : vector<8x16xf32>
    %71 = tpu.matmul %66, %68, %cst_44 {dimension_numbers = #tpu.dot_dimension_numbers<[1], [1], [0], [0], [0, 0, 1, 0], [], []>} : vector<8x8xf32>, vector<16x8xf32>, vector<8x16xf32> -> vector<8x16xf32>
    %cst_45 = arith.constant -1.024000e+03 : f32
    %72 = vector.broadcast %cst_45 : f32 to vector<8x16xf32>
    %73 = arith.select %42, %72, %71 : vector<8x16xi1>, vector<8x16xf32>
    %cst_46 = arith.constant dense<0xFF800000> : vector<8xf32>
    %74 = vector.multi_reduction <maximumf>, %73, %cst_46 [1] : vector<8x16xf32> to vector<8xf32>
    %75 = vector.shape_cast %74 : vector<8xf32> to vector<8x1xf32>
    %76 = vector.broadcast %75 : vector<8x1xf32> to vector<8x16xf32>
    %77 = arith.subf %73, %76 : vector<8x16xf32>
    %78 = math.exp %77 : vector<8x16xf32>
    %cst_47 = arith.constant dense<0.000000e+00> : vector<8xf32>
    %79 = vector.multi_reduction <add>, %78, %cst_47 [1] : vector<8x16xf32> to vector<8xf32>
    %80 = vector.shape_cast %79 : vector<8xf32> to vector<8x1xf32>
    %81 = tpu.reciprocal %80 : vector<8x1xf32> -> vector<8x1xf32>
    %82 = vector.broadcast %81 : vector<8x1xf32> to vector<8x16xf32>
    %83 = arith.mulf %78, %82 : vector<8x16xf32>
    %c0_48 = arith.constant 0 : index
    %c1_49 = arith.constant 1 : index
    %c0_50 = arith.constant 0 : index
    %c0_51 = arith.constant 0 : index
    %84 = vector.load %arg29[%c0_48, %c1_49, %c0_50, %c0_51] : memref<1x4x8x16xf32, #tpu.memory_space<vmem>>, vector<1x1x8x16xf32>
    %85 = vector.shape_cast %84 : vector<1x1x8x16xf32> to vector<8x16xf32>
    %86 = vector.shape_cast %83 : vector<8x16xf32> to vector<1x1x8x16xf32>
    tpu.vector_store %arg29[%c0_48, %c1_49, %c0_50, %c0_51], %86 {strides = array<i32>} : memref<1x4x8x16xf32, #tpu.memory_space<vmem>>, vector<1x1x8x16xf32>,
    %cst_52 = arith.constant dense<0.000000e+00> : vector<8x8xf32>
    %87 = tpu.matmul %83, %70, %cst_52 {dimension_numbers = #tpu.dot_dimension_numbers<[1], [0], [0], [1], [0, 0, 1, 1], [], []>} : vector<8x16xf32>, vector<16x8xf32>, vector<8x8xf32> -> vector<8x8xf32>
    %c0_53 = arith.constant 0 : index
    %c8 = arith.constant 8 : index
    %88 = vector.load %arg33[%c0_53, %c8] : memref<8x32xf32, #tpu.memory_space<vmem>>, vector<8x8xf32>
    tpu.vector_store %arg33[%c0_53, %c8], %87 {strides = array<i32>} : memref<8x32xf32, #tpu.memory_space<vmem>>, vector<8x8xf32>,
    %89 = vector.extract_strided_slice %40 {offsets = [0, 16], sizes = [8, 8], strides = [1, 1]} : vector<8x32xf32> to vector<8x8xf32>
    %c2 = arith.constant 2 : index
    %c0_54 = arith.constant 0 : index
    %c0_55 = arith.constant 0 : index
    %90 = vector.load %arg31[%c2, %c0_54, %c0_55] : memref<8x16x8xf32, #tpu.memory_space<vmem>>, vector<1x16x8xf32>
    %91 = vector.shape_cast %90 : vector<1x16x8xf32> to vector<16x8xf32>
    %c6 = arith.constant 6 : index
    %c0_56 = arith.constant 0 : index
    %c0_57 = arith.constant 0 : index
    %92 = vector.load %arg31[%c6, %c0_56, %c0_57] : memref<8x16x8xf32, #tpu.memory_space<vmem>>, vector<1x16x8xf32>
    %93 = vector.shape_cast %92 : vector<1x16x8xf32> to vector<16x8xf32>
    %cst_58 = arith.constant dense<0.000000e+00> : vector<8x16xf32>
    %94 = tpu.matmul %89, %91, %cst_58 {dimension_numbers = #tpu.dot_dimension_numbers<[1], [1], [0], [0], [0, 0, 1, 0], [], []>} : vector<8x8xf32>, vector<16x8xf32>, vector<8x16xf32> -> vector<8x16xf32>
    %cst_59 = arith.constant -1.024000e+03 : f32
    %95 = vector.broadcast %cst_59 : f32 to vector<8x16xf32>
    %96 = arith.select %42, %95, %94 : vector<8x16xi1>, vector<8x16xf32>
    %cst_60 = arith.constant dense<0xFF800000> : vector<8xf32>
    %97 = vector.multi_reduction <maximumf>, %96, %cst_60 [1] : vector<8x16xf32> to vector<8xf32>
    %98 = vector.shape_cast %97 : vector<8xf32> to vector<8x1xf32>
    %99 = vector.broadcast %98 : vector<8x1xf32> to vector<8x16xf32>
    %100 = arith.subf %96, %99 : vector<8x16xf32>
    %101 = math.exp %100 : vector<8x16xf32>
    %cst_61 = arith.constant dense<0.000000e+00> : vector<8xf32>
    %102 = vector.multi_reduction <add>, %101, %cst_61 [1] : vector<8x16xf32> to vector<8xf32>
    %103 = vector.shape_cast %102 : vector<8xf32> to vector<8x1xf32>
    %104 = tpu.reciprocal %103 : vector<8x1xf32> -> vector<8x1xf32>
    %105 = vector.broadcast %104 : vector<8x1xf32> to vector<8x16xf32>
    %106 = arith.mulf %101, %105 : vector<8x16xf32>
    %c0_62 = arith.constant 0 : index
    %c2_63 = arith.constant 2 : index
    %c0_64 = arith.constant 0 : index
    %c0_65 = arith.constant 0 : index
    %107 = vector.load %arg29[%c0_62, %c2_63, %c0_64, %c0_65] : memref<1x4x8x16xf32, #tpu.memory_space<vmem>>, vector<1x1x8x16xf32>
    %108 = vector.shape_cast %107 : vector<1x1x8x16xf32> to vector<8x16xf32>
    %109 = vector.shape_cast %106 : vector<8x16xf32> to vector<1x1x8x16xf32>
    tpu.vector_store %arg29[%c0_62, %c2_63, %c0_64, %c0_65], %109 {strides = array<i32>} : memref<1x4x8x16xf32, #tpu.memory_space<vmem>>, vector<1x1x8x16xf32>,
    %cst_66 = arith.constant dense<0.000000e+00> : vector<8x8xf32>
    %110 = tpu.matmul %106, %93, %cst_66 {dimension_numbers = #tpu.dot_dimension_numbers<[1], [0], [0], [1], [0, 0, 1, 1], [], []>} : vector<8x16xf32>, vector<16x8xf32>, vector<8x8xf32> -> vector<8x8xf32>
    %c0_67 = arith.constant 0 : index
    %c16 = arith.constant 16 : index
    %111 = vector.load %arg33[%c0_67, %c16] : memref<8x32xf32, #tpu.memory_space<vmem>>, vector<8x8xf32>
    tpu.vector_store %arg33[%c0_67, %c16], %110 {strides = array<i32>} : memref<8x32xf32, #tpu.memory_space<vmem>>, vector<8x8xf32>,
    %112 = vector.extract_strided_slice %40 {offsets = [0, 24], sizes = [8, 8], strides = [1, 1]} : vector<8x32xf32> to vector<8x8xf32>
    %c3 = arith.constant 3 : index
    %c0_68 = arith.constant 0 : index
    %c0_69 = arith.constant 0 : index
    %113 = vector.load %arg31[%c3, %c0_68, %c0_69] : memref<8x16x8xf32, #tpu.memory_space<vmem>>, vector<1x16x8xf32>
    %114 = vector.shape_cast %113 : vector<1x16x8xf32> to vector<16x8xf32>
    %c7 = arith.constant 7 : index
    %c0_70 = arith.constant 0 : index
    %c0_71 = arith.constant 0 : index
    %115 = vector.load %arg31[%c7, %c0_70, %c0_71] : memref<8x16x8xf32, #tpu.memory_space<vmem>>, vector<1x16x8xf32>
    %116 = vector.shape_cast %115 : vector<1x16x8xf32> to vector<16x8xf32>
    %cst_72 = arith.constant dense<0.000000e+00> : vector<8x16xf32>
    %117 = tpu.matmul %112, %114, %cst_72 {dimension_numbers = #tpu.dot_dimension_numbers<[1], [1], [0], [0], [0, 0, 1, 0], [], []>} : vector<8x8xf32>, vector<16x8xf32>, vector<8x16xf32> -> vector<8x16xf32>
    %cst_73 = arith.constant -1.024000e+03 : f32
    %118 = vector.broadcast %cst_73 : f32 to vector<8x16xf32>
    %119 = arith.select %42, %118, %117 : vector<8x16xi1>, vector<8x16xf32>
    %cst_74 = arith.constant dense<0xFF800000> : vector<8xf32>
    %120 = vector.multi_reduction <maximumf>, %119, %cst_74 [1] : vector<8x16xf32> to vector<8xf32>
    %121 = vector.shape_cast %120 : vector<8xf32> to vector<8x1xf32>
    %122 = vector.broadcast %121 : vector<8x1xf32> to vector<8x16xf32>
    %123 = arith.subf %119, %122 : vector<8x16xf32>
    %124 = math.exp %123 : vector<8x16xf32>
    %cst_75 = arith.constant dense<0.000000e+00> : vector<8xf32>
    %125 = vector.multi_reduction <add>, %124, %cst_75 [1] : vector<8x16xf32> to vector<8xf32>
    %126 = vector.shape_cast %125 : vector<8xf32> to vector<8x1xf32>
    %127 = tpu.reciprocal %126 : vector<8x1xf32> -> vector<8x1xf32>
    %128 = vector.broadcast %127 : vector<8x1xf32> to vector<8x16xf32>
    %129 = arith.mulf %124, %128 : vector<8x16xf32>
    %c0_76 = arith.constant 0 : index
    %c3_77 = arith.constant 3 : index
    %c0_78 = arith.constant 0 : index
    %c0_79 = arith.constant 0 : index
    %130 = vector.load %arg29[%c0_76, %c3_77, %c0_78, %c0_79] : memref<1x4x8x16xf32, #tpu.memory_space<vmem>>, vector<1x1x8x16xf32>
    %131 = vector.shape_cast %130 : vector<1x1x8x16xf32> to vector<8x16xf32>
    %132 = vector.shape_cast %129 : vector<8x16xf32> to vector<1x1x8x16xf32>
    tpu.vector_store %arg29[%c0_76, %c3_77, %c0_78, %c0_79], %132 {strides = array<i32>} : memref<1x4x8x16xf32, #tpu.memory_space<vmem>>, vector<1x1x8x16xf32>,
    %cst_80 = arith.constant dense<0.000000e+00> : vector<8x8xf32>
    %133 = tpu.matmul %129, %116, %cst_80 {dimension_numbers = #tpu.dot_dimension_numbers<[1], [0], [0], [1], [0, 0, 1, 1], [], []>} : vector<8x16xf32>, vector<16x8xf32>, vector<8x8xf32> -> vector<8x8xf32>
    %c0_81 = arith.constant 0 : index
    %c24 = arith.constant 24 : index
    %134 = vector.load %arg33[%c0_81, %c24] : memref<8x32xf32, #tpu.memory_space<vmem>>, vector<8x8xf32>
    tpu.vector_store %arg33[%c0_81, %c24], %133 {strides = array<i32>} : memref<8x32xf32, #tpu.memory_space<vmem>>, vector<8x8xf32>,
    %c0_82 = arith.constant 0 : index
    %c0_83 = arith.constant 0 : index
    %135 = vector.load %arg33[%c0_82, %c0_83] : memref<8x32xf32, #tpu.memory_space<vmem>>, vector<8x32xf32>
    %cst_84 = arith.constant dense<0.000000e+00> : vector<8x32xf32>
    %136 = tpu.matmul %135, %34, %cst_84 {dimension_numbers = #tpu.dot_dimension_numbers<[1], [0], [0], [1], [0, 0, 1, 1], [], []>} : vector<8x32xf32>, vector<32x32xf32>, vector<8x32xf32> -> vector<8x32xf32>
    %137 = vector.broadcast %35 : vector<1x32xf32> to vector<8x32xf32>
    %138 = arith.addf %136, %137 : vector<8x32xf32>
    %139 = arith.addf %7, %138 : vector<8x32xf32>
    %c0_85 = arith.constant 0 : index
    %c0_86 = arith.constant 0 : index
    %140 = vector.load %arg14[%c0_85, %c0_86] : memref<1x32xf32, #tpu.memory_space<vmem>>, vector<1x32xf32>
    %c0_87 = arith.constant 0 : index
    %c0_88 = arith.constant 0 : index
    %141 = vector.load %arg15[%c0_87, %c0_88] : memref<1x32xf32, #tpu.memory_space<vmem>>, vector<1x32xf32>
    %cst_89 = arith.constant dense<0.000000e+00> : vector<8xf32>
    %142 = vector.multi_reduction <add>, %139, %cst_89 [1] : vector<8x32xf32> to vector<8xf32>
    %143 = vector.shape_cast %142 : vector<8xf32> to vector<8x1xf32>
    %cst_90 = arith.constant 3.200000e+01 : f32
    %144 = vector.broadcast %cst_90 : f32 to vector<8x1xf32>
    %145 = arith.divf %143, %144 : vector<8x1xf32>
    %146 = vector.broadcast %145 : vector<8x1xf32> to vector<8x32xf32>
    %147 = arith.subf %139, %146 : vector<8x32xf32>
    %148 = arith.mulf %147, %147 : vector<8x32xf32>
    %cst_91 = arith.constant dense<0.000000e+00> : vector<8xf32>
    %149 = vector.multi_reduction <add>, %148, %cst_91 [1] : vector<8x32xf32> to vector<8xf32>
    %150 = vector.shape_cast %149 : vector<8xf32> to vector<8x1xf32>
    %cst_92 = arith.constant 3.200000e+01 : f32
    %151 = vector.broadcast %cst_92 : f32 to vector<8x1xf32>
    %152 = arith.divf %150, %151 : vector<8x1xf32>
    %cst_93 = arith.constant 9.99999996E-13 : f32
    %153 = vector.broadcast %cst_93 : f32 to vector<8x1xf32>
    %154 = arith.addf %152, %153 : vector<8x1xf32>
    %155 = math.rsqrt %154 : vector<8x1xf32>
    %156 = vector.broadcast %155 : vector<8x1xf32> to vector<8x32xf32>
    %157 = arith.mulf %147, %156 : vector<8x32xf32>
    %158 = vector.broadcast %140 : vector<1x32xf32> to vector<8x32xf32>
    %159 = arith.mulf %157, %158 : vector<8x32xf32>
    %160 = vector.broadcast %141 : vector<1x32xf32> to vector<8x32xf32>
    %161 = arith.addf %159, %160 : vector<8x32xf32>
    %c0_94 = arith.constant 0 : index
    %c0_95 = arith.constant 0 : index
    %c0_96 = arith.constant 0 : index
    %162 = vector.load %arg4[%c0_94, %c0_95, %c0_96] : memref<1x8x16xi32, #tpu.memory_space<vmem>>, vector<1x8x16xi32>
    %163 = vector.shape_cast %162 : vector<1x8x16xi32> to vector<8x16xi32>
    %c0_97 = arith.constant 0 : index
    %c0_98 = arith.constant 0 : index
    %164 = vector.load %arg16[%c0_97, %c0_98] : memref<32x32xf32, #tpu.memory_space<vmem>>, vector<32x32xf32>
    %c0_99 = arith.constant 0 : index
    %c0_100 = arith.constant 0 : index
    %165 = vector.load %arg17[%c0_99, %c0_100] : memref<1x32xf32, #tpu.memory_space<vmem>>, vector<1x32xf32>
    %c0_101 = arith.constant 0 : index
    %c0_102 = arith.constant 0 : index
    %166 = vector.load %arg20[%c0_101, %c0_102] : memref<32x32xf32, #tpu.memory_space<vmem>>, vector<32x32xf32>
    %c0_103 = arith.constant 0 : index
    %c0_104 = arith.constant 0 : index
    %167 = vector.load %arg21[%c0_103, %c0_104] : memref<1x32xf32, #tpu.memory_space<vmem>>, vector<1x32xf32>
    %cst_105 = arith.constant dense<0.000000e+00> : vector<8x32xf32>
    %168 = tpu.matmul %161, %164, %cst_105 {dimension_numbers = #tpu.dot_dimension_numbers<[1], [0], [0], [1], [0, 0, 1, 1], [], []>} : vector<8x32xf32>, vector<32x32xf32>, vector<8x32xf32> -> vector<8x32xf32>
    %169 = vector.broadcast %165 : vector<1x32xf32> to vector<8x32xf32>
    %170 = arith.addf %168, %169 : vector<8x32xf32>
    %cst_106 = arith.constant 0.353553385 : f32
    %171 = vector.broadcast %cst_106 : f32 to vector<8x32xf32>
    %172 = arith.mulf %170, %171 : vector<8x32xf32>
    %c0_i32_107 = arith.constant 0 : i32
    %173 = vector.broadcast %c0_i32_107 : i32 to vector<8x16xi32>
    %174 = arith.cmpi eq, %163, %173 : vector<8x16xi32>
    %175 = vector.extract_strided_slice %172 {offsets = [0, 0], sizes = [8, 8], strides = [1, 1]} : vector<8x32xf32> to vector<8x8xf32>
    %c0_108 = arith.constant 0 : index
    %c0_109 = arith.constant 0 : index
    %c0_110 = arith.constant 0 : index
    %176 = vector.load %arg32[%c0_108, %c0_109, %c0_110] : memref<8x16x8xf32, #tpu.memory_space<vmem>>, vector<1x16x8xf32>
    %177 = vector.shape_cast %176 : vector<1x16x8xf32> to vector<16x8xf32>
    %c4_111 = arith.constant 4 : index
    %c0_112 = arith.constant 0 : index
    %c0_113 = arith.constant 0 : index
    %178 = vector.load %arg32[%c4_111, %c0_112, %c0_113] : memref<8x16x8xf32, #tpu.memory_space<vmem>>, vector<1x16x8xf32>
    %179 = vector.shape_cast %178 : vector<1x16x8xf32> to vector<16x8xf32>
    %cst_114 = arith.constant dense<0.000000e+00> : vector<8x16xf32>
    %180 = tpu.matmul %175, %177, %cst_114 {dimension_numbers = #tpu.dot_dimension_numbers<[1], [1], [0], [0], [0, 0, 1, 0], [], []>} : vector<8x8xf32>, vector<16x8xf32>, vector<8x16xf32> -> vector<8x16xf32>
    %cst_115 = arith.constant -1.024000e+03 : f32
    %181 = vector.broadcast %cst_115 : f32 to vector<8x16xf32>
    %182 = arith.select %174, %181, %180 : vector<8x16xi1>, vector<8x16xf32>
    %cst_116 = arith.constant dense<0xFF800000> : vector<8xf32>
    %183 = vector.multi_reduction <maximumf>, %182, %cst_116 [1] : vector<8x16xf32> to vector<8xf32>
    %184 = vector.shape_cast %183 : vector<8xf32> to vector<8x1xf32>
    %185 = vector.broadcast %184 : vector<8x1xf32> to vector<8x16xf32>
    %186 = arith.subf %182, %185 : vector<8x16xf32>
    %187 = math.exp %186 : vector<8x16xf32>
    %cst_117 = arith.constant dense<0.000000e+00> : vector<8xf32>
    %188 = vector.multi_reduction <add>, %187, %cst_117 [1] : vector<8x16xf32> to vector<8xf32>
    %189 = vector.shape_cast %188 : vector<8xf32> to vector<8x1xf32>
    %190 = tpu.reciprocal %189 : vector<8x1xf32> -> vector<8x1xf32>
    %191 = vector.broadcast %190 : vector<8x1xf32> to vector<8x16xf32>
    %192 = arith.mulf %187, %191 : vector<8x16xf32>
    %c0_118 = arith.constant 0 : index
    %c0_119 = arith.constant 0 : index
    %c0_120 = arith.constant 0 : index
    %c0_121 = arith.constant 0 : index
    %193 = vector.load %arg30[%c0_118, %c0_119, %c0_120, %c0_121] : memref<1x4x8x16xf32, #tpu.memory_space<vmem>>, vector<1x1x8x16xf32>
    %194 = vector.shape_cast %193 : vector<1x1x8x16xf32> to vector<8x16xf32>
    %195 = vector.shape_cast %192 : vector<8x16xf32> to vector<1x1x8x16xf32>
    tpu.vector_store %arg30[%c0_118, %c0_119, %c0_120, %c0_121], %195 {strides = array<i32>} : memref<1x4x8x16xf32, #tpu.memory_space<vmem>>, vector<1x1x8x16xf32>,
    %cst_122 = arith.constant dense<0.000000e+00> : vector<8x8xf32>
    %196 = tpu.matmul %192, %179, %cst_122 {dimension_numbers = #tpu.dot_dimension_numbers<[1], [0], [0], [1], [0, 0, 1, 1], [], []>} : vector<8x16xf32>, vector<16x8xf32>, vector<8x8xf32> -> vector<8x8xf32>
    %c0_123 = arith.constant 0 : index
    %c0_124 = arith.constant 0 : index
    %197 = vector.load %arg33[%c0_123, %c0_124] : memref<8x32xf32, #tpu.memory_space<vmem>>, vector<8x8xf32>
    tpu.vector_store %arg33[%c0_123, %c0_124], %196 {strides = array<i32>} : memref<8x32xf32, #tpu.memory_space<vmem>>, vector<8x8xf32>,
    %198 = vector.extract_strided_slice %172 {offsets = [0, 8], sizes = [8, 8], strides = [1, 1]} : vector<8x32xf32> to vector<8x8xf32>
    %c1_125 = arith.constant 1 : index
    %c0_126 = arith.constant 0 : index
    %c0_127 = arith.constant 0 : index
    %199 = vector.load %arg32[%c1_125, %c0_126, %c0_127] : memref<8x16x8xf32, #tpu.memory_space<vmem>>, vector<1x16x8xf32>
    %200 = vector.shape_cast %199 : vector<1x16x8xf32> to vector<16x8xf32>
    %c5_128 = arith.constant 5 : index
    %c0_129 = arith.constant 0 : index
    %c0_130 = arith.constant 0 : index
    %201 = vector.load %arg32[%c5_128, %c0_129, %c0_130] : memref<8x16x8xf32, #tpu.memory_space<vmem>>, vector<1x16x8xf32>
    %202 = vector.shape_cast %201 : vector<1x16x8xf32> to vector<16x8xf32>
    %cst_131 = arith.constant dense<0.000000e+00> : vector<8x16xf32>
    %203 = tpu.matmul %198, %200, %cst_131 {dimension_numbers = #tpu.dot_dimension_numbers<[1], [1], [0], [0], [0, 0, 1, 0], [], []>} : vector<8x8xf32>, vector<16x8xf32>, vector<8x16xf32> -> vector<8x16xf32>
    %cst_132 = arith.constant -1.024000e+03 : f32
    %204 = vector.broadcast %cst_132 : f32 to vector<8x16xf32>
    %205 = arith.select %174, %204, %203 : vector<8x16xi1>, vector<8x16xf32>
    %cst_133 = arith.constant dense<0xFF800000> : vector<8xf32>
    %206 = vector.multi_reduction <maximumf>, %205, %cst_133 [1] : vector<8x16xf32> to vector<8xf32>
    %207 = vector.shape_cast %206 : vector<8xf32> to vector<8x1xf32>
    %208 = vector.broadcast %207 : vector<8x1xf32> to vector<8x16xf32>
    %209 = arith.subf %205, %208 : vector<8x16xf32>
    %210 = math.exp %209 : vector<8x16xf32>
    %cst_134 = arith.constant dense<0.000000e+00> : vector<8xf32>
    %211 = vector.multi_reduction <add>, %210, %cst_134 [1] : vector<8x16xf32> to vector<8xf32>
    %212 = vector.shape_cast %211 : vector<8xf32> to vector<8x1xf32>
    %213 = tpu.reciprocal %212 : vector<8x1xf32> -> vector<8x1xf32>
    %214 = vector.broadcast %213 : vector<8x1xf32> to vector<8x16xf32>
    %215 = arith.mulf %210, %214 : vector<8x16xf32>
    %c0_135 = arith.constant 0 : index
    %c1_136 = arith.constant 1 : index
    %c0_137 = arith.constant 0 : index
    %c0_138 = arith.constant 0 : index
    %216 = vector.load %arg30[%c0_135, %c1_136, %c0_137, %c0_138] : memref<1x4x8x16xf32, #tpu.memory_space<vmem>>, vector<1x1x8x16xf32>
    %217 = vector.shape_cast %216 : vector<1x1x8x16xf32> to vector<8x16xf32>
    %218 = vector.shape_cast %215 : vector<8x16xf32> to vector<1x1x8x16xf32>
    tpu.vector_store %arg30[%c0_135, %c1_136, %c0_137, %c0_138], %218 {strides = array<i32>} : memref<1x4x8x16xf32, #tpu.memory_space<vmem>>, vector<1x1x8x16xf32>,
    %cst_139 = arith.constant dense<0.000000e+00> : vector<8x8xf32>
    %219 = tpu.matmul %215, %202, %cst_139 {dimension_numbers = #tpu.dot_dimension_numbers<[1], [0], [0], [1], [0, 0, 1, 1], [], []>} : vector<8x16xf32>, vector<16x8xf32>, vector<8x8xf32> -> vector<8x8xf32>
    %c0_140 = arith.constant 0 : index
    %c8_141 = arith.constant 8 : index
    %220 = vector.load %arg33[%c0_140, %c8_141] : memref<8x32xf32, #tpu.memory_space<vmem>>, vector<8x8xf32>
    tpu.vector_store %arg33[%c0_140, %c8_141], %219 {strides = array<i32>} : memref<8x32xf32, #tpu.memory_space<vmem>>, vector<8x8xf32>,
    %221 = vector.extract_strided_slice %172 {offsets = [0, 16], sizes = [8, 8], strides = [1, 1]} : vector<8x32xf32> to vector<8x8xf32>
    %c2_142 = arith.constant 2 : index
    %c0_143 = arith.constant 0 : index
    %c0_144 = arith.constant 0 : index
    %222 = vector.load %arg32[%c2_142, %c0_143, %c0_144] : memref<8x16x8xf32, #tpu.memory_space<vmem>>, vector<1x16x8xf32>
    %223 = vector.shape_cast %222 : vector<1x16x8xf32> to vector<16x8xf32>
    %c6_145 = arith.constant 6 : index
    %c0_146 = arith.constant 0 : index
    %c0_147 = arith.constant 0 : index
    %224 = vector.load %arg32[%c6_145, %c0_146, %c0_147] : memref<8x16x8xf32, #tpu.memory_space<vmem>>, vector<1x16x8xf32>
    %225 = vector.shape_cast %224 : vector<1x16x8xf32> to vector<16x8xf32>
    %cst_148 = arith.constant dense<0.000000e+00> : vector<8x16xf32>
    %226 = tpu.matmul %221, %223, %cst_148 {dimension_numbers = #tpu.dot_dimension_numbers<[1], [1], [0], [0], [0, 0, 1, 0], [], []>} : vector<8x8xf32>, vector<16x8xf32>, vector<8x16xf32> -> vector<8x16xf32>
    %cst_149 = arith.constant -1.024000e+03 : f32
    %227 = vector.broadcast %cst_149 : f32 to vector<8x16xf32>
    %228 = arith.select %174, %227, %226 : vector<8x16xi1>, vector<8x16xf32>
    %cst_150 = arith.constant dense<0xFF800000> : vector<8xf32>
    %229 = vector.multi_reduction <maximumf>, %228, %cst_150 [1] : vector<8x16xf32> to vector<8xf32>
    %230 = vector.shape_cast %229 : vector<8xf32> to vector<8x1xf32>
    %231 = vector.broadcast %230 : vector<8x1xf32> to vector<8x16xf32>
    %232 = arith.subf %228, %231 : vector<8x16xf32>
    %233 = math.exp %232 : vector<8x16xf32>
    %cst_151 = arith.constant dense<0.000000e+00> : vector<8xf32>
    %234 = vector.multi_reduction <add>, %233, %cst_151 [1] : vector<8x16xf32> to vector<8xf32>
    %235 = vector.shape_cast %234 : vector<8xf32> to vector<8x1xf32>
    %236 = tpu.reciprocal %235 : vector<8x1xf32> -> vector<8x1xf32>
    %237 = vector.broadcast %236 : vector<8x1xf32> to vector<8x16xf32>
    %238 = arith.mulf %233, %237 : vector<8x16xf32>
    %c0_152 = arith.constant 0 : index
    %c2_153 = arith.constant 2 : index
    %c0_154 = arith.constant 0 : index
    %c0_155 = arith.constant 0 : index
    %239 = vector.load %arg30[%c0_152, %c2_153, %c0_154, %c0_155] : memref<1x4x8x16xf32, #tpu.memory_space<vmem>>, vector<1x1x8x16xf32>
    %240 = vector.shape_cast %239 : vector<1x1x8x16xf32> to vector<8x16xf32>
    %241 = vector.shape_cast %238 : vector<8x16xf32> to vector<1x1x8x16xf32>
    tpu.vector_store %arg30[%c0_152, %c2_153, %c0_154, %c0_155], %241 {strides = array<i32>} : memref<1x4x8x16xf32, #tpu.memory_space<vmem>>, vector<1x1x8x16xf32>,
    %cst_156 = arith.constant dense<0.000000e+00> : vector<8x8xf32>
    %242 = tpu.matmul %238, %225, %cst_156 {dimension_numbers = #tpu.dot_dimension_numbers<[1], [0], [0], [1], [0, 0, 1, 1], [], []>} : vector<8x16xf32>, vector<16x8xf32>, vector<8x8xf32> -> vector<8x8xf32>
    %c0_157 = arith.constant 0 : index
    %c16_158 = arith.constant 16 : index
    %243 = vector.load %arg33[%c0_157, %c16_158] : memref<8x32xf32, #tpu.memory_space<vmem>>, vector<8x8xf32>
    tpu.vector_store %arg33[%c0_157, %c16_158], %242 {strides = array<i32>} : memref<8x32xf32, #tpu.memory_space<vmem>>, vector<8x8xf32>,
    %244 = vector.extract_strided_slice %172 {offsets = [0, 24], sizes = [8, 8], strides = [1, 1]} : vector<8x32xf32> to vector<8x8xf32>
    %c3_159 = arith.constant 3 : index
    %c0_160 = arith.constant 0 : index
    %c0_161 = arith.constant 0 : index
    %245 = vector.load %arg32[%c3_159, %c0_160, %c0_161] : memref<8x16x8xf32, #tpu.memory_space<vmem>>, vector<1x16x8xf32>
    %246 = vector.shape_cast %245 : vector<1x16x8xf32> to vector<16x8xf32>
    %c7_162 = arith.constant 7 : index
    %c0_163 = arith.constant 0 : index
    %c0_164 = arith.constant 0 : index
    %247 = vector.load %arg32[%c7_162, %c0_163, %c0_164] : memref<8x16x8xf32, #tpu.memory_space<vmem>>, vector<1x16x8xf32>
    %248 = vector.shape_cast %247 : vector<1x16x8xf32> to vector<16x8xf32>
    %cst_165 = arith.constant dense<0.000000e+00> : vector<8x16xf32>
    %249 = tpu.matmul %244, %246, %cst_165 {dimension_numbers = #tpu.dot_dimension_numbers<[1], [1], [0], [0], [0, 0, 1, 0], [], []>} : vector<8x8xf32>, vector<16x8xf32>, vector<8x16xf32> -> vector<8x16xf32>
    %cst_166 = arith.constant -1.024000e+03 : f32
    %250 = vector.broadcast %cst_166 : f32 to vector<8x16xf32>
    %251 = arith.select %174, %250, %249 : vector<8x16xi1>, vector<8x16xf32>
    %cst_167 = arith.constant dense<0xFF800000> : vector<8xf32>
    %252 = vector.multi_reduction <maximumf>, %251, %cst_167 [1] : vector<8x16xf32> to vector<8xf32>
    %253 = vector.shape_cast %252 : vector<8xf32> to vector<8x1xf32>
    %254 = vector.broadcast %253 : vector<8x1xf32> to vector<8x16xf32>
    %255 = arith.subf %251, %254 : vector<8x16xf32>
    %256 = math.exp %255 : vector<8x16xf32>
    %cst_168 = arith.constant dense<0.000000e+00> : vector<8xf32>
    %257 = vector.multi_reduction <add>, %256, %cst_168 [1] : vector<8x16xf32> to vector<8xf32>
    %258 = vector.shape_cast %257 : vector<8xf32> to vector<8x1xf32>
    %259 = tpu.reciprocal %258 : vector<8x1xf32> -> vector<8x1xf32>
    %260 = vector.broadcast %259 : vector<8x1xf32> to vector<8x16xf32>
    %261 = arith.mulf %256, %260 : vector<8x16xf32>
    %c0_169 = arith.constant 0 : index
    %c3_170 = arith.constant 3 : index
    %c0_171 = arith.constant 0 : index
    %c0_172 = arith.constant 0 : index
    %262 = vector.load %arg30[%c0_169, %c3_170, %c0_171, %c0_172] : memref<1x4x8x16xf32, #tpu.memory_space<vmem>>, vector<1x1x8x16xf32>
    %263 = vector.shape_cast %262 : vector<1x1x8x16xf32> to vector<8x16xf32>
    %264 = vector.shape_cast %261 : vector<8x16xf32> to vector<1x1x8x16xf32>
    tpu.vector_store %arg30[%c0_169, %c3_170, %c0_171, %c0_172], %264 {strides = array<i32>} : memref<1x4x8x16xf32, #tpu.memory_space<vmem>>, vector<1x1x8x16xf32>,
    %cst_173 = arith.constant dense<0.000000e+00> : vector<8x8xf32>
    %265 = tpu.matmul %261, %248, %cst_173 {dimension_numbers = #tpu.dot_dimension_numbers<[1], [0], [0], [1], [0, 0, 1, 1], [], []>} : vector<8x16xf32>, vector<16x8xf32>, vector<8x8xf32> -> vector<8x8xf32>
    %c0_174 = arith.constant 0 : index
    %c24_175 = arith.constant 24 : index
    %266 = vector.load %arg33[%c0_174, %c24_175] : memref<8x32xf32, #tpu.memory_space<vmem>>, vector<8x8xf32>
    tpu.vector_store %arg33[%c0_174, %c24_175], %265 {strides = array<i32>} : memref<8x32xf32, #tpu.memory_space<vmem>>, vector<8x8xf32>,
    %c0_176 = arith.constant 0 : index
    %c0_177 = arith.constant 0 : index
    %267 = vector.load %arg33[%c0_176, %c0_177] : memref<8x32xf32, #tpu.memory_space<vmem>>, vector<8x32xf32>
    %cst_178 = arith.constant dense<0.000000e+00> : vector<8x32xf32>
    %268 = tpu.matmul %267, %166, %cst_178 {dimension_numbers = #tpu.dot_dimension_numbers<[1], [0], [0], [1], [0, 0, 1, 1], [], []>} : vector<8x32xf32>, vector<32x32xf32>, vector<8x32xf32> -> vector<8x32xf32>
    %269 = vector.broadcast %167 : vector<1x32xf32> to vector<8x32xf32>
    %270 = arith.addf %268, %269 : vector<8x32xf32>
    %271 = arith.addf %139, %270 : vector<8x32xf32>
    %c0_179 = arith.constant 0 : index
    %c0_180 = arith.constant 0 : index
    %272 = vector.load %arg22[%c0_179, %c0_180] : memref<1x32xf32, #tpu.memory_space<vmem>>, vector<1x32xf32>
    %c0_181 = arith.constant 0 : index
    %c0_182 = arith.constant 0 : index
    %273 = vector.load %arg23[%c0_181, %c0_182] : memref<1x32xf32, #tpu.memory_space<vmem>>, vector<1x32xf32>
    %cst_183 = arith.constant dense<0.000000e+00> : vector<8xf32>
    %274 = vector.multi_reduction <add>, %271, %cst_183 [1] : vector<8x32xf32> to vector<8xf32>
    %275 = vector.shape_cast %274 : vector<8xf32> to vector<8x1xf32>
    %cst_184 = arith.constant 3.200000e+01 : f32
    %276 = vector.broadcast %cst_184 : f32 to vector<8x1xf32>
    %277 = arith.divf %275, %276 : vector<8x1xf32>
    %278 = vector.broadcast %277 : vector<8x1xf32> to vector<8x32xf32>
    %279 = arith.subf %271, %278 : vector<8x32xf32>
    %280 = arith.mulf %279, %279 : vector<8x32xf32>
    %cst_185 = arith.constant dense<0.000000e+00> : vector<8xf32>
    %281 = vector.multi_reduction <add>, %280, %cst_185 [1] : vector<8x32xf32> to vector<8xf32>
    %282 = vector.shape_cast %281 : vector<8xf32> to vector<8x1xf32>
    %cst_186 = arith.constant 3.200000e+01 : f32
    %283 = vector.broadcast %cst_186 : f32 to vector<8x1xf32>
    %284 = arith.divf %282, %283 : vector<8x1xf32>
    %cst_187 = arith.constant 9.99999996E-13 : f32
    %285 = vector.broadcast %cst_187 : f32 to vector<8x1xf32>
    %286 = arith.addf %284, %285 : vector<8x1xf32>
    %287 = math.rsqrt %286 : vector<8x1xf32>
    %288 = vector.broadcast %287 : vector<8x1xf32> to vector<8x32xf32>
    %289 = arith.mulf %279, %288 : vector<8x32xf32>
    %290 = vector.broadcast %272 : vector<1x32xf32> to vector<8x32xf32>
    %291 = arith.mulf %289, %290 : vector<8x32xf32>
    %292 = vector.broadcast %273 : vector<1x32xf32> to vector<8x32xf32>
    %293 = arith.addf %291, %292 : vector<8x32xf32>
    %c0_188 = arith.constant 0 : index
    %c0_189 = arith.constant 0 : index
    %294 = vector.load %arg24[%c0_188, %c0_189] : memref<32x64xf32, #tpu.memory_space<vmem>>, vector<32x64xf32>
    %cst_190 = arith.constant dense<0.000000e+00> : vector<8x64xf32>
    %295 = tpu.matmul %293, %294, %cst_190 {dimension_numbers = #tpu.dot_dimension_numbers<[1], [0], [0], [1], [0, 0, 1, 1], [], []>} : vector<8x32xf32>, vector<32x64xf32>, vector<8x64xf32> -> vector<8x64xf32>
    %c0_191 = arith.constant 0 : index
    %c0_192 = arith.constant 0 : index
    %296 = vector.load %arg25[%c0_191, %c0_192] : memref<1x64xf32, #tpu.memory_space<vmem>>, vector<1x64xf32>
    %297 = vector.broadcast %296 : vector<1x64xf32> to vector<8x64xf32>
    %298 = arith.addf %295, %297 : vector<8x64xf32>
    %cst_193 = arith.constant 0.000000e+00 : f32
    %299 = vector.broadcast %cst_193 : f32 to vector<8x64xf32>
    %300 = arith.maximumf %298, %299 : vector<8x64xf32>
    %c0_194 = arith.constant 0 : index
    %c0_195 = arith.constant 0 : index
    %301 = vector.load %arg26[%c0_194, %c0_195] : memref<64x32xf32, #tpu.memory_space<vmem>>, vector<64x32xf32>
    %cst_196 = arith.constant dense<0.000000e+00> : vector<8x32xf32>
    %302 = tpu.matmul %300, %301, %cst_196 {dimension_numbers = #tpu.dot_dimension_numbers<[1], [0], [0], [1], [0, 0, 1, 1], [], []>} : vector<8x64xf32>, vector<64x32xf32>, vector<8x32xf32> -> vector<8x32xf32>
    %303 = arith.addf %271, %302 : vector<8x32xf32>
    %c0_197 = arith.constant 0 : index
    %c0_198 = arith.constant 0 : index
    %304 = vector.load %arg27[%c0_197, %c0_198] : memref<1x32xf32, #tpu.memory_space<vmem>>, vector<1x32xf32>
    %305 = vector.broadcast %304 : vector<1x32xf32> to vector<8x32xf32>
    %306 = arith.addf %303, %305 : vector<8x32xf32>
    %c0_199 = arith.constant 0 : index
    %c0_200 = arith.constant 0 : index
    %c0_201 = arith.constant 0 : index
    %307 = vector.load %arg28[%c0_199, %c0_200, %c0_201] : memref<1x8x32xf32, #tpu.memory_space<vmem>>, vector<1x8x32xf32>
    %308 = vector.shape_cast %307 : vector<1x8x32xf32> to vector<8x32xf32>
    %309 = vector.shape_cast %306 : vector<8x32xf32> to vector<1x8x32xf32>
    tpu.vector_store %arg28[%c0_199, %c0_200, %c0_201], %309 {strides = array<i32>} : memref<1x8x32xf32, #tpu.memory_space<vmem>>, vector<1x8x32xf32>,
    return
  }
  func.func @transform_0(%arg0: i32, %arg1: i32) -> (i32, i32, i32) {
    %c0_i32 = arith.constant 0 : i32
    %c0_i32_0 = arith.constant 0 : i32
    %c0_i32_1 = arith.constant 0 : i32
    return %arg0, %c0_i32, %c0_i32_0 : i32, i32, i32
  }
  func.func @transform_1(%arg0: i32, %arg1: i32) -> (i32, i32, i32) {
    %c0_i32 = arith.constant 0 : i32
    %c0_i32_0 = arith.constant 0 : i32
    %c0_i32_1 = arith.constant 0 : i32
    return %arg0, %c0_i32, %c0_i32_0 : i32, i32, i32
  }
  func.func @transform_2(%arg0: i32, %arg1: i32) -> (i32, i32, i32) {
    %c0_i32 = arith.constant 0 : i32
    %c0_i32_0 = arith.constant 0 : i32
    return %arg0, %arg1, %c0_i32 : i32, i32, i32
  }
  func.func @transform_3(%arg0: i32, %arg1: i32) -> (i32, i32, i32) {
    %c0_i32 = arith.constant 0 : i32
    %c0_i32_0 = arith.constant 0 : i32
    return %arg0, %arg1, %c0_i32 : i32, i32, i32
  }
  func.func @transform_4(%arg0: i32, %arg1: i32) -> (i32, i32) {
    %c0_i32 = arith.constant 0 : i32
    %c0_i32_0 = arith.constant 0 : i32
    %c0_i32_1 = arith.constant 0 : i32
    return %c0_i32, %c0_i32_0 : i32, i32
  }
  func.func @transform_5(%arg0: i32, %arg1: i32) -> (i32, i32) {
    %c0_i32 = arith.constant 0 : i32
    %c0_i32_0 = arith.constant 0 : i32
    %c0_i32_1 = arith.constant 0 : i32
    return %c0_i32, %c0_i32_0 : i32, i32
  }
  func.func @transform_6(%arg0: i32, %arg1: i32) -> (i32, i32) {
    %c0_i32 = arith.constant 0 : i32
    %c0_i32_0 = arith.constant 0 : i32
    %c0_i32_1 = arith.constant 0 : i32
    return %c0_i32, %c0_i32_0 : i32, i32
  }
  func.func @transform_7(%arg0: i32, %arg1: i32) -> (i32, i32) {
    %c0_i32 = arith.constant 0 : i32
    %c0_i32_0 = arith.constant 0 : i32
    %c0_i32_1 = arith.constant 0 : i32
    return %c0_i32, %c0_i32_0 : i32, i32
  }
  func.func @transform_8(%arg0: i32, %arg1: i32) -> (i32, i32) {
    %c0_i32 = arith.constant 0 : i32
    %c0_i32_0 = arith.constant 0 : i32
    %c0_i32_1 = arith.constant 0 : i32
    return %c0_i32, %c0_i32_0 : i32, i32
  }
  func.func @transform_9(%arg0: i32, %arg1: i32) -> (i32, i32) {
    %c0_i32 = arith.constant 0 : i32
    %c0_i32_0 = arith.constant 0 : i32
    %c0_i32_1 = arith.constant 0 : i32
    return %c0_i32, %c0_i32_0 : i32, i32
  }
  func.func @transform_10(%arg0: i32, %arg1: i32) -> (i32, i32) {
    %c0_i32 = arith.constant 0 : i32
    %c0_i32_0 = arith.constant 0 : i32
    %c0_i32_1 = arith.constant 0 : i32
    return %c0_i32, %c0_i32_0 : i32, i32
  }
  func.func @transform_11(%arg0: i32, %arg1: i32) -> (i32, i32) {
    %c0_i32 = arith.constant 0 : i32
    %c0_i32_0 = arith.constant 0 : i32
    %c0_i32_1 = arith.constant 0 : i32
    return %c0_i32, %c0_i32_0 : i32, i32
  }
  func.func @transform_12(%arg0: i32, %arg1: i32) -> (i32, i32) {
    %c0_i32 = arith.constant 0 : i32
    %c0_i32_0 = arith.constant 0 : i32
    %c0_i32_1 = arith.constant 0 : i32
    return %c0_i32, %c0_i32_0 : i32, i32
  }
  func.func @transform_13(%arg0: i32, %arg1: i32) -> (i32, i32) {
    %c0_i32 = arith.constant 0 : i32
    %c0_i32_0 = arith.constant 0 : i32
    %c0_i32_1 = arith.constant 0 : i32
    return %c0_i32, %c0_i32_0 : i32, i32
  }
  func.func @transform_14(%arg0: i32, %arg1: i32) -> (i32, i32) {
    %c0_i32 = arith.constant 0 : i32
    %c0_i32_0 = arith.constant 0 : i32
    %c0_i32_1 = arith.constant 0 : i32
    return %c0_i32, %c0_i32_0 : i32, i32
  }
  func.func @transform_15(%arg0: i32, %arg1: i32) -> (i32, i32) {
    %c0_i32 = arith.constant 0 : i32
    %c0_i32_0 = arith.constant 0 : i32
    %c0_i32_1 = arith.constant 0 : i32
    return %c0_i32, %c0_i32_0 : i32, i32
  }
  func.func @transform_16(%arg0: i32, %arg1: i32) -> (i32, i32) {
    %c0_i32 = arith.constant 0 : i32
    %c0_i32_0 = arith.constant 0 : i32
    %c0_i32_1 = arith.constant 0 : i32
    return %c0_i32, %c0_i32_0 : i32, i32
  }
  func.func @transform_17(%arg0: i32, %arg1: i32) -> (i32, i32) {
    %c0_i32 = arith.constant 0 : i32
    %c0_i32_0 = arith.constant 0 : i32
    %c0_i32_1 = arith.constant 0 : i32
    return %c0_i32, %c0_i32_0 : i32, i32
  }
  func.func @transform_18(%arg0: i32, %arg1: i32) -> (i32, i32) {
    %c0_i32 = arith.constant 0 : i32
    %c0_i32_0 = arith.constant 0 : i32
    %c0_i32_1 = arith.constant 0 : i32
    return %c0_i32, %c0_i32_0 : i32, i32
  }
  func.func @transform_19(%arg0: i32, %arg1: i32) -> (i32, i32) {
    %c0_i32 = arith.constant 0 : i32
    %c0_i32_0 = arith.constant 0 : i32
    %c0_i32_1 = arith.constant 0 : i32
    return %c0_i32, %c0_i32_0 : i32, i32
  }
  func.func @transform_20(%arg0: i32, %arg1: i32) -> (i32, i32) {
    %c0_i32 = arith.constant 0 : i32
    %c0_i32_0 = arith.constant 0 : i32
    %c0_i32_1 = arith.constant 0 : i32
    return %c0_i32, %c0_i32_0 : i32, i32
  }
  func.func @transform_21(%arg0: i32, %arg1: i32) -> (i32, i32) {
    %c0_i32 = arith.constant 0 : i32
    %c0_i32_0 = arith.constant 0 : i32
    %c0_i32_1 = arith.constant 0 : i32
    return %c0_i32, %c0_i32_0 : i32, i32
  }
  func.func @transform_22(%arg0: i32, %arg1: i32) -> (i32, i32) {
    %c0_i32 = arith.constant 0 : i32
    %c0_i32_0 = arith.constant 0 : i32
    %c0_i32_1 = arith.constant 0 : i32
    return %c0_i32, %c0_i32_0 : i32, i32
  }
  func.func @transform_23(%arg0: i32, %arg1: i32) -> (i32, i32) {
    %c0_i32 = arith.constant 0 : i32
    %c0_i32_0 = arith.constant 0 : i32
    %c0_i32_1 = arith.constant 0 : i32
    return %c0_i32, %c0_i32_0 : i32, i32
  }
  func.func @transform_24(%arg0: i32, %arg1: i32) -> (i32, i32) {
    %c0_i32 = arith.constant 0 : i32
    %c0_i32_0 = arith.constant 0 : i32
    %c0_i32_1 = arith.constant 0 : i32
    return %c0_i32, %c0_i32_0 : i32, i32
  }
  func.func @transform_25(%arg0: i32, %arg1: i32) -> (i32, i32) {
    %c0_i32 = arith.constant 0 : i32
    %c0_i32_0 = arith.constant 0 : i32
    %c0_i32_1 = arith.constant 0 : i32
    return %c0_i32, %c0_i32_0 : i32, i32
  }
  func.func @transform_26(%arg0: i32, %arg1: i32) -> (i32, i32, i32) {
    %c0_i32 = arith.constant 0 : i32
    %c0_i32_0 = arith.constant 0 : i32
    return %arg0, %arg1, %c0_i32 : i32, i32, i32
  }
  func.func @transform_27(%arg0: i32, %arg1: i32) -> (i32, i32, i32, i32) {
    %c0_i32 = arith.constant 0 : i32
    %c0_i32_0 = arith.constant 0 : i32
    %c0_i32_1 = arith.constant 0 : i32
    return %arg0, %c0_i32, %arg1, %c0_i32_0 : i32, i32, i32, i32
  }
  func.func @transform_28(%arg0: i32, %arg1: i32) -> (i32, i32, i32, i32) {
    %c0_i32 = arith.constant 0 : i32
    %c0_i32_0 = arith.constant 0 : i32
    %c0_i32_1 = arith.constant 0 : i32
    return %arg0, %c0_i32, %arg1, %c0_i32_0 : i32, i32, i32, i32
  }
}

</mosaic_0001>

<bundles_post_ra>
// kernel: tpu_custom_call.1
= control target key start
LH: loop header
LB: loop body
LE: loop exit
PB: predicated region body
PF: predicated region fallthrough
CT: control target
= control target key end

     0   :  { %s6669_s0 = inlined_call_operand.vmem [shape: f32[2,16,32], index: 0, kind: input, shape index: {}]   ;;  %s6670_s1 = inlined_call_operand.vmem [shape: f32[2,16,32], index: 1, kind: input, shape index: {}]   ;;  %s6671_s2 = inlined_call_operand.vmem [shape: s32[2,16,16], index: 2, kind: input, shape index: {}]   ;;  %s6672_s3 = inlined_call_operand.hbm [shape: s32[2,16,16], index: 3, kind: input, shape index: {}]   ;;  %s6673_s4 = inlined_call_operand.hbm [shape: f32[1,32], index: 4, kind: input, shape index: {}]   ;;  %s6674_s5 = inlined_call_operand.hbm [shape: f32[1,32], index: 5, kind: input, shape index: {}]   ;;  %s6675_s6 = inlined_call_operand.hbm [shape: f32[32,32], index: 6, kind: input, shape index: {}]   ;;  %s6676_s7 = inlined_call_operand.hbm [shape: f32[1,32], index: 7, kind: input, shape index: {}]   ;;  %s6677_s8 = inlined_call_operand.hbm [shape: f32[32,64], index: 8, kind: input, shape index: {}]   ;;  %s6678_s9 = inlined_call_operand.hbm [shape: f32[1,64], index: 9, kind: input, shape index: {}]   ;;  %s6679_s10 = inlined_call_operand.vmem [shape: f32[32,32], index: 10, kind: input, shape index: {}]   ;;  %s6680_s11 = inlined_call_operand.hbm [shape: f32[1,32], index: 11, kind: input, shape index: {}]   ;;  %s6681_s12 = inlined_call_operand.hbm [shape: f32[1,32], index: 12, kind: input, shape index: {}]   ;;  %s6682_s13 = inlined_call_operand.hbm [shape: f32[1,32], index: 13, kind: input, shape index: {}]   ;;  %s6683_s14 = inlined_call_operand.hbm [shape: f32[32,32], index: 14, kind: input, shape index: {}]   ;;  %s6684_s15 = inlined_call_operand.hbm [shape: f32[1,32], index: 15, kind: input, shape index: {}]   ;;  %s6685_s16 = inlined_call_operand.hbm [shape: f32[32,64], index: 16, kind: input, shape index: {}]   ;;  %s6686_s17 = inlined_call_operand.hbm [shape: f32[1,64], index: 17, kind: input, shape index: {}]   ;;  %s6687_s18 = inlined_call_operand.hbm [shape: f32[32,32], index: 18, kind: input, shape index: {}]   ;;  %s6688_s19 = inlined_call_operand.vmem [shape: f32[1,32], index: 19, kind: input, shape index: {}]   ;;  %s6689_s20 = inlined_call_operand.vmem [shape: f32[1,32], index: 20, kind: input, shape index: {}]   ;;  %s6690_s21 = inlined_call_operand.vmem [shape: f32[1,32], index: 21, kind: input, shape index: {}]   ;;  %s6691_s22 = inlined_call_operand.hbm [shape: f32[32,64], index: 22, kind: input, shape index: {}]   ;;  %s6692_s23 = inlined_call_operand.vmem [shape: f32[1,64], index: 23, kind: input, shape index: {}]   ;;  %s6693_s24 = inlined_call_operand.vmem [shape: f32[64,32], index: 24, kind: input, shape index: {}]   ;;  %s6694_s25 = inlined_call_operand.vmem [shape: f32[1,32], index: 25, kind: input, shape index: {}]   ;;  %s6695_s26 = inlined_call_operand.hbm [shape: f32[2,16,32], index: 26, kind: output, shape index: {0}]   ;;  %s6696_s27 = inlined_call_operand.hbm [shape: f32[2,4,16,16], index: 27, kind: output, shape index: {1}]   ;;  %s6697_s28 = inlined_call_operand.hbm [shape: f32[2,4,16,16], index: 28, kind: output, shape index: {2}]  }
   0x1   :  { %6742 = sst [smem:[#allocation55_spill]] %s6669_s0 }
   0x2   :  { %6743 = sst [smem:[#allocation56_spill]] %s6670_s1 }
   0x3   :  { %6744 = sst [smem:[#allocation57_spill]] %s6671_s2 }
   0x4   :  { %6745 = sst [smem:[#allocation58_spill]] %s6672_s3 }
   0x5   :  { %6746 = sst [smem:[#allocation59_spill]] %s6673_s4 }
   0x6   :  { %6747 = sst [smem:[#allocation60_spill]] %s6674_s5 }
   0x7   :  { %6748 = sst [smem:[#allocation61_spill]] %s6675_s6 }
   0x8   :  { %6749 = sst [smem:[#allocation62_spill]] %s6676_s7 }
   0x9   :  { %6750 = sst [smem:[#allocation63_spill]] %s6677_s8 }
   0xa   :  { %6751 = sst [smem:[#allocation64_spill]] %s6678_s9 }
   0xb   :  { %6752 = sst [smem:[#allocation65_spill]] %s6679_s10 }
   0xc   :  { %6753 = sst [smem:[#allocation66_spill]] %s6680_s11 }
   0xd   :  { %6754 = sst [smem:[#allocation67_spill]] %s6681_s12 }
   0xe   :  { %6755 = sst [smem:[#allocation68_spill]] %s6682_s13 }
   0xf   :  { %6756 = sst [smem:[#allocation69_spill]] %s6683_s14 }
  0x10   :  { %6757 = sst [smem:[#allocation70_spill]] %s6684_s15 }
  0x11   :  { %6758 = sst [smem:[#allocation71_spill]] %s6685_s16 }
  0x12   :  { %6759 = sst [smem:[#allocation72_spill]] %s6686_s17 }
  0x13   :  { %6760 = sst [smem:[#allocation73_spill]] %s6687_s18 }
  0x14   :  { %6761 = sst [smem:[#allocation74_spill]] %s6688_s19 }
  0x15   :  { %6762 = sst [smem:[#allocation75_spill]] %s6689_s20 }
  0x16   :  { %6763 = sst [smem:[#allocation76_spill]] %s6690_s21 }
  0x17   :  { %6764 = sst [smem:[#allocation77_spill]] %s6691_s22 }
  0x18   :  { %6765 = sst [smem:[#allocation78_spill]] %s6692_s23 }
  0x19   :  { %6766 = sst [smem:[#allocation79_spill]] %s6693_s24 }
  0x1a   :  { %6767 = sst [smem:[#allocation80_spill]] %s6694_s25 }
  0x1b   :  { %6768 = sst [smem:[#allocation81_spill]] %s6695_s26 }
  0x1c   :  { %6769 = sst [smem:[#allocation82_spill]] %s6696_s27 }
  0x1d   :  { %6770 = sst [smem:[#allocation83_spill]] %s6697_s28 }
  0x1e   :  { %34 = vsyncpa [#allocation6], 0 }
  0x1f   :  { %36 = vsyncpa [#allocation6 + $0x1], 0 }
  0x20   :  { %37 = vsyncpa [#allocation9], 0 }
  0x21   :  { %38 = vsyncpa [#allocation12], 0 }
  0x22   :  { %39 = vsyncpa [#allocation15], 0 }
  0x23   :  { %40 = vsyncpa [#allocation18], 0 }
  0x24   :  { %41 = vsyncpa [#allocation21], 0 }
  0x25   :  { %42 = vsyncpa [#allocation24], 0 }
  0x26   :  { %43 = vsyncpa [#allocation27], 0 }
  0x27   :  { %44 = vsyncpa [#allocation30], 0 }
  0x28   :  { %45 = vsyncpa [#allocation7], 0 }
  0x29   :  { %47 = vsyncpa [#allocation7 + $0x1], 0 }
  0x2a   :  { %48 = vsyncpa [#allocation33], 0 }
  0x2b   :  { %50 = vsyncpa [#allocation33 + $0x1], 0  ;;  %s5642_s8 = smov 0   ;;  %s5644_s5 = smov 0  }
  0x2c   :  { %s5646_s9 = smov 0   ;;  %s5648_s30 = smov 0  }
  0x2d   :  { %s5650_s3 = smov 0   ;;  %s5652_s6 = smov 0  }
  0x2e   :  { %s5654_s10 = smov 0   ;;  %s5656_s0 = smov 0  }
  0x2f LB: > { %6771 = sst [smem:[#allocation46_spill]] %s5428_s8  ;;  %s5683_s11 = sadd.s32 4294967295, %s5456_s0   ;;  %s5456_s0 = sphi %s5656_s0, %s56_s0   ;;  %s5452_s10 = sphi %s5654_s10, %s6856_s10   ;;  %s5448_s6 = sphi %s5652_s6, %s6855_s6   ;;  %s5444_s3 = sphi %s5650_s3, %s6860_s3   ;;  %s5440_s30 = sphi %s5648_s30, %s6853_s30   ;;  %s5436_s9 = sphi %s5646_s9, %s6859_s9   ;;  %s5432_s5 = sphi %s5644_s5, %s6858_s5   ;;  %s5428_s8 = sphi %s5642_s8, %s6857_s8  }
  0x30   : > { %6772 = sst [smem:[#allocation47_spill]] %s5440_s30  ;;  %p3974_p0 = scmp.ge.s32.totalorder %s5456_s0, 1 }
  0x31   : > { %6773 = sst [smem:[#allocation48_spill]] %s5444_s3  ;;  %p6712_p1 = scmp.eq.s32.totalorder %s5683_s11, 0 }
  0x32   : > { %6774 = sst [smem:[#allocation49_spill]] %s5448_s6  ;;  %p727_p2 = scmp.lt.s32.totalorder %s5456_s0, 5 }
  0x33   : > { %6775 = sst [smem:[#allocation50_spill]] %s5452_s10  ;;  %s5458_s2 = smov [#allocation8]  }
  0x34   : > { %6776 = sst [smem:[#allocation51_spill]] %s5683_s11  ;;  %p5688_p3 = pnand %p3974_p0, %p727_p2 }
  0x35   : > { %s740_s7 = sshll.u32 %s5458_s2, 4  ;;  %s5459_s12 = smov [#allocation11]   ;;  %s741_s7 = int_to_ptr.vmem [resolvable:$true] %s740_s7 }
  0x36   : > { %s6777_s29 = scalar_select %p5688_p3, 1, 0 }
  0x37   : > { %p4583_p4 = pneg %p5688_p3  ;;  %s761_s1 = sshll.u32 %s5459_s12, 4  ;;  %s5700_s1 = int_to_ptr.vmem [resolvable:$true] %s761_s1 }
  0x38   : > { %6778 = sst [smem:[#allocation52_spill]] %s6777_s29  ;;  %s5460_s26 = smov [#allocation14]  }
  0x39   : > { %p5696_p5 = pnand %p4583_p4, %p6712_p1  ;;  %s5702_s25 = sshll.u32 %s5460_s26, 4  ;;  %s786_s25 = int_to_ptr.vmem [resolvable:$true] %s5702_s25 }
  0x3a   : > { %s6780_s23 = sld [smem:[#allocation59_spill]] }
  0x3b   : > { %p5712_p7 = pneg %p5696_p5 }
  0x40   : > { %s4816_s2 = scalar_lea.hbm %s6780_s23, 16 }
  0x41   : > { %p4817_p6 = scmp.ne.s32.totalorder %s6780_s23, %s4816_s2  ;;  %p4823_p10 = scmp.lt.u32.totalorder %s4816_s2, %s6780_s23 }
  0x43   : > { %p4819_p8 = pnand %p5712_p7, %p4817_p6 }
  0x45   : > { %p4820_p9 = pneg %p4819_p8 }
  0x47   : > { %p4825_p11 = pnand %p4823_p10, %p4820_p9 }
  0x49   : > { %4828 = shalt.err (!%p4825_p11)
}
  0x4a   : > { %s4829_s27 = scalar_lea.vmem %s741_s7, 16  ;;  %s4836_s20 = scalar_lea.vmem %s741_s7, 32 }
  0x4b   : > { %p4830_p12 = scmp.ne.s32.totalorder %s741_s7, %s4829_s27  ;;  %p4837_p2 = scmp.lt.s32.totalorder %s741_s7, %s741_s7 }
  0x4c   : > { %p4838_p4 = scmp.lt.s32.totalorder %s4836_s20, %s4829_s27 }
  0x4d   : > { %p4832_p13 = pnand %p4830_p12, %p5712_p7 }
  0x4e   : > { %p4839_p1 = por %p4838_p4, %p4837_p2 }
  0x4f   : > { %p4833_p0 = pneg %p4832_p13 }
  0x51   : > { %p4840_p3 = pnand %p4839_p1, %p4833_p0 }
  0x53   : > { %4843 = shalt.err (!%p4840_p3)
}
  0x54   : > { %4586 = dma.hbm_to_vmem [thread:$0]  (!%p5696_p5), %s6780_s23, 16, %s741_s7, [#allocation9]  }
  0x55   : > { %s6782_s26 = sld [smem:[#allocation61_spill]] }
  0x5b   : > { %s4844_s19 = scalar_lea.hbm %s6782_s26, 512 }
  0x5c   : > { %p4845_p6 = scmp.ne.s32.totalorder %s6782_s26, %s4844_s19  ;;  %p4851_p1 = scmp.lt.u32.totalorder %s4844_s19, %s6782_s26 }
  0x5e   : > { %p4847_p8 = pnand %p4845_p6, %p5712_p7 }
  0x60   : > { %p4848_p9 = pneg %p4847_p8 }
  0x62   : > { %p4853_p3 = pnand %p4851_p1, %p4848_p9 }
  0x64   : > { %4856 = shalt.err (!%p4853_p3)
}
  0x65   : > { %s4857_s7 = scalar_lea.vmem %s5700_s1, 512  ;;  %p4865_p13 = scmp.lt.s32.totalorder %s5700_s1, %s5700_s1 }
  0x66   : > { %p4858_p10 = scmp.ne.s32.totalorder %s5700_s1, %s4857_s7  ;;  %p4866_p0 = scmp.lt.s32.totalorder %s4857_s7, %s4857_s7 }
  0x68   : > { %p4860_p11 = pnand %p4858_p10, %p5712_p7  ;;  %p4867_p2 = por %p4866_p0, %p4865_p13 }
  0x6a   : > { %p4861_p12 = pneg %p4860_p11 }
  0x6c   : > { %p4868_p4 = pnand %p4867_p2, %p4861_p12 }
  0x6e   : > { %4871 = shalt.err (!%p4868_p4)
}
  0x6f   : > { %s6724_s30 = smov 128   ;;  %s6726_s19 = smov 8  }
  0x70   : > { %4592 = dma.hbm_to_vmem [thread:$0]  (!%p5696_p5), %s6782_s26, 512, %s5700_s1, [#allocation12], %s6724_s30, %s6724_s30, %s6726_s19  }
  0x71   : > { %s6783_s2 = sld [smem:[#allocation63_spill]] }
  0x77   : > { %s4872_s27 = scalar_lea.hbm %s6783_s2, 512 }
  0x78   : > { %p4873_p6 = scmp.ne.s32.totalorder %s6783_s2, %s4872_s27  ;;  %p4879_p1 = scmp.lt.u32.totalorder %s4872_s27, %s6783_s2 }
  0x7a   : > { %p4875_p8 = pnand %p4873_p6, %p5712_p7 }
  0x7c   : > { %p4876_p9 = pneg %p4875_p8 }
  0x7e   : > { %p4881_p3 = pnand %p4879_p1, %p4876_p9 }
  0x80   : > { %4884 = shalt.err (!%p4881_p3)
}
  0x81   : > { %s4885_s3 = scalar_lea.vmem %s786_s25, 512  ;;  %p4893_p13 = scmp.lt.s32.totalorder %s786_s25, %s786_s25 }
  0x82   : > { %p4886_p10 = scmp.ne.s32.totalorder %s786_s25, %s4885_s3  ;;  %p4894_p0 = scmp.lt.s32.totalorder %s4885_s3, %s4885_s3 }
  0x84   : > { %p4888_p11 = pnand %p4886_p10, %p5712_p7  ;;  %p4895_p2 = por %p4894_p0, %p4893_p13 }
  0x86   : > { %p4889_p12 = pneg %p4888_p11 }
  0x88   : > { %p4896_p4 = pnand %p4895_p2, %p4889_p12 }
  0x8a   : > { %4899 = shalt.err (!%p4896_p4)
}
  0x8b   : > { %4598 = dma.hbm_to_vmem [thread:$0]  (!%p5696_p5), %s6783_s2, 512, %s786_s25, [#allocation15], %s6724_s30, %s6724_s30, %s6726_s19  }
  0x8c   : > { %s5463_s1 = smov [#allocation17]   ;;  %s5464_s28 = smov [#allocation20]  }
  0x8d   : > { %s813_s21 = sshll.u32 %s5463_s1, 4  ;;  %s835_s24 = sshll.u32 %s5464_s28, 4  ;;  %s814_s21 = int_to_ptr.vmem [resolvable:$true] %s813_s21  ;;  %s836_s24 = int_to_ptr.vmem [resolvable:$true] %s835_s24 }
  0x8e   : > { %s6784_s7 = sld [smem:[#allocation66_spill]] }
  0x94   : > { %s4900_s3 = scalar_lea.hbm %s6784_s7, 16 }
  0x95   : > { %p4901_p6 = scmp.ne.s32.totalorder %s6784_s7, %s4900_s3  ;;  %p4907_p1 = scmp.lt.u32.totalorder %s4900_s3, %s6784_s7 }
  0x97   : > { %p4903_p8 = pnand %p4901_p6, %p5712_p7 }
  0x99   : > { %p4904_p9 = pneg %p4903_p8 }
  0x9b   : > { %p4909_p3 = pnand %p4907_p1, %p4904_p9 }
  0x9d   : > { %4912 = shalt.err (!%p4909_p3)
}
  0x9e   : > { %s4913_s25 = scalar_lea.vmem %s814_s21, 16  ;;  %s4920_s29 = scalar_lea.vmem %s814_s21, 32 }
  0x9f   : > { %p4914_p10 = scmp.ne.s32.totalorder %s814_s21, %s4913_s25  ;;  %p4921_p13 = scmp.lt.s32.totalorder %s814_s21, %s814_s21 }
  0xa0   : > { %p4922_p0 = scmp.lt.s32.totalorder %s4920_s29, %s4913_s25 }
  0xa1   : > { %p4916_p11 = pnand %p4914_p10, %p5712_p7 }
  0xa2   : > { %p4923_p2 = por %p4922_p0, %p4921_p13 }
  0xa3   : > { %p4917_p12 = pneg %p4916_p11 }
  0xa5   : > { %p4924_p4 = pnand %p4923_p2, %p4917_p12 }
  0xa7   : > { %4927 = shalt.err (!%p4924_p4)
}
  0xa8   : > { %4604 = dma.hbm_to_vmem [thread:$0]  (!%p5696_p5), %s6784_s7, 16, %s814_s21, [#allocation18]  }
  0xa9   : > { %s6785_s13 = sld [smem:[#allocation68_spill]] }
  0xaf   : > { %s4928_s28 = scalar_lea.hbm %s6785_s13, 16 }
  0xb0   : > { %p4929_p6 = scmp.ne.s32.totalorder %s6785_s13, %s4928_s28  ;;  %p4935_p1 = scmp.lt.u32.totalorder %s4928_s28, %s6785_s13 }
  0xb2   : > { %p4931_p8 = pnand %p4929_p6, %p5712_p7 }
  0xb4   : > { %p4932_p9 = pneg %p4931_p8 }
  0xb6   : > { %p4937_p3 = pnand %p4935_p1, %p4932_p9 }
  0xb8   : > { %4940 = shalt.err (!%p4937_p3)
}
  0xb9   : > { %s4941_s25 = scalar_lea.vmem %s836_s24, 16  ;;  %s4948_s21 = scalar_lea.vmem %s836_s24, 32 }
  0xba   : > { %p4942_p10 = scmp.ne.s32.totalorder %s836_s24, %s4941_s25  ;;  %p4949_p13 = scmp.lt.s32.totalorder %s836_s24, %s836_s24 }
  0xbb   : > { %p4950_p0 = scmp.lt.s32.totalorder %s4948_s21, %s4941_s25 }
  0xbc   : > { %p4944_p11 = pnand %p4942_p10, %p5712_p7 }
  0xbd   : > { %p4951_p2 = por %p4950_p0, %p4949_p13 }
  0xbe   : > { %p4945_p12 = pneg %p4944_p11 }
  0xc0   : > { %p4952_p4 = pnand %p4951_p2, %p4945_p12 }
  0xc2   : > { %4955 = shalt.err (!%p4952_p4)
}
  0xc3   : > { %4610 = dma.hbm_to_vmem [thread:$0]  (!%p5696_p5), %s6785_s13, 16, %s836_s24, [#allocation21]  }
  0xc4   : > { %s5465_s26 = smov [#allocation23]   ;;  %s5466_s1 = smov [#allocation26]  }
  0xc5   : > { %s859_s8 = sshll.u32 %s5465_s26, 4  ;;  %s883_s28 = sshll.u32 %s5466_s1, 4  ;;  %s860_s8 = int_to_ptr.vmem [resolvable:$true] %s859_s8  ;;  %s884_s28 = int_to_ptr.vmem [resolvable:$true] %s883_s28 }
  0xc6   : > { %s6786_s15 = sld [smem:[#allocation70_spill]] }
  0xcc   : > { %s4956_s3 = scalar_lea.hbm %s6786_s15, 16 }
  0xcd   : > { %p4957_p6 = scmp.ne.s32.totalorder %s6786_s15, %s4956_s3  ;;  %p4963_p1 = scmp.lt.u32.totalorder %s4956_s3, %s6786_s15 }
  0xcf   : > { %p4959_p8 = pnand %p4957_p6, %p5712_p7 }
  0xd1   : > { %p4960_p9 = pneg %p4959_p8 }
  0xd3   : > { %p4965_p3 = pnand %p4963_p1, %p4960_p9 }
  0xd5   : > { %4968 = shalt.err (!%p4965_p3)
}
  0xd6   : > { %s4969_s24 = scalar_lea.vmem %s860_s8, 16  ;;  %s4976_s11 = scalar_lea.vmem %s860_s8, 32 }
  0xd7   : > { %p4970_p10 = scmp.ne.s32.totalorder %s860_s8, %s4969_s24  ;;  %p4977_p13 = scmp.lt.s32.totalorder %s860_s8, %s860_s8 }
  0xd8   : > { %p4978_p0 = scmp.lt.s32.totalorder %s4976_s11, %s4969_s24 }
  0xd9   : > { %p4972_p11 = pnand %p4970_p10, %p5712_p7 }
  0xda   : > { %p4979_p2 = por %p4978_p0, %p4977_p13 }
  0xdb   : > { %p4973_p12 = pneg %p4972_p11 }
  0xdd   : > { %p4980_p4 = pnand %p4979_p2, %p4973_p12 }
  0xdf   : > { %4983 = shalt.err (!%p4980_p4)
}
  0xe0   : > { %4616 = dma.hbm_to_vmem [thread:$0]  (!%p5696_p5), %s6786_s15, 16, %s860_s8, [#allocation24]  }
  0xe1   : > { %s6787_s17 = sld [smem:[#allocation72_spill]] }
  0xe7   : > { %s4984_s3 = scalar_lea.hbm %s6787_s17, 16 }
  0xe8   : > { %p4985_p6 = scmp.ne.s32.totalorder %s6787_s17, %s4984_s3  ;;  %p4991_p1 = scmp.lt.u32.totalorder %s4984_s3, %s6787_s17 }
  0xea   : > { %p4987_p8 = pnand %p4985_p6, %p5712_p7 }
  0xec   : > { %p4988_p9 = pneg %p4987_p8 }
  0xee   : > { %p4993_p3 = pnand %p4991_p1, %p4988_p9 }
  0xf0   : > { %4996 = shalt.err (!%p4993_p3)
}
  0xf1   : > { %s4997_s24 = scalar_lea.vmem %s884_s28, 16  ;;  %s5004_s8 = scalar_lea.vmem %s884_s28, 32 }
  0xf2   : > { %p4998_p10 = scmp.ne.s32.totalorder %s884_s28, %s4997_s24  ;;  %p5005_p13 = scmp.lt.s32.totalorder %s884_s28, %s884_s28 }
  0xf3   : > { %p5006_p0 = scmp.lt.s32.totalorder %s5004_s8, %s4997_s24 }
  0xf4   : > { %p5000_p11 = pnand %p4998_p10, %p5712_p7 }
  0xf5   : > { %p5007_p2 = por %p5006_p0, %p5005_p13 }
  0xf6   : > { %p5001_p12 = pneg %p5000_p11 }
  0xf8   : > { %p5008_p4 = pnand %p5007_p2, %p5001_p12 }
  0xfa   : > { %5011 = shalt.err (!%p5008_p4)
}
  0xfb   : > { %4622 = dma.hbm_to_vmem [thread:$0]  (!%p5696_p5), %s6787_s17, 16, %s884_s28, [#allocation27]  }
  0xfc   : > { %s5467_s1 = smov [#allocation10]   ;;  %s5468_s20 = smov [#allocation13]  }
  0xfd   : > { %s751_s27 = sshll.u32 %s5467_s1, 4  ;;  %s775_s3 = sshll.u32 %s5468_s20, 4  ;;  %s752_s27 = int_to_ptr.vmem [resolvable:$true] %s751_s27  ;;  %s776_s3 = int_to_ptr.vmem [resolvable:$true] %s775_s3 }
  0xfe   : > { %s6788_s21 = sld [smem:[#allocation60_spill]] }
 0x104   : > { %s5012_s29 = scalar_lea.hbm %s6788_s21, 16 }
 0x105   : > { %p5013_p6 = scmp.ne.s32.totalorder %s6788_s21, %s5012_s29  ;;  %p5019_p1 = scmp.lt.u32.totalorder %s5012_s29, %s6788_s21 }
 0x107   : > { %p5015_p8 = pnand %p5013_p6, %p5712_p7 }
 0x109   : > { %p5016_p9 = pneg %p5015_p8 }
 0x10b   : > { %p5021_p3 = pnand %p5019_p1, %p5016_p9 }
 0x10d   : > { %5024 = shalt.err (!%p5021_p3)
}
 0x10e   : > { %s5025_s28 = scalar_lea.vmem %s752_s27, 16  ;;  %s5032_s26 = scalar_lea.vmem %s752_s27, 32 }
 0x10f   : > { %p5026_p10 = scmp.ne.s32.totalorder %s752_s27, %s5025_s28  ;;  %p5033_p13 = scmp.lt.s32.totalorder %s752_s27, %s752_s27 }
 0x110   : > { %p5034_p0 = scmp.lt.s32.totalorder %s5032_s26, %s5025_s28 }
 0x111   : > { %p5028_p11 = pnand %p5026_p10, %p5712_p7 }
 0x112   : > { %p5035_p2 = por %p5034_p0, %p5033_p13 }
 0x113   : > { %p5029_p12 = pneg %p5028_p11 }
 0x115   : > { %p5036_p4 = pnand %p5035_p2, %p5029_p12 }
 0x117   : > { %5039 = shalt.err (!%p5036_p4)
}
 0x118   : > { %4589 = dma.hbm_to_vmem [thread:$0]  (!%p5696_p5), %s6788_s21, 16, %s752_s27, [#allocation9]  }
 0x119   : > { %s6789_s25 = sld [smem:[#allocation62_spill]] }
 0x11f   : > { %s5040_s29 = scalar_lea.hbm %s6789_s25, 16 }
 0x120   : > { %p5041_p6 = scmp.ne.s32.totalorder %s6789_s25, %s5040_s29  ;;  %p5047_p1 = scmp.lt.u32.totalorder %s5040_s29, %s6789_s25 }
 0x122   : > { %p5043_p8 = pnand %p5041_p6, %p5712_p7 }
 0x124   : > { %p5044_p9 = pneg %p5043_p8 }
 0x126   : > { %p5049_p3 = pnand %p5047_p1, %p5044_p9 }
 0x128   : > { %5052 = shalt.err (!%p5049_p3)
}
 0x129   : > { %s5053_s26 = scalar_lea.vmem %s776_s3, 16  ;;  %s5060_s27 = scalar_lea.vmem %s776_s3, 32 }
 0x12a   : > { %p5054_p10 = scmp.ne.s32.totalorder %s776_s3, %s5053_s26  ;;  %p5061_p13 = scmp.lt.s32.totalorder %s776_s3, %s776_s3 }
 0x12b   : > { %p5062_p0 = scmp.lt.s32.totalorder %s5060_s27, %s5053_s26 }
 0x12c   : > { %p5056_p11 = pnand %p5054_p10, %p5712_p7 }
 0x12d   : > { %p5063_p2 = por %p5062_p0, %p5061_p13 }
 0x12e   : > { %p5057_p12 = pneg %p5056_p11 }
 0x130   : > { %p5064_p4 = pnand %p5063_p2, %p5057_p12 }
 0x132   : > { %5067 = shalt.err (!%p5064_p4)
}
 0x133   : > { %4595 = dma.hbm_to_vmem [thread:$0]  (!%p5696_p5), %s6789_s25, 16, %s776_s3, [#allocation12]  }
 0x134   : > { %s5469_s30 = smov [#allocation16]   ;;  %s5470_s29 = smov [#allocation19]  }
 0x135   : > { %s799_s23 = sshll.u32 %s5469_s30, 4  ;;  %s824_s24 = sshll.u32 %s5470_s29, 4  ;;  %s800_s23 = int_to_ptr.vmem [resolvable:$true] %s799_s23  ;;  %s825_s24 = int_to_ptr.vmem [resolvable:$true] %s824_s24 }
 0x136   : > { %s6790_s28 = sld [smem:[#allocation64_spill]] }
 0x13c   : > { %s5068_s19 = scalar_lea.hbm %s6790_s28, 16 }
 0x13d   : > { %p5069_p6 = scmp.ne.s32.totalorder %s6790_s28, %s5068_s19  ;;  %p5075_p1 = scmp.lt.u32.totalorder %s5068_s19, %s6790_s28 }
 0x13f   : > { %p5071_p8 = pnand %p5069_p6, %p5712_p7 }
 0x141   : > { %p5072_p9 = pneg %p5071_p8 }
 0x143   : > { %p5077_p3 = pnand %p5075_p1, %p5072_p9 }
 0x145   : > { %5080 = shalt.err (!%p5077_p3)
}
 0x146   : > { %s5081_s3 = scalar_lea.vmem %s800_s23, 16  ;;  %s5088_s20 = scalar_lea.vmem %s800_s23, 32 }
 0x147   : > { %p5082_p10 = scmp.ne.s32.totalorder %s800_s23, %s5081_s3  ;;  %p5089_p13 = scmp.lt.s32.totalorder %s800_s23, %s800_s23 }
 0x148   : > { %p5090_p0 = scmp.lt.s32.totalorder %s5088_s20, %s5081_s3 }
 0x149   : > { %p5084_p11 = pnand %p5082_p10, %p5712_p7 }
 0x14a   : > { %p5091_p2 = por %p5090_p0, %p5089_p13 }
 0x14b   : > { %p5085_p12 = pneg %p5084_p11 }
 0x14d   : > { %p5092_p4 = pnand %p5091_p2, %p5085_p12 }
 0x14f   : > { %5095 = shalt.err (!%p5092_p4)
}
 0x150   : > { %4601 = dma.hbm_to_vmem [thread:$0]  (!%p5696_p5), %s6790_s28, 16, %s800_s23, [#allocation15]  }
 0x151   : > { %s6791_s8 = sld [smem:[#allocation67_spill]] }
 0x157   : > { %s6792_s11 = smov %s6791_s8  ;;  %s5096_s26 = scalar_lea.hbm %s6791_s8, 16 }
 0x158   : > { %p5097_p6 = scmp.ne.s32.totalorder %s6792_s11, %s5096_s26  ;;  %p5103_p1 = scmp.lt.u32.totalorder %s5096_s26, %s6792_s11 }
 0x15a   : > { %p5099_p8 = pnand %p5097_p6, %p5712_p7 }
 0x15c   : > { %p5100_p9 = pneg %p5099_p8 }
 0x15e   : > { %p5105_p3 = pnand %p5103_p1, %p5100_p9 }
 0x160   : > { %5108 = shalt.err (!%p5105_p3)
}
 0x161   : > { %s5109_s30 = scalar_lea.vmem %s825_s24, 16  ;;  %s5116_s23 = scalar_lea.vmem %s825_s24, 32 }
 0x162   : > { %p5110_p10 = scmp.ne.s32.totalorder %s825_s24, %s5109_s30  ;;  %p5117_p13 = scmp.lt.s32.totalorder %s825_s24, %s825_s24 }
 0x163   : > { %p5118_p0 = scmp.lt.s32.totalorder %s5116_s23, %s5109_s30 }
 0x164   : > { %p5112_p11 = pnand %p5110_p10, %p5712_p7 }
 0x165   : > { %p5119_p2 = por %p5118_p0, %p5117_p13 }
 0x166   : > { %p5113_p12 = pneg %p5112_p11 }
 0x168   : > { %p5120_p4 = pnand %p5119_p2, %p5113_p12 }
 0x16a   : > { %5123 = shalt.err (!%p5120_p4)
}
 0x16b   : > { %4607 = dma.hbm_to_vmem [thread:$0]  (!%p5696_p5), %s6792_s11, 16, %s825_s24, [#allocation18]  }
 0x16c   : > { %s5471_s2 = smov [#allocation22]   ;;  %s5472_s26 = smov [#allocation25]  }
 0x16d   : > { %s845_s8 = sshll.u32 %s5471_s2, 4  ;;  %s869_s27 = sshll.u32 %s5472_s26, 4  ;;  %s846_s8 = int_to_ptr.vmem [resolvable:$true] %s845_s8  ;;  %s870_s27 = int_to_ptr.vmem [resolvable:$true] %s869_s27 }
 0x16e   : > { %s6793_s14 = sld [smem:[#allocation69_spill]] }
 0x174   : > { %s5124_s20 = scalar_lea.hbm %s6793_s14, 512 }
 0x175   : > { %p5125_p6 = scmp.ne.s32.totalorder %s6793_s14, %s5124_s20  ;;  %p5131_p1 = scmp.lt.u32.totalorder %s5124_s20, %s6793_s14 }
 0x177   : > { %p5127_p8 = pnand %p5125_p6, %p5712_p7 }
 0x179   : > { %p5128_p9 = pneg %p5127_p8 }
 0x17b   : > { %p5133_p3 = pnand %p5131_p1, %p5128_p9 }
 0x17d   : > { %5136 = shalt.err (!%p5133_p3)
}
 0x17e   : > { %s5137_s24 = scalar_lea.vmem %s846_s8, 512  ;;  %p5145_p13 = scmp.lt.s32.totalorder %s846_s8, %s846_s8 }
 0x17f   : > { %p5138_p10 = scmp.ne.s32.totalorder %s846_s8, %s5137_s24  ;;  %p5146_p0 = scmp.lt.s32.totalorder %s5137_s24, %s5137_s24 }
 0x181   : > { %p5140_p11 = pnand %p5138_p10, %p5712_p7  ;;  %p5147_p2 = por %p5146_p0, %p5145_p13 }
 0x183   : > { %p5141_p12 = pneg %p5140_p11 }
 0x185   : > { %p5148_p4 = pnand %p5147_p2, %p5141_p12 }
 0x187   : > { %5151 = shalt.err (!%p5148_p4)
}
 0x188   : > { %s6794_s19 = smov 8   ;;  %s6795_s2 = smov 128  }
 0x189   : > { %4613 = dma.hbm_to_vmem [thread:$0]  (!%p5696_p5), %s6793_s14, 512, %s846_s8, [#allocation21], %s6795_s2, %s6795_s2, %s6794_s19  }
 0x18a   : > { %s6796_s16 = sld [smem:[#allocation71_spill]] }
 0x190   : > { %s5152_s20 = scalar_lea.hbm %s6796_s16, 512 }
 0x191   : > { %p5153_p6 = scmp.ne.s32.totalorder %s6796_s16, %s5152_s20  ;;  %p5159_p1 = scmp.lt.u32.totalorder %s5152_s20, %s6796_s16 }
 0x193   : > { %p5155_p8 = pnand %p5153_p6, %p5712_p7 }
 0x195   : > { %p5156_p9 = pneg %p5155_p8 }
 0x197   : > { %p5161_p3 = pnand %p5159_p1, %p5156_p9 }
 0x199   : > { %5164 = shalt.err (!%p5161_p3)
}
 0x19a   : > { %s5165_s7 = scalar_lea.vmem %s870_s27, 512  ;;  %p5173_p13 = scmp.lt.s32.totalorder %s870_s27, %s870_s27 }
 0x19b   : > { %p5166_p10 = scmp.ne.s32.totalorder %s870_s27, %s5165_s7  ;;  %p5174_p0 = scmp.lt.s32.totalorder %s5165_s7, %s5165_s7 }
 0x19d   : > { %p5168_p11 = pnand %p5166_p10, %p5712_p7  ;;  %p5175_p2 = por %p5174_p0, %p5173_p13 }
 0x19f   : > { %p5169_p12 = pneg %p5168_p11 }
 0x1a1   : > { %p5176_p4 = pnand %p5175_p2, %p5169_p12 }
 0x1a3   : > { %5179 = shalt.err (!%p5176_p4)
}
 0x1a4   : > { %4619 = dma.hbm_to_vmem [thread:$0]  (!%p5696_p5), %s6796_s16, 512, %s870_s27, [#allocation24], %s6795_s2, %s6795_s2, %s6794_s19  }
 0x1a5   : > { %s5473_s1 = smov [#allocation28]   ;;  %s5474_s20 = smov [#allocation29]  }
 0x1a6   : > { %s893_s3 = sshll.u32 %s5473_s1, 4  ;;  %s915_s30 = sshll.u32 %s5474_s20, 4  ;;  %s894_s3 = int_to_ptr.vmem [resolvable:$true] %s893_s3  ;;  %s916_s30 = int_to_ptr.vmem [resolvable:$true] %s915_s30 }
 0x1a7   : > { %s6797_s18 = sld [smem:[#allocation73_spill]] }
 0x1ad   : > { %s5180_s24 = scalar_lea.hbm %s6797_s18, 512 }
 0x1ae   : > { %p5181_p6 = scmp.ne.s32.totalorder %s6797_s18, %s5180_s24  ;;  %p5187_p1 = scmp.lt.u32.totalorder %s5180_s24, %s6797_s18 }
 0x1b0   : > { %p5183_p8 = pnand %p5181_p6, %p5712_p7 }
 0x1b2   : > { %p5184_p9 = pneg %p5183_p8 }
 0x1b4   : > { %p5189_p3 = pnand %p5187_p1, %p5184_p9 }
 0x1b6   : > { %5192 = shalt.err (!%p5189_p3)
}
 0x1b7   : > { %s5193_s27 = scalar_lea.vmem %s894_s3, 512  ;;  %p5201_p13 = scmp.lt.s32.totalorder %s894_s3, %s894_s3 }
 0x1b8   : > { %p5194_p10 = scmp.ne.s32.totalorder %s894_s3, %s5193_s27  ;;  %p5202_p0 = scmp.lt.s32.totalorder %s5193_s27, %s5193_s27 }
 0x1ba   : > { %p5196_p11 = pnand %p5194_p10, %p5712_p7  ;;  %p5203_p2 = por %p5202_p0, %p5201_p13 }
 0x1bc   : > { %p5197_p12 = pneg %p5196_p11 }
 0x1be   : > { %p5204_p4 = pnand %p5203_p2, %p5197_p12 }
 0x1c0   : > { %5207 = shalt.err (!%p5204_p4)
}
 0x1c1   : > { %4625 = dma.hbm_to_vmem [thread:$0]  (!%p5696_p5), %s6797_s18, 512, %s894_s3, [#allocation27], %s6795_s2, %s6795_s2, %s6794_s19  }
 0x1c2   : > { %s6798_s22 = sld [smem:[#allocation77_spill]] }
 0x1c8   : > { %s5208_s20 = scalar_lea.hbm %s6798_s22, 512 }
 0x1c9   : > { %p5209_p6 = scmp.ne.s32.totalorder %s6798_s22, %s5208_s20  ;;  %p5215_p1 = scmp.lt.u32.totalorder %s5208_s20, %s6798_s22 }
 0x1cb   : > { %p5211_p8 = pnand %p5209_p6, %p5712_p7 }
 0x1cd   : > { %p5212_p9 = pneg %p5211_p8 }
 0x1cf   : > { %p5217_p3 = pnand %p5215_p1, %p5212_p9 }
 0x1d1   : > { %5220 = shalt.err (!%p5217_p3)
}
 0x1d2   : > { %s5221_s8 = scalar_lea.vmem %s916_s30, 512  ;;  %p5229_p13 = scmp.lt.s32.totalorder %s916_s30, %s916_s30 }
 0x1d3   : > { %p5222_p10 = scmp.ne.s32.totalorder %s916_s30, %s5221_s8  ;;  %p5230_p0 = scmp.lt.s32.totalorder %s5221_s8, %s5221_s8 }
 0x1d5   : > { %p5224_p11 = pnand %p5222_p10, %p5712_p7  ;;  %p5231_p2 = por %p5230_p0, %p5229_p13 }
 0x1d7   : > { %p5225_p12 = pneg %p5224_p11 }
 0x1d9   : > { %p5232_p4 = pnand %p5231_p2, %p5225_p12 }
 0x1db   : > { %5235 = shalt.err (!%p5232_p4)
}
 0x1dc   : > { %s6799_s12 = sld [smem:[#allocation46_spill]]  ;;  %s6800_s13 = sld [smem:[#allocation51_spill]] }
 0x1dd   : > { %4628 = dma.hbm_to_vmem [thread:$0]  (!%p5696_p5), %s6798_s22, 512, %s916_s30, [#allocation30], %s6795_s2, %s6795_s2, %s6794_s19  }
 0x1de   : > { %s6731_s4 = sadd.s32 4294967294, %s5456_s0   ;;  %s65_s11 = sadd.s32 1, %s5448_s6 }
 0x1df   : > { %s68_s26 = sadd.s32 1, %s5452_s10  ;;  %p66_p7 = scmp.ge.s32.totalorder %s65_s11, 2 }
 0x1e0   : > { %s157_s1 = sadd.s32 1, %s5436_s9  ;;  %p164_p6 = scmp.ne.s32.totalorder %s5436_s9, %s5432_s5 }
 0x1e1   : > { %p165_p8 = scmp.eq.s32.totalorder %s5456_s0, 0  ;;  %s6862_s11 = smov (%p66_p7, %s65_s11), 0 }
 0x1e2   : > { %6801 = sst [smem:[#allocation53_spill]] %s6862_s11  ;;  %s6864_s26 = smov (!%p66_p7, %s68_s26), %s5452_s10 }
 0x1e3   : > { %s153_s20 = ssub.s32 %s5448_s6, %s6862_s11  ;;  %p6016_p9 = por %p165_p8, %p164_p6 }
 0x1e4   : > { %p70_p5 = scmp.ge.s32.totalorder %s6864_s26, 2  ;;  %p170_p1 = scmp.ne.s32.totalorder %s5432_s5, %s6799_s12 }
 0x1e5   : > { %p658_p3 = scmp.eq.s32.totalorder %s6800_s13, 3  ;;  %p664_p10 = scmp.eq.s32.totalorder %s6731_s4, 3 }
 0x1e6   : > { %s6866_s26 = smov (%p70_p5, %s6864_s26), 0  ;;  %p6804_p11 = scmp.eq.s32.totalorder %s6800_s13, 0 }
 0x1e7   : > { %6803 = sst [smem:[#allocation54_spill]] %s6866_s26  ;;  %p6033_p13 = por %p658_p3, %p164_p6 }
 0x1e8   : > { %p6029_p12 = por %p6804_p11, %p170_p1  ;;  %s152_s30 = ssub.s32 %s5452_s10, %s6866_s26 }
 0x1e9   : > { %s6806_s2 = scalar_select %p6033_p13, 1, 0 }
 0x1ea   : > { %p6039_p0 = por %p664_p10, %p170_p1  ;;  %s154_s24 = sor.u32 %s153_s20, %s152_s30 }
 0x1eb   : > { %p4658_p2 = scmp.lt.s32.totalorder %s5456_s0, 4  ;;  %p155_p4 = scmp.eq.s32.totalorder %s154_s24, 0 }
 0x1ec   : > { %s6807_s29 = scalar_select %p6039_p0, 1, 0 }
 0x1ed   : > { %s965_s7 = sand.u32 1, %s5436_s9   ;;  %s3992_s27 = sshll.u32 %s5452_s10, 1 }
 0x1ee   : > { %s3991_s8 = sshll.u32 %s965_s7, 3  ;;  %s974_s12 = sadd.s32 %s5448_s6, %s3992_s27 }
 0x1ef   : > { %s6046_s3 = scalar_select %p155_p4, %s5436_s9, %s157_s1  }
 0x1f0   : > { %s969_s13 = scalar_lea.vmem [#allocation5], %s3991_s8  ;;  %s3993_s14 = sshll.u32 %s974_s12, 7 }
 0x1f1   : > { %s978_s4 = sshll.u32 %s969_s13, 4  ;;  %s6808_s17 = sld [smem:[#allocation58_spill]]  ;;  %s6050_s4 = int_to_ptr.vmem [resolvable:$true] %s978_s4 }
 0x1f2   : > { %p6059_p7 = pnand %p4658_p2, %p6016_p9  ;;  %s966_s20 = scalar_lea.sflag [#allocation6], %s965_s7 }
 0x1f4   : > { %p5238_p8 = pneg %p6059_p7 }
 0x1f7   : > { %s6055_s18 = scalar_lea.hbm %s6808_s17, %s3993_s14  ;;  %s5241_s16 = scalar_lea.hbm %s6808_s17, 512 }
 0x1f8   : > { %s5236_s30 = scalar_lea.hbm %s6055_s18, 128  ;;  %p5242_p9 = scmp.lt.u32.totalorder %s6055_s18, %s6808_s17 }
 0x1f9   : > { %p5237_p6 = scmp.ne.s32.totalorder %s6055_s18, %s5236_s30  ;;  %p5243_p3 = scmp.lt.u32.totalorder %s5241_s16, %s5236_s30 }
 0x1fa   : > { %p5245_p11 = scmp.lt.u32.totalorder %s5236_s30, %s6055_s18 }
 0x1fb   : > { %p5239_p5 = pnand %p5238_p8, %p5237_p6  ;;  %p5244_p10 = por %p5243_p3, %p5242_p9 }
 0x1fd   : > { %p5240_p1 = pneg %p5239_p5  ;;  %p5246_p2 = por %p5245_p11, %p5244_p10 }
 0x1ff   : > { %p5247_p4 = pnand %p5246_p2, %p5240_p1 }
 0x201   : > { %5250 = shalt.err (!%p5247_p4)
}
 0x202   : > { %s5251_s7 = scalar_lea.vmem %s6050_s4, 128  ;;  %s5475_s8 = smov [#allocation5]  }
 0x203   : > { %p5252_p6 = scmp.ne.s32.totalorder %s6050_s4, %s5251_s7  ;;  %s5256_s27 = sshll.u32 %s5475_s8, 4  ;;  %s5257_s27 = int_to_ptr.vmem [resolvable:$false] %s5256_s27 }
 0x204   : > { %s5258_s12 = scalar_lea.vmem %s5257_s27, 256  ;;  %p5259_p13 = scmp.lt.s32.totalorder %s6050_s4, %s5257_s27 }
 0x205   : > { %p5254_p5 = pnand %p5252_p6, %p5238_p8  ;;  %p5260_p9 = scmp.lt.s32.totalorder %s5258_s12, %s5251_s7 }
 0x207   : > { %p5255_p0 = pneg %p5254_p5  ;;  %p5261_p3 = por %p5260_p9, %p5259_p13 }
 0x209   : > { %p5262_p10 = pnand %p5261_p3, %p5255_p0 }
 0x20b   : > { %5265 = shalt.err (!%p5262_p10)
}
 0x20c   : > { %4632 = dma.hbm_to_vmem [thread:$0]  (!%p6059_p7), %s6055_s18, 128, %s6050_s4, %s966_s20  }
 0x20d   : > { %s6810_s13 = sld [smem:[#allocation52_spill]] }
 0x213   : > { %p6811_p1 = scmp.ne.s32.totalorder %s6810_s13, 0 }
 0x214   : > { %s6091_s30 = sand.u32 (!%p6811_p1), 1, %s5432_s5  }
 0x215   : > { %987 = sbr.rel (%p6811_p1) target bundleno = 8036 (0x1f64), region = 124  ;;  %s6733_s14 = sshll.u32 (!%p6811_p1), %s6091_s30, 3 }
 0x216   : > { %s990_s15 = scalar_lea.sflag (!%p6811_p1), [#allocation6], %s6091_s30  ;;  %s6097_s16 = scalar_lea.vmem (!%p6811_p1), [#allocation5], %s6733_s14 }
 0x21c   : > { %5383 = dma.done.wait (%p6029_p12), %s990_s15, 128  }
 0x21d   : > { %5385 = vsyncadd (%p6029_p12), %s990_s15, 4294967168  ;;  %s6812_s18 = sld [smem:[#allocation51_spill]] }
 0x223   : > { %p6813_p13 = scmp.eq.s32.totalorder %s6812_s18, 0 }
 0x225   : > { %5387 = dma.done.wait (%p6813_p13), [#allocation9], 32   ;;  %p6814_p0 = pmov %p6813_p13 }
 0x227   : > { %5389 = vsyncadd (%p6814_p0), [#allocation9], 4294967264  ;;  %p6815_p7 = pmov %p6814_p0 }
 0x228   : > { %p6816_p8 = pmov %p6814_p0 }
 0x229   : > { %5391 = dma.done.wait (%p6815_p7), [#allocation12], 528  }
 0x22a   : > { %5393 = vsyncadd (%p6816_p8), [#allocation12], 4294966768  ;;  %p6817_p11 = pmov %p6814_p0 }
 0x22b   : > { %p6818_p2 = pmov %p6814_p0 }
 0x22c   : > { %5395 = dma.done.wait (%p6817_p11), [#allocation15], 528  }
 0x22d   : > { %5397 = vsyncadd (%p6818_p2), [#allocation15], 4294966768  ;;  %p6819_p12 = pmov %p6814_p0 }
 0x22e   : > { %p6820_p4 = pmov %p6814_p0 }
 0x22f   : > { %5399 = dma.done.wait (%p6819_p12), [#allocation18], 32  }
 0x230   : > { %5401 = vsyncadd (%p6820_p4), [#allocation18], 4294967264  ;;  %p6821_p6 = pmov %p6814_p0 }
 0x231   : > { %p6822_p5 = pmov %p6814_p0 }
 0x232   : > { %5403 = dma.done.wait (%p6821_p6), [#allocation21], 528  }
 0x233   : > { %5405 = vsyncadd (%p6822_p5), [#allocation21], 4294966768  ;;  %p6823_p9 = pmov %p6814_p0 }
 0x234   : > { %p6824_p3 = pmov %p6814_p0 }
 0x235   : > { %5407 = dma.done.wait (%p6823_p9), [#allocation24], 528  }
 0x236   : > { %5409 = vsyncadd (%p6824_p3), [#allocation24], 4294966768  ;;  %p6825_p10 = pmov %p6814_p0 }
 0x237   : > { %p6826_p1 = pmov %p6814_p0 }
 0x238   : > { %5411 = dma.done.wait (%p6825_p10), [#allocation27], 528  }
 0x239   : > { %5413 = vsyncadd (%p6826_p1), [#allocation27], 4294966768  ;;  %p6827_p13 = pmov %p6814_p0 }
 0x23b   : > { %5415 = dma.done.wait (%p6827_p13), [#allocation30], 512  }
 0x23c   : > { %5417 = vsyncadd (%p6814_p0), [#allocation30], 4294966784  ;;  %s6828_s4 = sld [smem:[#allocation48_spill]]  ;;  %s6829_s19 = sld [smem:[#allocation47_spill]] }
 0x23d   : > { %s4012_s1 = sshll.u32 %s6091_s30, 5  ;;  %s6830_s27 = sld [smem:[#allocation55_spill]] }
 0x23e   : > { %s6831_s18 = sld [smem:[#allocation56_spill]]  ;;  %s6832_s28 = sld [smem:[#allocation57_spill]] }
 0x23f   : > { %s6833_s11 = sshll.u32 %s6091_s30, 3  ;;  %s6159_s6 = scalar_lea.vmem [#allocation34], %s4012_s1 }
 0x240   : > { %s6155_s10 = scalar_lea.vmem [#allocation31], %s6833_s11 }
 0x242   : > { %p1154_p7 = scmp.lt.s32.totalorder %s6828_s4, 1  ;;  %p1166_p8 = scmp.lt.s32.totalorder %s6829_s19, 1 }
 0x243   : > { %p4020_p11 = scmp.ne.s32.totalorder %s6829_s19, 0 }
 0x244   : > { %s6868_s4 = smov (!%p1154_p7, %s6828_s4), 1  ;;  %vm1180_vm0 = vcmask (!%p4020_p11), 261120   ;;  %v1386_v4 = vld [vmem:[#allocation25] sm:$0xff] (!%p4020_p11)  ;;  %v1387_v5 = vld [vmem:[#allocation25 + $0x8] sm:$0xff] (!%p4020_p11)  ;;  %v1388_v6 = vld [vmem:[#allocation25 + $0x10] sm:$0xff] (!%p4020_p11)  ;;  %vm1316_vm1 = vcmask (!%p4020_p11), 64512  }
 0x245   : > { %s1167_s20 = scalar_select %p1166_p8, %s6829_s19, 1 }
 0x246   : > { %s4097_s23 = sshll.u32 %s6868_s4, 4  ;;  %s4018_s24 = sshll.u32 %s6868_s4, 1  ;;  %v4409_v7 = vpack.c.bf16 (!%p4020_p11), %v1387_v5, %v1386_v4  ;;  %v1389_v8 = vld [vmem:[#allocation25 + $0x18] sm:$0xff] (!%p4020_p11)  ;;  %v1226_v24 = vld [vmem:[#allocation14 + $0x10] sm:$0xff] (!%p4020_p11)  ;;  %v1227_v26 = vld [vmem:[#allocation14 + $0x18] sm:$0xff] (!%p4020_p11) }
 0x247   : > { %s1158_s12 = scalar_lea.vmem %s6830_s27, %s4097_s23  ;;  %s6146_s14 = scalar_lea.vmem %s6831_s18, %s4097_s23  ;;  %v4413_v10 = vpack.c.bf16 (!%p4020_p11), %v1389_v8, %v1388_v6  ;;  %v1224_v22 = vld [vmem:[#allocation14] sm:$0xff] (!%p4020_p11)  ;;  %v1225_v23 = vld [vmem:[#allocation14 + $0x8] sm:$0xff] (!%p4020_p11)  ;;  %v4405_v27 = vpack.c.bf16 (!%p4020_p11), %v1227_v26, %v1226_v24  ;;  %v4021_v40 = vld [vmem:[#allocation8] ss:$0 sm:$0xff] (!%p4020_p11) }
 0x248   : > { %s1169_s17 = sadd.s32 %s4018_s24, %s1167_s20  ;;  %s6157_s4 = scalar_lea.vmem [#allocation32], %s4012_s1  ;;  %v1176_v0 = vld [vmem:[%s6146_s14] sm:$0xff] (!%p4020_p11)  ;;  %v1177_v1 = vld [vmem:[%s6146_s14 + $0x8] sm:$0xff] (!%p4020_p11)  ;;  %4410 = vmatprep.subr.bf16.mxu1 (!%p4020_p11), %v4409_v7  ;;  %v4401_v25 = vpack.c.bf16 (!%p4020_p11), %v1225_v23, %v1224_v22  ;;  %v4022_v42 = vld [vmem:[#allocation10] ss:$0 sm:$0xff] (!%p4020_p11) }
 0x249   : > { %s4019_s21 = sshll.u32 %s1169_s17, 3  ;;  %1175 = sbr.rel (%p4020_p11) target bundleno = 1264 (0x4f0), region = 192  ;;  %v1181_v2 = vsel (!%p4020_p11), %vm1180_vm0, %v1176_v0, 0.0  ;;  %v1184_v3 = vsel (!%p4020_p11), %vm1180_vm0, %v1177_v1, 0.0  ;;  %v1384_v9 = vld [vmem:[%s1158_s12] sm:$0xff] (!%p4020_p11)  ;;  %4412 = vmatpush3.bf16.msra.mxu1 (!%p4020_p11), %v4409_v7  ;;  %v1385_v11 = vld [vmem:[%s1158_s12 + $0x8] sm:$0xff] (!%p4020_p11) }
 0x24a   : > { %s6151_s26 = scalar_lea.vmem %s6832_s28, %s4019_s21  ;;  %1182 = vadd.xlane.f32.xlu0 (!%p4020_p11), %v1181_v2  ;;  %4212 = vmatprep.mubr.msk.f32.mxu1 (!%p4020_p11), %vm1180_vm0, %v1384_v9  ;;  %v4026_v28 = vld [vmem:[#allocation26] ss:$0 sm:$0xff] (!%p4020_p11)  ;;  %s5476_s17 = smov (!%p4020_p11), 120   ;;  %v4023_v61 = vld [vmem:[#allocation16] ss:$0 sm:$0xff] (!%p4020_p11) }
 0x24b   : > { %4414 = vmatprep.subr.bf16.mxu1 (!%p4020_p11), %v4413_v10  ;;  %4402 = vmatprep.subr.bf16.mxu0 (!%p4020_p11), %v4401_v25  ;;  %s5477_s22 = smov (!%p4020_p11), 112   ;;  %s5478_s21 = smov (!%p4020_p11), 104  }
 0x24c   : > { %4404 = vmatpush3.bf16.msra.mxu0 (!%p4020_p11), %v4401_v25  ;;  %s5479_s25 = smov (!%p4020_p11), 96   ;;  %s5480_s28 = smov (!%p4020_p11), 88  }
 0x24d   : > { %4416 = vmatpush3.bf16.msra.mxu1 (!%p4020_p11), %v4413_v10  ;;  %4406 = vmatprep.subr.bf16.mxu0 (!%p4020_p11), %v4405_v27  ;;  %s5481_s11 = smov (!%p4020_p11), 80   ;;  %s5482_s19 = smov (!%p4020_p11), 72  }
 0x24e   : > { %1185 = vadd.xlane.f32.xlu0 (!%p4020_p11), %v1184_v3 }
 0x250   : > { %4213 = vmatmul.mubr.msk.f32.vlgmr.msra.gmra.mrb[0].mxu1 %vm1180_vm0, %v1385_v11  ;;  %4408 = vmatpush3.bf16.msra.mxu0 %v4405_v27 }
 0x2d7   : > { %v1183_v12 = vpop.xlane.xlu0 %1182 }
 0x2d8   : > { %v1188_v13 = vmul.f32 0.03125, %v1183_v12 }
 0x2da   : > { %v1190_v14 = vsub.f32 %v1176_v0, %v1188_v13 }
 0x2db   : > { %v1186_v15 = vpop.xlane.xlu0 %1185 }
 0x2dc   : > { %v1189_v16 = vmul.f32 0.03125, %v1186_v15  ;;  %v1192_v17 = vmul.f32 %v1190_v14, %v1190_v14 }
 0x2de   : > { %v1191_v18 = vsub.f32 %v1177_v1, %v1189_v16  ;;  %v1194_v19 = vsel %vm1180_vm0, %v1192_v17, 0.0 }
 0x2df   : > { %1195 = vadd.xlane.f32.xlu1 %v1194_v19 }
 0x2e0   : > { %v1193_v20 = vmul.f32 %v1191_v18, %v1191_v18 }
 0x2e2   : > { %v1197_v21 = vsel %vm1180_vm0, %v1193_v20, 0.0 }
 0x2e3   : > { %1198 = vadd.xlane.f32.xlu1 %v1197_v21 }
 0x323   : > { %v4214_v29 = vpop.f32.mrb[0].mxu1 }
 0x324   : > { %v6170_v30 = vadd.f32 %v4214_v29, %v4026_v28  ;;  %v1469_v31 = vpop.f32.mrb[1].mxu1 }
 0x325   : > { %v6172_v32 = vadd.f32 %v4026_v28, %v1469_v31 }
 0x326   : > { %1479 = vst.msk [vmem:[#allocation3 + $0x8] sm:$0xff] %vm1316_vm1, %v6170_v30  ;;  %1484 = vrot.lane.b32.xlu1 %v6170_v30, %s5476_s17 }
 0x327   : > { %1478 = vst.msk [vmem:[#allocation3] sm:$0xff] %vm1316_vm1, %v6172_v32  ;;  %1482 = vrot.lane.b32.xlu0 %v6172_v32, %s5476_s17 }
 0x32a   : > { %1493 = vrot.lane.b32.xlu1 %v6170_v30, %s5477_s22 }
 0x32b   : > { %1491 = vrot.lane.b32.xlu0 %v6172_v32, %s5477_s22 }
 0x32e   : > { %1502 = vrot.lane.b32.xlu1 %v6170_v30, %s5478_s21 }
 0x32f   : > { %1500 = vrot.lane.b32.xlu0 %v6172_v32, %s5478_s21 }
 0x332   : > { %1511 = vrot.lane.b32.xlu1 %v6170_v30, %s5479_s25 }
 0x333   : > { %1509 = vrot.lane.b32.xlu0 %v6172_v32, %s5479_s25 }
 0x336   : > { %1520 = vrot.lane.b32.xlu1 %v6170_v30, %s5480_s28 }
 0x337   : > { %1518 = vrot.lane.b32.xlu0 %v6172_v32, %s5480_s28 }
 0x33a   : > { %1529 = vrot.lane.b32.xlu1 %v6170_v30, %s5481_s11 }
 0x33b   : > { %1527 = vrot.lane.b32.xlu0 %v6172_v32, %s5481_s11 }
 0x36c   : > { %v1196_v33 = vpop.xlane.xlu1 %1195 }
 0x36d   : > { %v1200_v34 = vmul.f32 0.03125, %v1196_v33 }
 0x36f   : > { %v1202_v35 = vadd.f32 1e-12, %v1200_v34 }
 0x370   : > { %v1199_v36 = vpop.xlane.xlu1 %1198 }
 0x371   : > { %4774 = vrsqrt.f32 %v1202_v35  ;;  %v1201_v37 = vmul.f32 0.03125, %v1199_v36 }
 0x373   : > { %v1203_v38 = vadd.f32 1e-12, %v1201_v37 }
 0x375   : > { %4776 = vrsqrt.f32 %v1203_v38 }
 0x37b   : > { %v4775_v39 = vpop.eup %4774 }
 0x37c   : > { %v1206_v41 = vmul.f32 %v4775_v39, %v1190_v14 }
 0x37e   : > { %v1214_v43 = vmul.f32 %v4021_v40, %v1206_v41 }
 0x37f   : > { %v4777_v44 = vpop.eup %4776 }
 0x380   : > { %v1207_v45 = vmul.f32 %v4777_v44, %v1191_v18  ;;  %v1222_v46 = vadd.f32 %v4022_v42, %v1214_v43 }
 0x382   : > { %v1215_v47 = vmul.f32 %v4021_v40, %v1207_v45  ;;  %4201 = vmatprep.mubr.msk.f32.mxu0 %vm1180_vm0, %v1222_v46 }
 0x384   : > { %v1223_v48 = vadd.f32 %v4022_v42, %v1215_v47 }
 0x386   : > { %4202 = vmatmul.mubr.msk.f32.vlgmr.msra.gmra.mrb[0].mxu0 %vm1180_vm0, %v1223_v48 }
 0x398   : > { %v1485_v49 = vpop.permute.xlu1 %1484 }
 0x399   : > { %v1483_v50 = vpop.permute.xlu0 %1482  ;;  %1490 = vst.msk [vmem:[#allocation3 + $0x18] sm:$0xff] %vm1316_vm1, %v1485_v49 }
 0x39a   : > { %1489 = vst.msk [vmem:[#allocation3 + $0x10] sm:$0xff] %vm1316_vm1, %v1483_v50 }
 0x39c   : > { %v1494_v51 = vpop.permute.xlu1 %1493 }
 0x39d   : > { %v1492_v52 = vpop.permute.xlu0 %1491  ;;  %1499 = vst.msk [vmem:[#allocation3 + $0x28] sm:$0xff] %vm1316_vm1, %v1494_v51 }
 0x39e   : > { %1498 = vst.msk [vmem:[#allocation3 + $0x20] sm:$0xff] %vm1316_vm1, %v1492_v52 }
 0x3a0   : > { %v1503_v53 = vpop.permute.xlu1 %1502 }
 0x3a1   : > { %v1501_v54 = vpop.permute.xlu0 %1500  ;;  %1508 = vst.msk [vmem:[#allocation3 + $0x38] sm:$0xff] %vm1316_vm1, %v1503_v53 }
 0x3a2   : > { %1507 = vst.msk [vmem:[#allocation3 + $0x30] sm:$0xff] %vm1316_vm1, %v1501_v54 }
 0x3a4   : > { %v1512_v55 = vpop.permute.xlu1 %1511 }
 0x3a5   : > { %v1510_v56 = vpop.permute.xlu0 %1509  ;;  %1517 = vst.msk [vmem:[#allocation3 + $0x48] sm:$0xff] %vm1316_vm1, %v1512_v55 }
 0x3a6   : > { %1516 = vst.msk [vmem:[#allocation3 + $0x40] sm:$0xff] %vm1316_vm1, %v1510_v56 }
 0x3a8   : > { %v1521_v57 = vpop.permute.xlu1 %1520 }
 0x3a9   : > { %v1519_v58 = vpop.permute.xlu0 %1518  ;;  %1526 = vst.msk [vmem:[#allocation3 + $0x58] sm:$0xff] %vm1316_vm1, %v1521_v57 }
 0x3aa   : > { %1525 = vst.msk [vmem:[#allocation3 + $0x50] sm:$0xff] %vm1316_vm1, %v1519_v58 }
 0x3ac   : > { %v1530_v59 = vpop.permute.xlu1 %1529 }
 0x3ad   : > { %v1528_v60 = vpop.permute.xlu0 %1527  ;;  %1535 = vst.msk [vmem:[#allocation3 + $0x68] sm:$0xff] %vm1316_vm1, %v1530_v59 }
 0x3ae   : > { %1534 = vst.msk [vmem:[#allocation3 + $0x60] sm:$0xff] %vm1316_vm1, %v1528_v60 }
 0x459   : > { %v4203_v62 = vpop.f32.mrb[0].mxu0 }
 0x45a   : > { %v1313_v63 = vadd.f32 %v4203_v62, %v4023_v61  ;;  %v1307_v0 = vpop.f32.mrb[1].mxu0 }
 0x45b   : > { %v1308_v1 = vadd.f32 %v4023_v61, %v1307_v0 }
 0x45c   : > { %1318 = vst.msk [vmem:[#allocation2 + $0x8] sm:$0xff] %vm1316_vm1, %v1313_v63  ;;  %1323 = vrot.lane.b32.xlu1 %v1313_v63, %s5476_s17 }
 0x45d   : > { %1317 = vst.msk [vmem:[#allocation2] sm:$0xff] %vm1316_vm1, %v1308_v1  ;;  %1321 = vrot.lane.b32.xlu0 %v1308_v1, %s5476_s17 }
 0x460   : > { %1332 = vrot.lane.b32.xlu1 %v1313_v63, %s5477_s22 }
 0x461   : > { %1339 = vrot.lane.b32.xlu0 %v1308_v1, %s5478_s21 }
 0x464   : > { %1341 = vrot.lane.b32.xlu1 %v1313_v63, %s5478_s21 }
 0x465   : > { %1348 = vrot.lane.b32.xlu0 %v1308_v1, %s5479_s25 }
 0x468   : > { %1350 = vrot.lane.b32.xlu1 %v1313_v63, %s5479_s25 }
 0x469   : > { %1357 = vrot.lane.b32.xlu0 %v1308_v1, %s5480_s28 }
 0x46c   : > { %1359 = vrot.lane.b32.xlu1 %v1313_v63, %s5480_s28 }
 0x46d   : > { %1366 = vrot.lane.b32.xlu0 %v1308_v1, %s5481_s11 }
 0x470   : > { %1368 = vrot.lane.b32.xlu1 %v1313_v63, %s5481_s11 }
 0x471   : > { %1375 = vrot.lane.b32.xlu0 %v1308_v1, %s5482_s19 }
 0x474   : > { %1377 = vrot.lane.b32.xlu1 %v1313_v63, %s5482_s19 }
 0x475   : > { %1536 = vrot.lane.b32.xlu0 %v6172_v32, %s5482_s19 }
 0x478   : > { %1330 = vrot.lane.b32.xlu1 %v1308_v1, %s5477_s22 }
 0x47c   : > { %1538 = vrot.lane.b32.xlu1 %v6170_v30, %s5482_s19 }
 0x4ce   : > { %v1324_v2 = vpop.permute.xlu1 %1323 }
 0x4cf   : > { %1329 = vst.msk [vmem:[#allocation2 + $0x18] sm:$0xff] %vm1316_vm1, %v1324_v2  ;;  %v1322_v3 = vpop.permute.xlu0 %1321 }
 0x4d0   : > { %1328 = vst.msk [vmem:[#allocation2 + $0x10] sm:$0xff] %vm1316_vm1, %v1322_v3 }
 0x4d2   : > { %v1333_v4 = vpop.permute.xlu1 %1332 }
 0x4d3   : > { %1338 = vst.msk [vmem:[#allocation2 + $0x28] sm:$0xff] %vm1316_vm1, %v1333_v4  ;;  %v1340_v5 = vpop.permute.xlu0 %1339 }
 0x4d4   : > { %1346 = vst.msk [vmem:[#allocation2 + $0x30] sm:$0xff] %vm1316_vm1, %v1340_v5 }
 0x4d6   : > { %v1342_v6 = vpop.permute.xlu1 %1341 }
 0x4d7   : > { %1347 = vst.msk [vmem:[#allocation2 + $0x38] sm:$0xff] %vm1316_vm1, %v1342_v6  ;;  %v1349_v7 = vpop.permute.xlu0 %1348 }
 0x4d8   : > { %1355 = vst.msk [vmem:[#allocation2 + $0x40] sm:$0xff] %vm1316_vm1, %v1349_v7 }
 0x4da   : > { %v1351_v8 = vpop.permute.xlu1 %1350 }
 0x4db   : > { %1356 = vst.msk [vmem:[#allocation2 + $0x48] sm:$0xff] %vm1316_vm1, %v1351_v8  ;;  %v1358_v9 = vpop.permute.xlu0 %1357 }
 0x4dc   : > { %1364 = vst.msk [vmem:[#allocation2 + $0x50] sm:$0xff] %vm1316_vm1, %v1358_v9 }
 0x4de   : > { %v1360_v10 = vpop.permute.xlu1 %1359 }
 0x4df   : > { %1365 = vst.msk [vmem:[#allocation2 + $0x58] sm:$0xff] %vm1316_vm1, %v1360_v10  ;;  %v1367_v11 = vpop.permute.xlu0 %1366 }
 0x4e0   : > { %1373 = vst.msk [vmem:[#allocation2 + $0x60] sm:$0xff] %vm1316_vm1, %v1367_v11 }
 0x4e2   : > { %v1369_v12 = vpop.permute.xlu1 %1368 }
 0x4e3   : > { %1374 = vst.msk [vmem:[#allocation2 + $0x68] sm:$0xff] %vm1316_vm1, %v1369_v12  ;;  %v1376_v13 = vpop.permute.xlu0 %1375 }
 0x4e4   : > { %1382 = vst.msk [vmem:[#allocation2 + $0x70] sm:$0xff] %vm1316_vm1, %v1376_v13 }
 0x4e6   : > { %v1378_v14 = vpop.permute.xlu1 %1377 }
 0x4e7   : > { %1383 = vst.msk [vmem:[#allocation2 + $0x78] sm:$0xff] %vm1316_vm1, %v1378_v14  ;;  %v1537_v15 = vpop.permute.xlu0 %1536 }
 0x4e8   : > { %1543 = vst.msk [vmem:[#allocation3 + $0x70] sm:$0xff] %vm1316_vm1, %v1537_v15 }
 0x4ea   : > { %v1331_v16 = vpop.permute.xlu1 %1330 }
 0x4eb   : > { %1337 = vst.msk [vmem:[#allocation2 + $0x20] sm:$0xff] %vm1316_vm1, %v1331_v16 }
 0x4ee   : > { %v1539_v17 = vpop.permute.xlu1 %1538 }
 0x4ef   : > { %1544 = vst.msk [vmem:[#allocation3 + $0x78] sm:$0xff] %vm1316_vm1, %v1539_v17 }
 0x4f0 PF: > { %s6834_s1 = sld [smem:[#allocation47_spill]]  ;;  %vm1550_vm2 = vcmask 261120   ;;  %v1580_v25 = vld [vmem:[#allocation11] sm:$0xff]  ;;  %v1581_v26 = vld [vmem:[#allocation11 + $0x8] sm:$0xff]  ;;  %v1582_v27 = vld [vmem:[#allocation11 + $0x10] sm:$0xff]  ;;  %v5483_v28 = vmov 0.0|0.0  }
 0x4f1   : > { %4417 = vmatprep.subr.bf16.mxu1 %v5483_v28  ;;  %v4418_v29 = vpack.c.bf16 %v1581_v26, %v1580_v25  ;;  %v1583_v30 = vld [vmem:[#allocation11 + $0x18] sm:$0xff]  ;;  %vm5484_vm3 = vmmov 0   ;;  %v5485_v31 = vmov 0.0   ;;  %4427 = vmatprep.subr.bf16.mxu0 %v5483_v28  ;;  %v1671_v39 = vld [vmem:[#allocation2] sm:$0xff]  ;;  %v1672_v40 = vld [vmem:[#allocation2 + $0x8] sm:$0xff]  ;;  %vm1676_vm4 = vcmask 64512  }
 0x4f2   : > { %4223 = vmatprep.mubr.msk.f32.mxu1 %vm5484_vm3, %v5485_v31  ;;  %4237 = vmatprep.mubr.msk.f32.mxu0 %vm5484_vm3, %v5485_v31  ;;  %v4421_v32 = vpack.c.bf16 %v1583_v30, %v1582_v27  ;;  %v4030_v37 = vld [vmem:[#allocation8] ss:$0 sm:$0xff]  ;;  %v4031_v41 = vld [vmem:[#allocation10] ss:$0 sm:$0xff]  ;;  %v4424_v43 = vpack.c.bf16 %v1672_v40, %v1671_v39  ;;  %vm6266_vm5 = vmpackc.low %vm1676_vm4, %vm1676_vm4  ;;  %vm1757_vm7 = vcmask 130048   ;;  %s5488_s24 = smov 104  }
 0x4f3   : > { %4419 = vmatpush3.bf16.msra.mxu1 %v4418_v29  ;;  %v4032_v46 = vld [vmem:[#allocation13] ss:$0 sm:$0xff]  ;;  %v1845_v47 = vld [vmem:[#allocation2 + $0x10] sm:$0xff]  ;;  %v1674_v5 = vld [vmem:[#allocation2 + $0x40] sm:$0xff]  ;;  %s5489_s7 = smov 16   ;;  %s5490_s8 = smov 8  }
 0x4f4   : > { %4420 = vmatprep.subr.bf16.mxu1 %v5483_v28  ;;  %v1846_v48 = vld [vmem:[#allocation2 + $0x18] sm:$0xff]  ;;  %v6291_v55 = vld [vmem:[%s6097_s16] sm:$0xff]  ;;  %s5487_s16 = smov 112   ;;  %vm2021_vm8 = vcmask 130112   ;;  %vm2200_vm9 = vcmask 195712   ;;  %s6837_s13 = sld [smem:[#allocation65_spill]] }
 0x4f5   : > { %v4431_v52 = vpack.c.bf16 %v1846_v48, %v1845_v47  ;;  %vm1670_vm6 = vcmp.eq.s32.totalorder %v6291_v55, 0  ;;  %v1675_v6 = vld [vmem:[#allocation2 + $0x48] sm:$0xff]  ;;  %v1848_v14 = vld [vmem:[#allocation2 + $0x50] sm:$0xff]  ;;  %v1849_v15 = vld [vmem:[#allocation2 + $0x58] sm:$0xff]  ;;  %s5491_s28 = smov 24   ;;  %vm2379_vm10 = vcmask 261312  }
 0x4f6   : > { %s4029_s20 = sshll.u32 %s6834_s1, 3  ;;  %v4428_v7 = vpack.c.bf16 %v1675_v6, %v1674_v5  ;;  %v4435_v17 = vpack.c.bf16 %v1849_v15, %v1848_v14  ;;  %v2203_v47 = vld [vmem:[#allocation2 + $0x30] sm:$0xff]  ;;  %v2204_v48 = vld [vmem:[#allocation2 + $0x38] sm:$0xff]  ;;  %s6838_s19 = sld [smem:[#allocation74_spill]]  ;;  %vm3491_vm12 = vcmask 523264  }
 0x4f7   : > { %s1546_s23 = scalar_lea.vmem %s6146_s14, %s4029_s20  ;;  %4422 = vmatpush3.bf16.msra.mxu1 %v4421_v32  ;;  %s5486_s14 = smov 120  }
 0x4f8   : > { %v6250_v18 = vld [vmem:[%s1546_s23] sm:$0xff]  ;;  %4423 = vmatprep.subr.bf16.mxu1 %v5483_v28  ;;  %4429 = vmatpush3.bf16.msra.mxu0 %v4428_v7  ;;  %s6841_s20 = sld [smem:[#allocation76_spill]]  ;;  %s6842_s23 = sld [smem:[#allocation48_spill]] }
 0x4f9   : > { %v1551_v19 = vsel %vm1550_vm2, %v6250_v18, 0.0  ;;  %4434 = vmatprep.subr.bf16.mxu0 %v5483_v28  ;;  %s6844_s17 = sld [smem:[#allocation78_spill]]  ;;  %p6846_p12 = scmp.ne.s32.totalorder %s6806_s2, 0 }
 0x4fa   : > { %1552 = vadd.xlane.f32.xlu0 %v1551_v19 }
 0x4fe   : > { %s4091_s22 = sshll.u32 %s6842_s23, 3 }
 0x4ff   : > { %s6525_s21 = sadd.s32 %s6834_s1, %s4091_s22 }
 0x587   : > { %v1553_v20 = vpop.xlane.xlu0 %1552 }
 0x588   : > { %v1555_v21 = vmul.f32 0.03125, %v1553_v20 }
 0x58a   : > { %v1556_v22 = vsub.f32 %v6250_v18, %v1555_v21  ;;  %v2024_v21 = vld [vmem:[#allocation2 + $0x20] sm:$0xff] }
 0x58c   : > { %v1557_v23 = vmul.f32 %v1556_v22, %v1556_v22 }
 0x58e   : > { %v1558_v24 = vsel %vm1550_vm2, %v1557_v23, 0.0 }
 0x58f   : > { %1559 = vadd.xlane.f32.xlu0 %v1558_v24 }
 0x61c   : > { %v1560_v33 = vpop.xlane.xlu0 %1559 }
 0x61d   : > { %v1561_v34 = vmul.f32 0.03125, %v1560_v33 }
 0x61f   : > { %v1562_v35 = vadd.f32 1e-12, %v1561_v34 }
 0x621   : > { %4778 = vrsqrt.f32 %v1562_v35 }
 0x62b   : > { %v4779_v36 = vpop.eup %4778 }
 0x62c   : > { %v1564_v38 = vmul.f32 %v4779_v36, %v1556_v22  ;;  %v2025_v22 = vld [vmem:[#allocation2 + $0x28] sm:$0xff] }
 0x62d   : > { %v4438_v24 = vpack.c.bf16 %v2025_v22, %v2024_v21 }
 0x62e   : > { %v1571_v42 = vmul.f32 %v4030_v37, %v1564_v38 }
 0x630   : > { %v1578_v44 = vadd.f32 %v4031_v41, %v1571_v42  ;;  %v2027_v42 = vld [vmem:[#allocation2 + $0x60] sm:$0xff] }
 0x632   : > { %4224 = vmatmul.mubr.msk.f32.vlgmr.msra.gmra.mrb[0].mxu1 %vm1550_vm2, %v1578_v44 }
 0x633   : > { %4426 = vmatpush3.bf16.xpose.msk.msra.mxu1 %vm6266_vm5, %v4424_v43  ;;  %4230 = vmatprep.mubr.msk.f32.mxu1 %vm5484_vm3, %v5485_v31  ;;  %v2028_v43 = vld [vmem:[#allocation2 + $0x68] sm:$0xff] }
 0x634   : > { %4430 = vmatprep.subr.bf16.mxu1 %v5483_v28  ;;  %v4442_v44 = vpack.c.bf16 %v2028_v43, %v2027_v42 }
 0x705   : > { %v1665_v49 = vpop.f32.mrb[0].mxu1 }
 0x706   : > { %v1666_v50 = vadd.f32 %v4032_v46, %v1665_v49  ;;  %v4225_v51 = vpop.f32.mrb[1].mxu1 }
 0x708   : > { %v6276_v53 = vmul.f32 0.35355338, %v1666_v50  ;;  %v4445_v50 = vpack.c.bf16 %v2204_v48, %v2203_v47  ;;  %v4056_v47 = vld [vmem:[#allocation20] ss:$0 sm:$0xff] }
 0x70a   : > { %1850 = vrot.lane.b32.xlu1 %v6276_v53, %s5486_s14  ;;  %4231 = vmatmul.mubr.msk.f32.vlgmr.msra.gmra.mrb[2].mxu1 %vm1676_vm4, %v6276_v53 }
 0x70b   : > { %4433 = vmatpush3.bf16.xpose.msk.msra.mxu1 %vm6266_vm5, %v4431_v52  ;;  %4244 = vmatprep.mubr.msk.f32.mxu1 %vm5484_vm3, %v5485_v31 }
 0x70c   : > { %4441 = vmatprep.subr.bf16.mxu1 %v5483_v28 }
 0x77c   : > { %v1851_v54 = vpop.permute.xlu1 %1850 }
 0x77d   : > { %4245 = vmatmul.mubr.msk.f32.vlgmr.msra.gmra.mrb[4].mxu1 %vm1676_vm4, %v1851_v54 }
 0x77e   : > { %4265 = vmatprep.mubr.msk.f32.mxu1 %vm5484_vm3, %v5485_v31  ;;  %4443 = vmatpush3.bf16.msra.mxu1 %v4442_v44  ;;  %v4055_v44 = vld [vmem:[#allocation19] ss:$0 sm:$0xff] }
 0x77f   : > { %4444 = vmatprep.subr.bf16.mxu1 %v5483_v28 }
 0x7dd   : > { %v1752_v56 = vpop.f32.mrb[2].mxu1 }
 0x7de   : > { %v1756_v57 = vsel %vm1670_vm6, -1024.0, %v1752_v56  ;;  %v4232_v58 = vpop.f32.mrb[3].mxu1 }
 0x7df   : > { %v1758_v59 = vsel %vm1757_vm7, %v1756_v57, -inf }
 0x7e0   : > { %1759 = vmax.xlane.f32.xlu1 %v1758_v59 }
 0x850   : > { %v1926_v60 = vpop.f32.mrb[4].mxu1 }
 0x851   : > { %v1930_v61 = vsel %vm1670_vm6, -1024.0, %v1926_v60  ;;  %v4246_v62 = vpop.f32.mrb[5].mxu1 }
 0x852   : > { %v1931_v63 = vsel %vm1757_vm7, %v1930_v61, -inf }
 0x853   : > { %1932 = vmax.xlane.f32.xlu0 %v1931_v63 }
 0x86d   : > { %v1760_v0 = vpop.xlane.xlu1 %1759 }
 0x86e   : > { %v1761_v1 = vsub.f32 %v1756_v57, %v1760_v0 }
 0x870   : > { %v1762_v2 = vmul.f32 1.442695, %v1761_v1  ;;  %v2206_v1 = vld [vmem:[#allocation2 + $0x70] sm:$0xff] }
 0x872   : > { %4780 = vpow2.f32 %v1762_v2  ;;  %v2207_v2 = vld [vmem:[#allocation2 + $0x78] sm:$0xff] }
 0x873   : > { %v4449_v55 = vpack.c.bf16 %v2207_v2, %v2206_v1  ;;  %v2586_v2 = vld [vmem:[#allocation3 + $0x40] sm:$0xff] }
 0x87c   : > { %v4781_v3 = vpop.eup %4780 }
 0x87d   : > { %v1764_v4 = vsel %vm1757_vm7, %v4781_v3, 0.0 }
 0x87e   : > { %1765 = vadd.xlane.f32.xlu0 %v1764_v4 }
 0x8e0   : > { %v1933_v8 = vpop.xlane.xlu0 %1932 }
 0x8e1   : > { %v1934_v9 = vsub.f32 %v1930_v61, %v1933_v8  ;;  %v1585_v8 = vld [vmem:[%s6837_s13] sm:$0xff] }
 0x8e3   : > { %v1935_v10 = vmul.f32 1.442695, %v1934_v9  ;;  %v1586_v9 = vld [vmem:[%s6837_s13 + $0x8] sm:$0xff] }
 0x8e5   : > { %4782 = vpow2.f32 %v1935_v10  ;;  %v4452_v10 = vpack.c.bf16 %v1586_v9, %v1585_v8 }
 0x8ef   : > { %v4783_v11 = vpop.eup %4782 }
 0x8f0   : > { %v1937_v12 = vsel %vm1757_vm7, %v4783_v11, 0.0 }
 0x8f1   : > { %1938 = vadd.xlane.f32.xlu0 %v1937_v12  ;;  %v1588_v12 = vld [vmem:[%s6837_s13 + $0x18] sm:$0xff] }
 0x907   : > { %2029 = vrot.lane.b32.xlu0 %v6276_v53, %s5487_s16 }
 0x90b   : > { %v1766_v13 = vpop.xlane.xlu0 %1765 }
 0x90c   : > { %4784 = vrcp.f32 %v1766_v13 }
 0x916   : > { %v4785_v16 = vpop.eup %4784 }
 0x917   : > { %v1768_v19 = vmul.f32 %v4785_v16, %v4781_v3 }
 0x919   : > { %1769 = vst.msk [vmem:[%s6157_s4] sm:$0xff] %vm1757_vm7, %v1768_v19  ;;  %4238 = vmatmul.mubr.msk.f32.vlgmr.msra.gmra.mrb[0].mxu0 %vm1757_vm7, %v1768_v19  ;;  %v4053_v19 = vld [vmem:[#allocation17] ss:$0 sm:$0xff] }
 0x91a   : > { %4436 = vmatpush3.bf16.msra.mxu0 %v4435_v17  ;;  %4251 = vmatprep.mubr.msk.f32.mxu0 %vm5484_vm3, %v5485_v31 }
 0x91b   : > { %4437 = vmatprep.subr.bf16.mxu0 %v5483_v28 }
 0x97e   : > { %v1939_v20 = vpop.xlane.xlu0 %1938 }
 0x97f   : > { %4786 = vrcp.f32 %v1939_v20 }
 0x982   : > { %v2030_v26 = vpop.permute.xlu0 %2029 }
 0x989   : > { %v4787_v23 = vpop.eup %4786 }
 0x98a   : > { %v1941_v25 = vmul.f32 %v4787_v23, %v4783_v11  ;;  %v1587_v11 = vld [vmem:[%s6837_s13 + $0x10] sm:$0xff] }
 0x98b   : > { %v4455_v13 = vpack.c.bf16 %v1588_v12, %v1587_v11 }
 0x98c   : > { %4041 = vst.msk [vmem:[%s6157_s4 + $0x8] sm:$0xff] %vm1757_vm7, %v1941_v25  ;;  %4252 = vmatmul.mubr.msk.f32.vlgmr.msra.gmra.mrb[2].mxu0 %vm1757_vm7, %v1941_v25 }
 0x98d   : > { %4440 = vmatpush3.bf16.xpose.msk.msra.mxu0 %vm6266_vm5, %v4438_v24  ;;  %4258 = vmatprep.mubr.msk.f32.mxu0 %vm5484_vm3, %v5485_v31 }
 0x98e   : > { %4448 = vmatprep.subr.bf16.mxu0 %v5483_v28 }
 0x994   : > { %4259 = vmatmul.mubr.msk.f32.vlgmr.msra.gmra.mrb[4].mxu0 %vm1676_vm4, %v2030_v26 }
 0x995   : > { %4279 = vmatprep.mubr.msk.f32.mxu0 %vm5484_vm3, %v5485_v31  ;;  %4450 = vmatpush3.bf16.msra.mxu0 %v4449_v55  ;;  %v2587_v55 = vld [vmem:[#allocation3 + $0x48] sm:$0xff] }
 0x996   : > { %4451 = vmatprep.subr.bf16.mxu0 %v5483_v28 }
 0x9ec   : > { %v1839_v27 = vpop.f32.mrb[0].mxu0 }
 0x9ed   : > { %1843 = vst.msk [vmem:[#allocation4] sm:$0xff] %vm1676_vm4, %v1839_v27  ;;  %v4239_v29 = vpop.f32.mrb[1].mxu0 }
 0xa5f   : > { %v2013_v30 = vpop.f32.mrb[2].mxu0 }
 0xa60   : > { %v4253_v32 = vpop.f32.mrb[3].mxu0 }
 0xa61   : > { %v2492_v32 = vld [vmem:[#allocation22] sm:$0xff] }
 0xa67   : > { %v2105_v33 = vpop.f32.mrb[4].mxu0 }
 0xa68   : > { %v2109_v34 = vsel %vm1670_vm6, -1024.0, %v2105_v33  ;;  %v4260_v35 = vpop.f32.mrb[5].mxu0  ;;  %v2493_v33 = vld [vmem:[#allocation22 + $0x8] sm:$0xff] }
 0xa69   : > { %v2110_v36 = vsel %vm1757_vm7, %v2109_v34, -inf  ;;  %v2495_v35 = vld [vmem:[#allocation22 + $0x18] sm:$0xff] }
 0xa6a   : > { %2111 = vmax.xlane.f32.xlu1 %v2110_v36 }
 0xa7b   : > { %2208 = vrot.lane.b32.xlu1 %v6276_v53, %s5488_s24 }
 0xaf7   : > { %v2112_v37 = vpop.xlane.xlu1 %2111 }
 0xaf8   : > { %v2113_v38 = vsub.f32 %v2109_v34, %v2112_v37  ;;  %v4458_v34 = vpack.c.bf16 %v2493_v33, %v2492_v32  ;;  %v2583_v37 = vld [vmem:[#allocation3] sm:$0xff] }
 0xafa   : > { %v2114_v39 = vmul.f32 1.442695, %v2113_v38  ;;  %v2584_v38 = vld [vmem:[#allocation3 + $0x8] sm:$0xff] }
 0xafb   : > { %v2209_v52 = vpop.permute.xlu1 %2208 }
 0xafc   : > { %4788 = vpow2.f32 %v2114_v39  ;;  %v4464_v39 = vpack.c.bf16 %v2584_v38, %v2583_v37 }
 0xb06   : > { %v4789_v40 = vpop.eup %4788 }
 0xb07   : > { %v2116_v41 = vsel %vm1757_vm7, %v4789_v40, 0.0 }
 0xb08   : > { %2117 = vadd.xlane.f32.xlu0 %v2116_v41 }
 0xb95   : > { %v2118_v46 = vpop.xlane.xlu0 %2117 }
 0xb96   : > { %4790 = vrcp.f32 %v2118_v46 }
 0xba0   : > { %v4791_v49 = vpop.eup %4790 }
 0xba1   : > { %v2120_v51 = vmul.f32 %v4791_v49, %v4789_v40 }
 0xba3   : > { %4046 = vst.msk [vmem:[%s6157_s4 + $0x10] sm:$0xff] %vm1757_vm7, %v2120_v51  ;;  %4266 = vmatmul.mubr.msk.f32.vlgmr.msra.gmra.mrb[6].mxu1 %vm1757_vm7, %v2120_v51 }
 0xba4   : > { %4447 = vmatpush3.bf16.xpose.msk.msra.mxu1 %vm6266_vm5, %v4445_v50  ;;  %4272 = vmatprep.mubr.msk.f32.mxu1 %vm5484_vm3, %v5485_v31  ;;  %v4057_v50 = vld [vmem:[#allocation23] ss:$0 sm:$0xff] }
 0xba5   : > { %4457 = vmatprep.subr.bf16.mxu1 %v5483_v28 }
 0xbab   : > { %4273 = vmatmul.mubr.msk.f32.vlgmr.msra.gmra.mrb[8].mxu1 %vm1676_vm4, %v2209_v52 }
 0xbac   : > { %4301 = vmatprep.mubr.msk.f32.mxu1 %vm5484_vm3, %v5485_v31  ;;  %4459 = vmatpush3.bf16.msra.mxu1 %v4458_v34 }
 0xbad   : > { %4460 = vmatprep.subr.bf16.mxu1 %v5483_v28 }
 0xc76   : > { %v2192_v53 = vpop.f32.mrb[6].mxu1 }
 0xc77   : > { %v4267_v54 = vpop.f32.mrb[7].mxu1 }
 0xc7e   : > { %v2284_v56 = vpop.f32.mrb[8].mxu1 }
 0xc7f   : > { %v2288_v57 = vsel %vm1670_vm6, -1024.0, %v2284_v56  ;;  %v4274_v58 = vpop.f32.mrb[9].mxu1  ;;  %v6396_v56 = vld [vmem:[%s6151_s26] sm:$0xff]  ;;  %s6840_s26 = sld [smem:[#allocation75_spill]] }
 0xc80   : > { %v2289_v59 = vsel %vm1757_vm7, %v2288_v57, -inf  ;;  %vm2582_vm11 = vcmp.eq.s32.totalorder %v6396_v56, 0 }
 0xc81   : > { %2290 = vmax.xlane.f32.xlu1 %v2289_v59 }
 0xc92   : > { %2197 = vrot.lane.b32.xlu1 %v2192_v53, %s5489_s7 }
 0xd0e   : > { %v2291_v60 = vpop.xlane.xlu1 %2290 }
 0xd0f   : > { %v2292_v61 = vsub.f32 %v2288_v57, %v2291_v60 }
 0xd11   : > { %v2293_v62 = vmul.f32 1.442695, %v2292_v61 }
 0xd12   : > { %v2198_v5 = vpop.permute.xlu1 %2197 }
 0xd13   : > { %4792 = vpow2.f32 %v2293_v62 }
 0xd1d   : > { %v4793_v63 = vpop.eup %4792 }
 0xd1e   : > { %v2295_v0 = vsel %vm1757_vm7, %v4793_v63, 0.0 }
 0xd1f   : > { %2296 = vadd.xlane.f32.xlu0 %v2295_v0 }
 0xd35   : > { %2018 = vrot.lane.b32.xlu0 %v2013_v30, %s5490_s8 }
 0xdac   : > { %v2297_v3 = vpop.xlane.xlu0 %2296 }
 0xdad   : > { %4794 = vrcp.f32 %v2297_v3  ;;  %v4468_v3 = vpack.c.bf16 %v2587_v55, %v2586_v2 }
 0xdb0   : > { %v2019_v4 = vpop.permute.xlu0 %2018 }
 0xdb1   : > { %2022 = vst.msk [vmem:[#allocation4] sm:$0xff] %vm2021_vm8, %v2019_v4 }
 0xdb2   : > { %2201 = vst.msk [vmem:[#allocation4] sm:$0xff] %vm2200_vm9, %v2198_v5  ;;  %v2755_v5 = vld [vmem:[#allocation3 + $0x10] sm:$0xff] }
 0xdb7   : > { %v4795_v6 = vpop.eup %4794 }
 0xdb8   : > { %v2299_v7 = vmul.f32 %v4795_v6, %v4793_v63  ;;  %v2756_v6 = vld [vmem:[#allocation3 + $0x18] sm:$0xff] }
 0xdb9   : > { %v4471_v8 = vpack.c.bf16 %v2756_v6, %v2755_v5  ;;  %v3114_v5 = vld [vmem:[#allocation3 + $0x70] sm:$0xff]  ;;  %v3115_v6 = vld [vmem:[#allocation3 + $0x78] sm:$0xff] }
 0xdba   : > { %4051 = vst.msk [vmem:[%s6157_s4 + $0x18] sm:$0xff] %vm1757_vm7, %v2299_v7  ;;  %4280 = vmatmul.mubr.msk.f32.vlgmr.msra.gmra.mrb[6].mxu0 %vm1757_vm7, %v2299_v7 }
 0xdbb   : > { %4290 = vmatprep.mubr.msk.f32.mxu0 %vm5484_vm3, %v5485_v31  ;;  %4453 = vmatpush3.bf16.msra.mxu0 %v4452_v10 }
 0xdbc   : > { %4454 = vmatprep.subr.bf16.mxu0 %v5483_v28 }
 0xdbf   : > { %4456 = vmatpush3.bf16.msra.mxu0 %v4455_v13 }
 0xdc0   : > { %4463 = vmatprep.subr.bf16.mxu0 %v5483_v28 }
 0xe8d   : > { %v2371_v14 = vpop.f32.mrb[6].mxu0 }
 0xe8e   : > { %2376 = vrot.lane.b32.xlu0 %v2371_v14, %s5491_s28  ;;  %v4281_v15 = vpop.f32.mrb[7].mxu0 }
 0xf00   : > { %v2377_v16 = vpop.permute.xlu0 %2376 }
 0xf01   : > { %2380 = vst.msk [vmem:[#allocation4] sm:$0xff] %vm2379_vm10, %v2377_v16 }
 0xf08   : > { %v2381_v17 = vld [vmem:[#allocation4] sm:$0xff] }
 0xf09   : > { %4291 = vmatmul.mubr.msk.f32.vlgmr.msra.gmra.mrb[8].mxu0 %vm1550_vm2, %v2381_v17 }
 0xf0a   : > { %4308 = vmatprep.mubr.msk.f32.mxu0 %vm5484_vm3, %v5485_v31  ;;  %4466 = vmatpush3.bf16.xpose.msk.msra.mxu0 %vm6266_vm5, %v4464_v39 }
 0xf0b   : > { %4474 = vmatprep.subr.bf16.mxu0 %v5483_v28 }
 0xfdc   : > { %v2457_v20 = vpop.f32.mrb[8].mxu0 }
 0xfdd   : > { %v2458_v21 = vadd.f32 %v4053_v19, %v2457_v20  ;;  %v4292_v22 = vpop.f32.mrb[9].mxu0 }
 0xfdf   : > { %v6375_v23 = vadd.f32 %v2458_v21, %v6250_v18  ;;  %v2494_v18 = vld [vmem:[#allocation22 + $0x10] sm:$0xff] }
 0xfe0   : > { %v4461_v36 = vpack.c.bf16 %v2495_v35, %v2494_v18 }
 0xfe1   : > { %v2464_v24 = vsel %vm1550_vm2, %v6375_v23, 0.0 }
 0xfe2   : > { %2465 = vadd.xlane.f32.xlu0 %v2464_v24  ;;  %4462 = vmatpush3.bf16.msra.mxu1 %v4461_v36  ;;  %v2758_v24 = vld [vmem:[#allocation3 + $0x50] sm:$0xff] }
 0xfe3   : > { %4467 = vmatprep.subr.bf16.mxu1 %v5483_v28 }
0x106f   : > { %v2466_v25 = vpop.xlane.xlu0 %2465 }
0x1070   : > { %v2467_v26 = vmul.f32 0.03125, %v2466_v25  ;;  %v2759_v25 = vld [vmem:[#allocation3 + $0x58] sm:$0xff] }
0x1072   : > { %v2468_v27 = vsub.f32 %v6375_v23, %v2467_v26  ;;  %v4475_v26 = vpack.c.bf16 %v2759_v25, %v2758_v24 }
0x1074   : > { %v2469_v29 = vmul.f32 %v2468_v27, %v2468_v27 }
0x1076   : > { %v2470_v30 = vsel %vm1550_vm2, %v2469_v29, 0.0  ;;  %v2933_v29 = vld [vmem:[#allocation3 + $0x20] sm:$0xff] }
0x1077   : > { %2471 = vadd.xlane.f32.xlu1 %v2470_v30  ;;  %v2934_v30 = vld [vmem:[#allocation3 + $0x28] sm:$0xff] }
0x1078   : > { %v4478_v33 = vpack.c.bf16 %v2934_v30, %v2933_v29 }
0x1104   : > { %v2472_v40 = vpop.xlane.xlu1 %2471 }
0x1105   : > { %v2473_v41 = vmul.f32 0.03125, %v2472_v40 }
0x1107   : > { %v2474_v42 = vadd.f32 1e-12, %v2473_v41 }
0x1109   : > { %4796 = vrsqrt.f32 %v2474_v42 }
0x1113   : > { %v4797_v43 = vpop.eup %4796 }
0x1114   : > { %v2476_v46 = vmul.f32 %v4797_v43, %v2468_v27 }
0x1116   : > { %v2483_v48 = vmul.f32 %v4055_v44, %v2476_v46 }
0x1118   : > { %v2490_v49 = vadd.f32 %v4056_v47, %v2483_v48 }
0x111a   : > { %4302 = vmatmul.mubr.msk.f32.vlgmr.msra.gmra.mrb[10].mxu1 %vm1550_vm2, %v2490_v49  ;;  %v2936_v49 = vld [vmem:[#allocation3 + $0x60] sm:$0xff] }
0x111b   : > { %4315 = vmatprep.mubr.msk.f32.mxu1 %vm5484_vm3, %v5485_v31  ;;  %4469 = vmatpush3.bf16.msra.mxu1 %v4468_v3 }
0x111c   : > { %4470 = vmatprep.subr.bf16.mxu1 %v5483_v28 }
0x11ed   : > { %v2577_v51 = vpop.f32.mrb[10].mxu1 }
0x11ee   : > { %v2578_v52 = vadd.f32 %v4057_v50, %v2577_v51  ;;  %v4303_v53 = vpop.f32.mrb[11].mxu1  ;;  %v2937_v50 = vld [vmem:[#allocation3 + $0x68] sm:$0xff] }
0x11ef   : > { %v4482_v51 = vpack.c.bf16 %v2937_v50, %v2936_v49  ;;  %v3111_v53 = vld [vmem:[#allocation3 + $0x30] sm:$0xff] }
0x11f0   : > { %v6389_v54 = vmul.f32 0.35355338, %v2578_v52 }
0x11f2   : > { %4309 = vmatmul.mubr.msk.f32.vlgmr.msra.gmra.mrb[10].mxu0 %vm1676_vm4, %v6389_v54 }
0x11f3   : > { %4329 = vmatprep.mubr.msk.f32.mxu0 %vm5484_vm3, %v5485_v31  ;;  %4476 = vmatpush3.bf16.msra.mxu0 %v4475_v26 }
0x11f4   : > { %4477 = vmatprep.subr.bf16.mxu0 %v5483_v28 }
0x12c5   : > { %v2663_v57 = vpop.f32.mrb[10].mxu0 }
0x12c6   : > { %v2667_v58 = vsel %vm2582_vm11, -1024.0, %v2663_v57  ;;  %v4310_v59 = vpop.f32.mrb[11].mxu0 }
0x12c7   : > { %v2668_v60 = vsel %vm1757_vm7, %v2667_v58, -inf }
0x12c8   : > { %2669 = vmax.xlane.f32.xlu0 %v2668_v60 }
0x1355   : > { %v2670_v61 = vpop.xlane.xlu0 %2669 }
0x1356   : > { %v2671_v62 = vsub.f32 %v2667_v58, %v2670_v61 }
0x1358   : > { %v2672_v63 = vmul.f32 1.442695, %v2671_v62 }
0x135a   : > { %4798 = vpow2.f32 %v2672_v63 }
0x1364   : > { %v4799_v0 = vpop.eup %4798 }
0x1365   : > { %v2674_v1 = vsel %vm1757_vm7, %v4799_v0, 0.0 }
0x1366   : > { %2675 = vadd.xlane.f32.xlu0 %v2674_v1 }
0x137c   : > { %2760 = vrot.lane.b32.xlu0 %v6389_v54, %s5486_s14  ;;  %s6839_s14 = sld [smem:[#allocation79_spill]] }
0x13f3   : > { %v2676_v4 = vpop.xlane.xlu0 %2675 }
0x13f4   : > { %4800 = vrcp.f32 %v2676_v4 }
0x13f7   : > { %v2761_v10 = vpop.permute.xlu0 %2760 }
0x13fe   : > { %v4801_v7 = vpop.eup %4800 }
0x13ff   : > { %v2678_v9 = vmul.f32 %v4801_v7, %v4799_v0  ;;  %v4489_v7 = vpack.c.bf16 %v3115_v6, %v3114_v5 }
0x1401   : > { %2679 = vst.msk [vmem:[%s6159_s6] sm:$0xff] %vm1757_vm7, %v2678_v9  ;;  %4316 = vmatmul.mubr.msk.f32.vlgmr.msra.gmra.mrb[12].mxu1 %vm1757_vm7, %v2678_v9 }
0x1402   : > { %4473 = vmatpush3.bf16.xpose.msk.msra.mxu1 %vm6266_vm5, %v4471_v8  ;;  %4322 = vmatprep.mubr.msk.f32.mxu1 %vm5484_vm3, %v5485_v31 }
0x1403   : > { %4481 = vmatprep.subr.bf16.mxu1 %v5483_v28 }
0x1409   : > { %4323 = vmatmul.mubr.msk.f32.vlgmr.msra.gmra.mrb[14].mxu1 %vm1676_vm4, %v2761_v10 }
0x140a   : > { %4343 = vmatprep.mubr.msk.f32.mxu1 %vm5484_vm3, %v5485_v31  ;;  %4483 = vmatpush3.bf16.msra.mxu1 %v4482_v51 }
0x140b   : > { %4484 = vmatprep.subr.bf16.mxu1 %v5483_v28 }
0x14d4   : > { %v2749_v11 = vpop.f32.mrb[12].mxu1 }
0x14d5   : > { %2753 = vst.msk [vmem:[#allocation4] sm:$0xff] %vm1676_vm4, %v2749_v11  ;;  %v4317_v12 = vpop.f32.mrb[13].mxu1  ;;  %v2497_v11 = vld [vmem:[#allocation28] sm:$0xff] }
0x14d6   : > { %v2498_v12 = vld [vmem:[#allocation28 + $0x8] sm:$0xff] }
0x14dc   : > { %v2836_v13 = vpop.f32.mrb[14].mxu1 }
0x14dd   : > { %v2840_v14 = vsel %vm2582_vm11, -1024.0, %v2836_v13  ;;  %v4324_v15 = vpop.f32.mrb[15].mxu1  ;;  %v4492_v13 = vpack.c.bf16 %v2498_v12, %v2497_v11 }
0x14de   : > { %v2841_v16 = vsel %vm1757_vm7, %v2840_v14, -inf  ;;  %v2500_v15 = vld [vmem:[#allocation28 + $0x18] sm:$0xff] }
0x14df   : > { %2842 = vmax.xlane.f32.xlu1 %v2841_v16 }
0x156c   : > { %v2843_v17 = vpop.xlane.xlu1 %2842 }
0x156d   : > { %v2844_v19 = vsub.f32 %v2840_v14, %v2843_v17  ;;  %v2499_v14 = vld [vmem:[#allocation28 + $0x10] sm:$0xff] }
0x156e   : > { %v4495_v16 = vpack.c.bf16 %v2500_v15, %v2499_v14 }
0x156f   : > { %v2845_v20 = vmul.f32 1.442695, %v2844_v19 }
0x1571   : > { %4802 = vpow2.f32 %v2845_v20 }
0x157b   : > { %v4803_v21 = vpop.eup %4802 }
0x157c   : > { %v2847_v22 = vsel %vm1757_vm7, %v4803_v21, 0.0 }
0x157d   : > { %2848 = vadd.xlane.f32.xlu1 %v2847_v22  ;;  %v4078_v22 = vld [vmem:[%s6838_s19] ss:$0 sm:$0xff]  ;;  %s6845_s19 = sld [smem:[#allocation82_spill]] }
0x158e   : > { %2938 = vrot.lane.b32.xlu1 %v6389_v54, %s5487_s16  ;;  %s6843_s16 = sld [smem:[#allocation51_spill]] }
0x1594   : > { %s3580_s25 = sand.u32 1, %s6843_s16   ;;  %s5492_s16 = smov [#allocation32]  }
0x1595   : > { %s5270_s12 = sshll.u32 %s5492_s16, 4  ;;  %s5271_s12 = int_to_ptr.vmem [resolvable:$false] %s5270_s12 }
0x1596   : > { %s5272_s15 = scalar_lea.vmem %s5271_s12, 1024 }
0x160a   : > { %v2849_v27 = vpop.xlane.xlu1 %2848 }
0x160b   : > { %4804 = vrcp.f32 %v2849_v27 }
0x160e   : > { %v2939_v18 = vpop.permute.xlu1 %2938 }
0x1615   : > { %v4805_v32 = vpop.eup %4804 }
0x1616   : > { %v2851_v34 = vmul.f32 %v4805_v32, %v4803_v21 }
0x1618   : > { %4066 = vst.msk [vmem:[%s6159_s6 + $0x8] sm:$0xff] %vm1757_vm7, %v2851_v34  ;;  %4330 = vmatmul.mubr.msk.f32.vlgmr.msra.gmra.mrb[12].mxu0 %vm1757_vm7, %v2851_v34 }
0x1619   : > { %4480 = vmatpush3.bf16.xpose.msk.msra.mxu0 %vm6266_vm5, %v4478_v33  ;;  %4336 = vmatprep.mubr.msk.f32.mxu0 %vm5484_vm3, %v5485_v31 }
0x161a   : > { %4488 = vmatprep.subr.bf16.mxu0 %v5483_v28 }
0x1620   : > { %4337 = vmatmul.mubr.msk.f32.vlgmr.msra.gmra.mrb[14].mxu0 %vm1676_vm4, %v2939_v18  ;;  %v3398_v18 = vld [vmem:[#allocation29] sm:$0xff] }
0x1621   : > { %4357 = vmatprep.mubr.msk.f32.mxu0 %vm5484_vm3, %v5485_v31  ;;  %4490 = vmatpush3.bf16.msra.mxu0 %v4489_v7 }
0x1622   : > { %4491 = vmatprep.subr.bf16.mxu0 %v5483_v28 }
0x16eb   : > { %v2923_v35 = vpop.f32.mrb[12].mxu0 }
0x16ec   : > { %v4331_v36 = vpop.f32.mrb[13].mxu0 }
0x16f3   : > { %v3014_v37 = vpop.f32.mrb[14].mxu0 }
0x16f4   : > { %v3018_v38 = vsel %vm2582_vm11, -1024.0, %v3014_v37  ;;  %v4338_v39 = vpop.f32.mrb[15].mxu0  ;;  %v3401_v37 = vld [vmem:[#allocation29 + $0x18] sm:$0xff] }
0x16f5   : > { %v3019_v40 = vsel %vm1757_vm7, %v3018_v38, -inf  ;;  %v3483_v39 = vld [vmem:[%s6839_s14] sm:$0xff] }
0x16f6   : > { %3020 = vmax.xlane.f32.xlu0 %v3019_v40  ;;  %v3484_v40 = vld [vmem:[%s6839_s14 + $0x8] sm:$0xff] }
0x170c   : > { %3116 = vrot.lane.b32.xlu0 %v6389_v54, %s5488_s24  ;;  %v3112_v54 = vld [vmem:[#allocation3 + $0x38] sm:$0xff]  ;;  %s3615_s24 = sshll.u32 %s6157_s4, 4  ;;  %s6537_s24 = int_to_ptr.vmem [resolvable:$true] %s3615_s24 }
0x170d   : > { %v4485_v58 = vpack.c.bf16 %v3112_v54, %v3111_v53  ;;  %v4080_v53 = vld [vmem:[%s6840_s26] ss:$0 sm:$0xff]  ;;  %s5266_s27 = scalar_lea.vmem %s6537_s24, 512  ;;  %p5273_p5 = scmp.lt.s32.totalorder %s6537_s24, %s5271_s12 }
0x170e   : > { %p5267_p2 = scmp.ne.s32.totalorder %s6537_s24, %s5266_s27  ;;  %p5274_p9 = scmp.lt.s32.totalorder %s5272_s15, %s5266_s27 }
0x1710   : > { %2928 = vrot.lane.b32.xlu0 %v2923_v35, %s5490_s8  ;;  %v3399_v35 = vld [vmem:[#allocation29 + $0x8] sm:$0xff]  ;;  %p5268_p4 = pnand %p5267_p2, %p6846_p12  ;;  %p5275_p3 = por %p5274_p9, %p5273_p5 }
0x1711   : > { %v4498_v36 = vpack.c.bf16 %v3399_v35, %v3398_v18 }
0x1712   : > { %p5269_p6 = pneg %p5268_p4 }
0x1714   : > { %p5276_p10 = pnand %p5275_p3, %p5269_p6 }
0x1783   : > { %v3021_v41 = vpop.xlane.xlu0 %3020 }
0x1784   : > { %v3022_v42 = vsub.f32 %v3018_v38, %v3021_v41  ;;  %v3485_v41 = vld [vmem:[%s6839_s14 + $0x10] sm:$0xff] }
0x1786   : > { %v3023_v43 = vmul.f32 1.442695, %v3022_v42  ;;  %v4504_v42 = vpack.c.bf16 %v3484_v40, %v3483_v39 }
0x1787   : > { %v3117_v44 = vpop.permute.xlu0 %3116 }
0x1788   : > { %4806 = vpow2.f32 %v3023_v43  ;;  %v3486_v43 = vld [vmem:[%s6839_s14 + $0x18] sm:$0xff] }
0x178b   : > { %v2929_v46 = vpop.permute.xlu0 %2928 }
0x178c   : > { %2931 = vst.msk [vmem:[#allocation4] sm:$0xff] %vm2021_vm8, %v2929_v46  ;;  %v3487_v46 = vld [vmem:[%s6839_s14 + $0x20] sm:$0xff] }
0x1792   : > { %v4807_v47 = vpop.eup %4806 }
0x1793   : > { %v3025_v48 = vsel %vm1757_vm7, %v4807_v47, 0.0 }
0x1794   : > { %3026 = vadd.xlane.f32.xlu1 %v3025_v48 }
0x1821   : > { %v3027_v52 = vpop.xlane.xlu1 %3026 }
0x1822   : > { %4808 = vrcp.f32 %v3027_v52 }
0x182c   : > { %v4809_v57 = vpop.eup %4808 }
0x182d   : > { %v3029_v59 = vmul.f32 %v4809_v57, %v4807_v47  ;;  %v3488_v47 = vld [vmem:[%s6839_s14 + $0x28] sm:$0xff]  ;;  %v4081_v57 = vld [vmem:[%s6841_s20] ss:$0 sm:$0xff] }
0x182e   : > { %v4510_v48 = vpack.c.bf16 %v3488_v47, %v3487_v46 }
0x182f   : > { %4071 = vst.msk [vmem:[%s6159_s6 + $0x10] sm:$0xff] %vm1757_vm7, %v3029_v59  ;;  %4344 = vmatmul.mubr.msk.f32.vlgmr.msra.gmra.mrb[16].mxu1 %vm1757_vm7, %v3029_v59 }
0x1830   : > { %4487 = vmatpush3.bf16.xpose.msk.msra.mxu1 %vm6266_vm5, %v4485_v58  ;;  %4350 = vmatprep.mubr.msk.f32.mxu1 %vm5484_vm3, %v5485_v31 }
0x1831   : > { %4497 = vmatprep.subr.bf16.mxu1 %v5483_v28 }
0x1837   : > { %4351 = vmatmul.mubr.msk.f32.vlgmr.msra.gmra.mrb[18].mxu1 %vm1676_vm4, %v3117_v44  ;;  %v4507_v44 = vpack.c.bf16 %v3486_v43, %v3485_v41 }
0x1838   : > { %4379 = vmatprep.mubr.msk.f32.mxu1 %vm5484_vm3, %v5485_v31  ;;  %4499 = vmatpush3.bf16.msra.mxu1 %v4498_v36 }
0x1839   : > { %4500 = vmatprep.subr.bf16.mxu1 %v5483_v28 }
0x1902   : > { %v3101_v60 = vpop.f32.mrb[16].mxu1 }
0x1903   : > { %v4345_v61 = vpop.f32.mrb[17].mxu1 }
0x190a   : > { %v3192_v62 = vpop.f32.mrb[18].mxu1 }
0x190b   : > { %v3196_v63 = vsel %vm2582_vm11, -1024.0, %v3192_v62  ;;  %v4352_v0 = vpop.f32.mrb[19].mxu1  ;;  %v4082_v62 = vld [vmem:[%s6844_s17] ss:$0 sm:$0xff] }
0x190c   : > { %v3197_v45 = vsel %vm1757_vm7, %v3196_v63, -inf }
0x190d   : > { %3198 = vmax.xlane.f32.xlu1 %v3197_v45 }
0x199a   : > { %v3199_v1 = vpop.xlane.xlu1 %3198 }
0x199b   : > { %v3200_v2 = vsub.f32 %v3196_v63, %v3199_v1 }
0x199d   : > { %v3201_v55 = vmul.f32 1.442695, %v3200_v2 }
0x199f   : > { %4810 = vpow2.f32 %v3201_v55 }
0x19a9   : > { %v4811_v3 = vpop.eup %4810 }
0x19aa   : > { %v3203_v4 = vsel %vm1757_vm7, %v4811_v3, 0.0 }
0x19ab   : > { %3204 = vadd.xlane.f32.xlu1 %v3203_v4 }
0x19bc   : > { %3106 = vrot.lane.b32.xlu1 %v3101_v60, %s5489_s7  ;;  %v3490_v60 = vld [vmem:[%s6839_s14 + $0x38] sm:$0xff]  ;;  %s6539_s7 = scalar_lea.sflag [#allocation33], %s3580_s25 }
0x1a38   : > { %v3205_v56 = vpop.xlane.xlu1 %3204 }
0x1a39   : > { %4812 = vrcp.f32 %v3205_v56 }
0x1a3c   : > { %v3107_v8 = vpop.permute.xlu1 %3106 }
0x1a3d   : > { %3109 = vst.msk [vmem:[#allocation4] sm:$0xff] %vm2200_vm9, %v3107_v8 }
0x1a43   : > { %v4813_v9 = vpop.eup %4812 }
0x1a44   : > { %v3207_v10 = vmul.f32 %v4813_v9, %v4811_v3 }
0x1a46   : > { %4076 = vst.msk [vmem:[%s6159_s6 + $0x18] sm:$0xff] %vm1757_vm7, %v3207_v10  ;;  %4358 = vmatmul.mubr.msk.f32.vlgmr.msra.gmra.mrb[16].mxu0 %vm1757_vm7, %v3207_v10 }
0x1a47   : > { %4368 = vmatprep.mubr.msk.f32.mxu0 %vm5484_vm3, %v5485_v31  ;;  %4493 = vmatpush3.bf16.msra.mxu0 %v4492_v13 }
0x1a48   : > { %4494 = vmatprep.subr.bf16.mxu0 %v5483_v28 }
0x1a4b   : > { %4496 = vmatpush3.bf16.msra.mxu0 %v4495_v16 }
0x1a4c   : > { %4503 = vmatprep.subr.bf16.mxu0 %v5483_v28 }
0x1b19   : > { %v3279_v17 = vpop.f32.mrb[16].mxu0 }
0x1b1a   : > { %3284 = vrot.lane.b32.xlu0 %v3279_v17, %s5491_s28  ;;  %v4359_v19 = vpop.f32.mrb[17].mxu0  ;;  %s4092_s28 = sshll.u32 %s6525_s21, 7 }
0x1b1b   : > { %s6534_s20 = scalar_lea.hbm %s6845_s19, %s4092_s28 }
0x1b8c   : > { %v3285_v20 = vpop.permute.xlu0 %3284 }
0x1b8d   : > { %3287 = vst.msk [vmem:[#allocation4] sm:$0xff] %vm2379_vm10, %v3285_v20 }
0x1b94   : > { %v3288_v21 = vld [vmem:[#allocation4] sm:$0xff] }
0x1b95   : > { %4369 = vmatmul.mubr.msk.f32.vlgmr.msra.gmra.mrb[18].mxu0 %vm1550_vm2, %v3288_v21 }
0x1b96   : > { %4398 = vmatprep.mubr.msk.f32.mxu0 %vm5484_vm3, %v5485_v31  ;;  %4505 = vmatpush3.bf16.msra.mxu0 %v4504_v42 }
0x1b97   : > { %4506 = vmatprep.subr.bf16.mxu0 %v5483_v28 }
0x1b9a   : > { %4508 = vmatpush3.bf16.msra.mxu0 %v4507_v44 }
0x1b9b   : > { %4509 = vmatprep.subr.bf16.mxu0 %v5483_v28 }
0x1b9e   : > { %4511 = vmatpush3.bf16.msra.mxu0 %v4510_v48 }
0x1b9f   : > { %4512 = vmatprep.subr.bf16.mxu0 %v5483_v28  ;;  %v3489_v28 = vld [vmem:[%s6839_s14 + $0x30] sm:$0xff] }
0x1ba0   : > { %v4513_v61 = vpack.c.bf16 %v3490_v60, %v3489_v28 }
0x1ba2   : > { %4514 = vmatpush3.bf16.msra.mxu0 %v4513_v61 }
0x1c68   : > { %v3364_v24 = vpop.f32.mrb[18].mxu0 }
0x1c69   : > { %v3365_v25 = vadd.f32 %v4078_v22, %v3364_v24  ;;  %v4370_v26 = vpop.f32.mrb[19].mxu0 }
0x1c6b   : > { %v6479_v27 = vadd.f32 %v3365_v25, %v6375_v23  ;;  %v3400_v23 = vld [vmem:[#allocation29 + $0x10] sm:$0xff] }
0x1c6c   : > { %v4501_v38 = vpack.c.bf16 %v3401_v37, %v3400_v23 }
0x1c6d   : > { %v3371_v29 = vsel %vm1550_vm2, %v6479_v27, 0.0 }
0x1c6e   : > { %3372 = vadd.xlane.f32.xlu0 %v3371_v29  ;;  %4502 = vmatpush3.bf16.msra.mxu1 %v4501_v38 }
0x1cfb   : > { %v3373_v30 = vpop.xlane.xlu0 %3372 }
0x1cfc   : > { %v3374_v32 = vmul.f32 0.03125, %v3373_v30 }
0x1cfe   : > { %v3375_v33 = vsub.f32 %v6479_v27, %v3374_v32 }
0x1d00   : > { %v3376_v34 = vmul.f32 %v3375_v33, %v3375_v33 }
0x1d02   : > { %v3377_v31 = vsel %vm1550_vm2, %v3376_v34, 0.0 }
0x1d03   : > { %3378 = vadd.xlane.f32.xlu1 %v3377_v31 }
0x1d90   : > { %v3379_v49 = vpop.xlane.xlu1 %3378 }
0x1d91   : > { %v3380_v50 = vmul.f32 0.03125, %v3379_v49 }
0x1d93   : > { %v3381_v51 = vadd.f32 1e-12, %v3380_v50 }
0x1d95   : > { %4814 = vrsqrt.f32 %v3381_v51 }
0x1d9f   : > { %v4815_v52 = vpop.eup %4814 }
0x1da0   : > { %v3383_v54 = vmul.f32 %v4815_v52, %v3375_v33 }
0x1da2   : > { %v3390_v58 = vmul.f32 %v4080_v53, %v3383_v54 }
0x1da4   : > { %v3397_v59 = vadd.f32 %v4081_v57, %v3390_v58 }
0x1da6   : > { %4380 = vmatmul.mubr.msk.f32.vlgmr.msra.gmra.mrb[20].mxu1 %vm1550_vm2, %v3397_v59 }
0x1e79   : > { %v3478_v63 = vpop.f32.mrb[20].mxu1 }
0x1e7a   : > { %v3479_v0 = vadd.f32 %v4082_v62, %v3478_v63  ;;  %v4381_v45 = vpop.f32.mrb[21].mxu1 }
0x1e7c   : > { %v3482_v1 = vmax.f32 %v3479_v0, 0.0 }
0x1e7e   : > { %4399 = vmatmul.mubr.msk.f32.vlgmr.msra.gmra.mrb[20].mxu0 %vm3491_vm12, %v3482_v1 }
0x1e7f   : > { %5279 = shalt.err (!%p5276_p10)
}
0x1e80   : > { %s5280_s4 = scalar_lea.hbm %s6534_s20, 512  ;;  %s5284_s22 = scalar_lea.hbm %s6845_s19, 2048 }
0x1e81   : > { %p5281_p1 = scmp.ne.s32.totalorder %s6534_s20, %s5280_s4  ;;  %p5285_p7 = scmp.lt.u32.totalorder %s6534_s20, %s6845_s19 }
0x1e82   : > { %p5286_p8 = scmp.lt.u32.totalorder %s5284_s22, %s5280_s4  ;;  %p5288_p2 = scmp.lt.u32.totalorder %s5280_s4, %s6534_s20 }
0x1e83   : > { %p5282_p13 = pnand %p5281_p1, %p6846_p12 }
0x1e84   : > { %p5287_p11 = por %p5286_p8, %p5285_p7 }
0x1e85   : > { %p5283_p0 = pneg %p5282_p13 }
0x1e86   : > { %p5289_p4 = por %p5288_p2, %p5287_p11 }
0x1e88   : > { %p5290_p6 = pnand %p5289_p4, %p5283_p0 }
0x1e8a   : > { %5293 = shalt.err (!%p5290_p6)
}
0x1e8b   : > { %s5493_s11 = smov 128   ;;  %s5494_s27 = smov 256  }
0x1e8c   : > { %4578 = dma.vmem_to_hbm [thread:$0]  (%p6846_p12), %s6537_s24, 512, %s6534_s20, %s6539_s7, %s5493_s11, %s5494_s27, %s5490_s8  }
0x1e8d   : > { %s6847_s15 = sld [smem:[#allocation83_spill]]  ;;  %s3632_s18 = sshll.u32 %s6159_s6, 4  ;;  %s6574_s18 = int_to_ptr.vmem [resolvable:$true] %s3632_s18 }
0x1e8e   : > { %s5294_s17 = scalar_lea.vmem %s6574_s18, 512  ;;  %s5495_s22 = smov [#allocation34]  }
0x1e8f   : > { %p5295_p5 = scmp.ne.s32.totalorder %s6574_s18, %s5294_s17  ;;  %s5298_s25 = sshll.u32 %s5495_s22, 4  ;;  %s5299_s25 = int_to_ptr.vmem [resolvable:$false] %s5298_s25 }
0x1e90   : > { %s5300_s21 = scalar_lea.vmem %s5299_s25, 1024  ;;  %p5301_p10 = scmp.lt.s32.totalorder %s6574_s18, %s5299_s25 }
0x1e91   : > { %p5296_p9 = pnand %p5295_p5, %p6846_p12  ;;  %p5302_p1 = scmp.lt.s32.totalorder %s5300_s21, %s5294_s17 }
0x1e93   : > { %s6571_s4 = scalar_lea.hbm %s6847_s15, %s4092_s28  ;;  %p5297_p3 = pneg %p5296_p9 }
0x1e94   : > { %p5303_p13 = por %p5302_p1, %p5301_p10 }
0x1e96   : > { %p5304_p0 = pnand %p5303_p13, %p5297_p3 }
0x1e98   : > { %5307 = shalt.err (!%p5304_p0)
}
0x1e99   : > { %s5308_s6 = scalar_lea.hbm %s6571_s4, 512  ;;  %s5312_s24 = scalar_lea.hbm %s6847_s15, 2048 }
0x1e9a   : > { %p5309_p7 = scmp.ne.s32.totalorder %s6571_s4, %s5308_s6  ;;  %p5313_p2 = scmp.lt.u32.totalorder %s6571_s4, %s6847_s15 }
0x1e9b   : > { %p5314_p4 = scmp.lt.u32.totalorder %s5312_s24, %s5308_s6  ;;  %p5316_p5 = scmp.lt.u32.totalorder %s5308_s6, %s6571_s4 }
0x1e9c   : > { %p5310_p8 = pnand %p5309_p7, %p6846_p12 }
0x1e9d   : > { %p5315_p6 = por %p5314_p4, %p5313_p2 }
0x1e9e   : > { %p5311_p11 = pneg %p5310_p8 }
0x1e9f   : > { %p5317_p9 = por %p5316_p5, %p5315_p6 }
0x1ea1   : > { %p5318_p3 = pnand %p5317_p9, %p5311_p11 }
0x1ea3   : > { %5321 = shalt.err (!%p5318_p3)
}
0x1ea4   : > { %4579 = dma.vmem_to_hbm [thread:$0]  (%p6846_p12), %s6574_s18, 512, %s6571_s4, %s6539_s7, %s5493_s11, %s5494_s27, %s5490_s8  }
0x1ea5   : > { %s4089_s12 = sshll.u32 %s6842_s23, 1  ;;  %s6848_s21 = sld [smem:[#allocation80_spill]] }
0x1ea6   : > { %s3597_s17 = sadd.s32 %s6834_s1, %s4089_s12  ;;  %s3601_s28 = sshll.u32 %s6155_s10, 4  ;;  %s6613_s28 = int_to_ptr.vmem [resolvable:$true] %s3601_s28 }
0x1ea7   : > { %s4090_s6 = sshll.u32 %s3597_s17, 7  ;;  %s6849_s26 = sld [smem:[#allocation81_spill]] }
0x1ea8   : > { %s3576_s1 = scalar_lea.sflag [#allocation7], %s6091_s30  ;;  %s5322_s8 = scalar_lea.vmem %s6613_s28, 128 }
0x1ea9   : > { %p5323_p10 = scmp.ne.s32.totalorder %s6613_s28, %s5322_s8  ;;  %s5496_s23 = smov [#allocation31]  }
0x1eaa   : > { %s5326_s7 = sshll.u32 %s5496_s23, 4  ;;  %s5327_s7 = int_to_ptr.vmem [resolvable:$false] %s5326_s7 }
0x1eab   : > { %v4085_v55 = vld [vmem:[%s6848_s21] ss:$0 sm:$0xff]  ;;  %p5324_p1 = pnand %p5323_p10, %p6846_p12  ;;  %s5328_s11 = scalar_lea.vmem %s5327_s7, 256 }
0x1eac   : > { %p5329_p0 = scmp.lt.s32.totalorder %s6613_s28, %s5327_s7  ;;  %p5330_p7 = scmp.lt.s32.totalorder %s5328_s11, %s5322_s8 }
0x1ead   : > { %s6611_s16 = scalar_lea.hbm %s6849_s26, %s4090_s6  ;;  %p5325_p13 = pneg %p5324_p1 }
0x1eae   : > { %p5331_p8 = por %p5330_p7, %p5329_p0 }
0x1eb0   : > { %p5332_p11 = pnand %p5331_p8, %p5325_p13 }
0x1f51   : > { %v3561_v2 = vpop.f32.mrb[20].mxu0 }
0x1f52   : > { %v3565_v3 = vadd.f32 %v3561_v2, %v6479_v27  ;;  %v4400_v4 = vpop.f32.mrb[21].mxu0 }
0x1f54   : > { %v3573_v5 = vadd.f32 %v4085_v55, %v3565_v3 }
0x1f56   : > { %3574 = vst.msk [vmem:[%s6155_s10] sm:$0xff] %vm1550_vm2, %v3573_v5 }
0x1f57   : > { %5335 = shalt.err (!%p5332_p11)
}
0x1f58   : > { %s5336_s10 = scalar_lea.hbm %s6611_s16, 128  ;;  %s5340_s4 = scalar_lea.hbm %s6849_s26, 512 }
0x1f59   : > { %p5337_p2 = scmp.ne.s32.totalorder %s6611_s16, %s5336_s10  ;;  %p5341_p5 = scmp.lt.u32.totalorder %s6611_s16, %s6849_s26 }
0x1f5a   : > { %p5342_p9 = scmp.lt.u32.totalorder %s5340_s4, %s5336_s10  ;;  %p5344_p10 = scmp.lt.u32.totalorder %s5336_s10, %s6611_s16 }
0x1f5b   : > { %p5338_p4 = pnand %p5337_p2, %p6846_p12 }
0x1f5c   : > { %p5343_p3 = por %p5342_p9, %p5341_p5 }
0x1f5d   : > { %p5339_p6 = pneg %p5338_p4 }
0x1f5e   : > { %p5345_p1 = por %p5344_p10, %p5343_p3 }
0x1f60   : > { %p5346_p13 = pnand %p5345_p1, %p5339_p6 }
0x1f62   : > { %5349 = shalt.err (!%p5346_p13)
}
0x1f63   : > { %4577 = dma.vmem_to_hbm [thread:$0]  (%p6846_p12), %s6613_s28, 128, %s6611_s16, %s3576_s1  }
0x1f64 PF: > { %s6850_s17 = sld [smem:[#allocation46_spill]]  ;;  %p4674_p0 = scmp.ge.s32.totalorder %s5456_s0, 2 }
0x1f65   : > { %p6851_p7 = scmp.ne.s32.totalorder %s6807_s29, 0 }
0x1f67   : > { %p4634_p8 = pnand %p4674_p0, %p6851_p7 }
0x1f6a   : > { %s3647_s22 = sand.u32 1, %s6850_s17  }
0x1f6b   : > { %s3648_s25 = scalar_lea.sflag [#allocation7], %s3647_s22 }
0x1f6c   : > { %5419 = dma.done.wait (!%p4634_p8), %s3648_s25, 128  }
0x1f6d   : > { %5421 = vsyncadd (!%p4634_p8), %s3648_s25, 4294967168  ;;  %s6852_s21 = sadd.s32 4294967294, %s5456_s0  }
0x1f6e   : > { %s3656_s6 = sand.u32 1, %s6852_s21  }
0x1f6f   : > { %s3657_s20 = scalar_lea.sflag [#allocation33], %s3656_s6 }
0x1f70   : > { %5423 = dma.done.wait (!%p4634_p8), %s3657_s20, 1024  }
0x1f71   : > { %5425 = vsyncadd (!%p4634_p8), %s3657_s20, 4294966272  ;;  %s56_s0 = sadd.s32 1, %s5456_s0   ;;  %s6853_s30 = sld [smem:[#allocation49_spill]] }
0x1f72   : > { %p53_p12 = scmp.ge.s32.totalorder %s56_s0, 6   ;;  %s6854_s2 = sld [smem:[#allocation50_spill]] }
0x1f73   : > { %s6855_s6 = sld [smem:[#allocation53_spill]]  ;;  %s6856_s10 = sld [smem:[#allocation54_spill]] }
0x1f74   : > { %s6857_s8 = smov %s5432_s5  ;;  %s6858_s5 = smov %s5436_s9 }
0x1f75   : > { %s6859_s9 = smov %s6046_s3  ;;  %55 = sbr.rel (!%p53_p12) target bundleno = 47 (0x2f), region = 309 }
0x1f78   : > { %s6860_s3 = smov %s6854_s2 }
0x1f7c   :  { %3671 = vsyncpa [#allocation6], 1 }
0x1f7d   :  { %3673 = vsyncpa [#allocation6 + $0x1], 1 }
0x1f7e   :  { %3674 = vsyncpa [#allocation9], 1 }
0x1f7f   :  { %3675 = vsyncpa [#allocation12], 1 }
0x1f80   :  { %3676 = vsyncpa [#allocation15], 1 }
0x1f81   :  { %3677 = vsyncpa [#allocation18], 1 }
0x1f82   :  { %3678 = vsyncpa [#allocation21], 1 }
0x1f83   :  { %3679 = vsyncpa [#allocation24], 1 }
0x1f84   :  { %3680 = vsyncpa [#allocation27], 1 }
0x1f85   :  { %3681 = vsyncpa [#allocation30], 1 }
0x1f86   :  { %3682 = vsyncpa [#allocation7], 1 }
0x1f87   :  { %3684 = vsyncpa [#allocation7 + $0x1], 1 }
0x1f88   :  { %3685 = vsyncpa [#allocation33], 1 }
0x1f89   :  { %3687 = vsyncpa [#allocation33 + $0x1], 1 }

</bundles_post_ra>
